<compile_context>
chip_gen: v7x
topology: tpu7x:2x2x1
jax: 0.10.0
libtpu: 0.0.40
codegen_flags: <defaults>
</compile_context>

<pallas_src>
import functools

import jax
import jax.numpy as jnp
from jax import lax
from jax.experimental import pallas as pl
from jax.experimental.pallas import tpu as pltpu

HIDDEN_SIZE = 256      # fixed by the module
EMBED_SIZE = 16        # fixed by the module
NONE_INDEX = 0         # event_index['NONE']
LEAKY_SLOPE = 0.01     # F.leaky_relu default


def _round_up(n, m):
    return ((n + m - 1) // m) * m


def _phase1_kernel(x_ref,      # (ts, 256)    matmul_dtype  x tile
                   w1x_ref,    # (256, tmp)   matmul_dtype  W1 (x part)
                   ec_ref,     # (E, tmp)     f32           emb_table @ W1e + b1
                   w2_ref,     # (tmp, E)     matmul_dtype  W2
                   b2_ref,     # (1, E)       f32
                   logp_ref,   # (ts, E*E)    f32  out: candidate log-softmax rows
                   nid_ref,    # (ts, E)      i32  out: candidate argmax table
                   h_scr,      # (E*ts, tmp)  matmul_dtype  scratch
                   *, ts, E):
    """Batched per-tile work: every candidate's log-softmax row + argmax."""
    # (ts, 256) @ (256, tmp): one MXU matmul, f32 accumulate.
    hx = jnp.dot(x_ref[...], w1x_ref[...], preferred_element_type=jnp.float32)
    ec = ec_ref[...]                                   # hoisted once (item 10)

    # Build H_all = leaky_relu(hx + ec[c]) for every candidate prev class c,
    # packed so the second Linear is a single MXU push (item 5).
    for c in range(E):
        h = hx + ec[c:c + 1, :]
        h = jnp.where(h > 0, h, LEAKY_SLOPE * h)       # leaky_relu (f32, VPU)
        h_scr[c * ts:(c + 1) * ts, :] = h.astype(h_scr.dtype)

    logits = jnp.dot(h_scr[...], w2_ref[...],
                     preferred_element_type=jnp.float32) + b2_ref[...]   # (E*ts, E)

    m = jnp.max(logits, axis=1, keepdims=True)
    logp = logits - (m + jnp.log(jnp.sum(jnp.exp(logits - m),
                                         axis=1, keepdims=True)))
    # First-argmax per row (ties -> smallest index, matching list.index(max)).
    # Filler E-1 keeps the result in [0, E) even for pathological (NaN) rows,
    # so the SMEM chase can never go out of bounds.
    lane = lax.broadcasted_iota(jnp.int32, logits.shape, 1)
    nid = jnp.min(jnp.where(logits == m, lane, jnp.int32(E - 1)),
                  axis=1, keepdims=True)               # (E*ts, 1) int32

    # Lane-dense write-back: row i holds all E candidates side by side.
    logp_ref[...] = jnp.concatenate(
        [logp[c * ts:(c + 1) * ts, :] for c in range(E)], axis=1)   # (ts, E*E)
    nid_ref[...] = jnp.concatenate(
        [nid[c * ts:(c + 1) * ts, :] for c in range(E)], axis=1)    # (ts, E)


def _chase_kernel(nid_ref,     # SMEM (seq*E,) int32: next_idx[i*E + c]
                  prev_ref,    # SMEM (seq,)   int32 out: class embedded at row i
                  idx_ref,     # SMEM (seq,)   int32 out: class chosen at row i
                  *, seq, E, none_index):
    """Serial recurrence reduced to a scalar index chase through SMEM."""
    def body(i, prev):
        nxt = nid_ref[i * E + prev]     # scalar SMEM load (the only serial dep)
        prev_ref[i] = prev
        idx_ref[i] = nxt                # = argmax of the emitted row i
        return nxt
    lax.fori_loop(0, seq, body, jnp.int32(none_index), unroll=8)


def trigger_recognition(x, emb_table, w1, b1, w2, b2, *,
                        none_index=NONE_INDEX, tile_seq=256,
                        matmul_dtype=jnp.float32):
    """x: (seq, 1, 256) like the PyTorch `output`.
    Returns (ner_output, ner_emb, ner_index)."""
    seq, one, hidden = x.shape
    assert one == 1 and hidden == HIDDEN_SIZE
    tmp_dim = w1.shape[1]
    E = w2.shape[1]
    emb_dim = emb_table.shape[1]
    assert emb_table.shape[0] >= E and 0 <= none_index < E
    assert w1.shape[0] == HIDDEN_SIZE + emb_dim

    x2d = x.reshape(seq, hidden).astype(jnp.float32)
    w1f = w1.astype(jnp.float32)
    # Fold: ec[c, :] = emb_table[c] @ W1e + b1 (constant w.r.t. the input).
    ec = emb_table.astype(jnp.float32) @ w1f[HIDDEN_SIZE:] \
        + b1.astype(jnp.float32)[None, :]

    # Sequence tiling; multiples of 16 keep bf16 sublane tiling legal as well.
    ts = min(_round_up(seq, 16), _round_up(tile_seq, 16))
    seq_pad = _round_up(seq, ts)
    if seq_pad != seq:
        x2d = jnp.pad(x2d, ((0, seq_pad - seq), (0, 0)))

    # ---------------- Kernel 1: batched candidate precompute ----------------
    phase1 = functools.partial(_phase1_kernel, ts=ts, E=E)
    logp_all, nid = pl.pallas_call(
        phase1,
        grid=(seq_pad // ts,),
        out_shape=(jax.ShapeDtypeStruct((seq_pad, E * E), jnp.float32),
                   jax.ShapeDtypeStruct((seq_pad, E), jnp.int32)),
        in_specs=[
            pl.BlockSpec((ts, HIDDEN_SIZE), lambda t: (t, 0)),       # x tile
            pl.BlockSpec((HIDDEN_SIZE, tmp_dim), lambda t: (0, 0)),  # W1x
            pl.BlockSpec((E, tmp_dim), lambda t: (0, 0)),            # emb@W1e + b1
            pl.BlockSpec((tmp_dim, E), lambda t: (0, 0)),            # W2
            pl.BlockSpec((1, E), lambda t: (0, 0)),                  # b2
        ],
        out_specs=(pl.BlockSpec((ts, E * E), lambda t: (t, 0)),      # lane-dense
                   pl.BlockSpec((ts, E), lambda t: (t, 0))),
        scratch_shapes=[pltpu.VMEM((E * ts, tmp_dim), matmul_dtype)],
        compiler_params=pltpu.CompilerParams(
            dimension_semantics=("parallel",),          # no cross-tile carry
            vmem_limit_bytes=48 * 1024 * 1024),         # item 8 (safe < v7x 64MiB)
    )(x2d.astype(matmul_dtype),
      w1f[:HIDDEN_SIZE].astype(matmul_dtype),
      ec,
      w2.astype(matmul_dtype),
      b2.astype(jnp.float32).reshape(1, E))

    # ---------------- Kernel 2: scalar SMEM index chase ---------------------
    nid_flat = nid[:seq].reshape(seq * E)               # [i*E + c], pads dropped
    chase = functools.partial(_chase_kernel, seq=seq, E=E, none_index=none_index)
    prev_idx, ner_index = pl.pallas_call(
        chase,
        out_shape=(jax.ShapeDtypeStruct((seq,), jnp.int32),
                   jax.ShapeDtypeStruct((seq,), jnp.int32)),
        in_specs=[pl.BlockSpec(memory_space=pltpu.MemorySpace.SMEM)],
        out_specs=(pl.BlockSpec(memory_space=pltpu.MemorySpace.SMEM),
                   pl.BlockSpec(memory_space=pltpu.MemorySpace.SMEM)),
    )(nid_flat)

    # ---------------- Batched reconstruction (off the serial path) ----------
    logp3 = logp_all[:seq].reshape(seq, E, E)            # [row, prev cand, class]
    ner_output = jnp.take_along_axis(
        logp3, prev_idx[:, None, None], axis=1)[:, 0, :]               # (seq, E)
    ner_emb = emb_table[ner_index].reshape(seq, 1, emb_dim)
    return ner_output, ner_emb, ner_index


def _reference(x, emb_table, w1, b1, w2, b2, none_index=NONE_INDEX):
    """Pure-JAX reference of the same recurrence (f32)."""
    seq = x.shape[0]
    x2d = x.reshape(seq, HIDDEN_SIZE).astype(jnp.float32)
    w1x, w1e = w1[:HIDDEN_SIZE], w1[HIDDEN_SIZE:]

    def step(emb, x_row):
        h = x_row[None, :] @ w1x + emb @ w1e + b1[None, :]
        h = jnp.where(h > 0, h, LEAKY_SLOPE * h)
        logits = h @ w2 + b2[None, :]
        logp = jax.nn.log_softmax(logits, axis=1)
        idx = jnp.argmax(logp, axis=1)[0]     # module argmaxes the log-softmax row
        new_emb = emb_table[idx][None, :]
        return new_emb, (logp[0], new_emb[0], idx.astype(jnp.int32))

    _, (logps, embs, idxs) = lax.scan(step, emb_table[none_index][None, :], x2d)
    return logps, embs.reshape(seq, 1, emb_table.shape[1]), idxs


if __name__ == "__main__":
    seq = 8
    trigger_dim = 16   # number of event classes (event_dim)
    tmp_dim = 128      # hidden dim of the first Linear ("tmp_dim" in the module)

    key = jax.random.PRNGKey(0)
    k_x, k_emb, k_w1, k_b1, k_w2, k_b2 = jax.random.split(key, 6)

    x = jax.random.normal(k_x, (seq, 1, HIDDEN_SIZE), dtype=jnp.float32)
    emb_table = jax.random.normal(k_emb, (trigger_dim, EMBED_SIZE), dtype=jnp.float32) * 0.5
    w1 = jax.random.normal(k_w1, (HIDDEN_SIZE + EMBED_SIZE, tmp_dim), dtype=jnp.float32) * 0.05
    b1 = jax.random.normal(k_b1, (tmp_dim,), dtype=jnp.float32) * 0.05
    w2 = jax.random.normal(k_w2, (tmp_dim, trigger_dim), dtype=jnp.float32) * 0.05
    b2 = jax.random.normal(k_b2, (trigger_dim,), dtype=jnp.float32) * 0.05

    ner_output, ner_emb, ner_index = trigger_recognition(x, emb_table, w1, b1, w2, b2)
    jax.block_until_ready((ner_output, ner_emb, ner_index))

    ref_out, ref_emb, ref_idx = _reference(x, emb_table, w1, b1, w2, b2)
    assert jnp.allclose(ner_output, ref_out, atol=1e-4, rtol=1e-4), "log-softmax mismatch"
    assert jnp.allclose(ner_emb, ref_emb, atol=1e-5), "embedding mismatch"
    assert jnp.array_equal(ner_index, ref_idx), "index mismatch"

    # Tie-break pin (review correctness note 3): zero W2/b2 -> every logit in a
    # row is identical -> first-argmax must pick class 0 at every step and every
    # emitted row must equal log(1/E).
    tie_out, _, tie_idx = trigger_recognition(x, emb_table, w1, b1,
                                              jnp.zeros_like(w2), jnp.zeros_like(b2))
    jax.block_until_ready((tie_out, tie_idx))
    assert jnp.array_equal(tie_idx, jnp.zeros((seq,), jnp.int32)), "tie-break mismatch"
    assert jnp.allclose(tie_out, jnp.full((seq, trigger_dim),
                                          -jnp.log(float(trigger_dim))), atol=1e-5)

    # bf16 MXU-operand smoke run (recommended on v6e/v7x; elementwise stays f32
    # so it is also v5e-safe).  Shape/run check only: a near-tie argmax flip
    # under bf16 rounding diverges the chosen-class *path*, so strict value
    # comparison against the f32 reference is intentionally not asserted.
    bf_out, bf_emb, bf_idx = trigger_recognition(x, emb_table, w1, b1, w2, b2,
                                                 matmul_dtype=jnp.bfloat16)
    jax.block_until_ready((bf_out, bf_emb, bf_idx))
    assert bf_out.shape == ner_output.shape and bf_idx.shape == ner_index.shape

    print("KERNEL_OK")
</pallas_src>

<mosaic_0001>
module attributes {stable_mosaic.version = 11 : i64} {
  func.func @_phase1_kernel(%arg0: i32, %arg1: memref<16x256xf32, #tpu.memory_space<vmem>>, %arg2: memref<256x128xf32, #tpu.memory_space<vmem>>, %arg3: memref<16x128xf32, #tpu.memory_space<vmem>>, %arg4: memref<128x16xf32, #tpu.memory_space<vmem>>, %arg5: memref<1x16xf32, #tpu.memory_space<vmem>>, %arg6: memref<16x256xf32, #tpu.memory_space<vmem>>, %arg7: memref<16x16xi32, #tpu.memory_space<vmem>>, %arg8: memref<256x128xf32, #tpu.memory_space<vmem>>) attributes {dimension_semantics = [#tpu.dimension_semantics<parallel>], iteration_bounds = array<i64: 1>, scalar_prefetch = 0 : i64, scratch_operands = 1 : i64, tpu.core_type = #tpu.core_type<tc>, window_params = [{transform_indices = @transform_0, window_bounds = array<i64: 16, 256>}, {pipeline_mode = #tpu.pipeline_mode<synchronous>, transform_indices = @transform_1, window_bounds = array<i64: 256, 128>}, {pipeline_mode = #tpu.pipeline_mode<synchronous>, transform_indices = @transform_2, window_bounds = array<i64: 16, 128>}, {pipeline_mode = #tpu.pipeline_mode<synchronous>, transform_indices = @transform_3, window_bounds = array<i64: 128, 16>}, {pipeline_mode = #tpu.pipeline_mode<synchronous>, transform_indices = @transform_4, window_bounds = array<i64: 1, 16>}, {transform_indices = @transform_5, window_bounds = array<i64: 16, 256>}, {transform_indices = @transform_6, window_bounds = array<i64: 16, 16>}]} {
    %c0 = arith.constant 0 : index
    %c0_0 = arith.constant 0 : index
    %0 = vector.load %arg1[%c0, %c0_0] : memref<16x256xf32, #tpu.memory_space<vmem>>, vector<16x256xf32>
    %c0_1 = arith.constant 0 : index
    %c0_2 = arith.constant 0 : index
    %1 = vector.load %arg2[%c0_1, %c0_2] : memref<256x128xf32, #tpu.memory_space<vmem>>, vector<256x128xf32>
    %cst = arith.constant dense<0.000000e+00> : vector<16x128xf32>
    %2 = tpu.matmul %0, %1, %cst {dimension_numbers = #tpu.dot_dimension_numbers<[1], [0], [0], [1], [0, 0, 1, 1], [], []>} : vector<16x256xf32>, vector<256x128xf32>, vector<16x128xf32> -> vector<16x128xf32>
    %c0_3 = arith.constant 0 : index
    %c0_4 = arith.constant 0 : index
    %3 = vector.load %arg3[%c0_3, %c0_4] : memref<16x128xf32, #tpu.memory_space<vmem>>, vector<16x128xf32>
    %4 = vector.extract_strided_slice %3 {offsets = [0, 0], sizes = [1, 128], strides = [1, 1]} : vector<16x128xf32> to vector<1x128xf32>
    %5 = vector.broadcast %4 : vector<1x128xf32> to vector<16x128xf32>
    %6 = arith.addf %2, %5 : vector<16x128xf32>
    %cst_5 = arith.constant 0.000000e+00 : f32
    %7 = vector.broadcast %cst_5 : f32 to vector<16x128xf32>
    %8 = arith.cmpf ogt, %6, %7 : vector<16x128xf32>
    %cst_6 = arith.constant 0.00999999977 : f32
    %9 = vector.broadcast %cst_6 : f32 to vector<16x128xf32>
    %10 = arith.mulf %9, %6 : vector<16x128xf32>
    %11 = arith.select %8, %6, %10 : vector<16x128xi1>, vector<16x128xf32>
    %c0_7 = arith.constant 0 : index
    %c0_8 = arith.constant 0 : index
    %12 = vector.load %arg8[%c0_7, %c0_8] : memref<256x128xf32, #tpu.memory_space<vmem>>, vector<16x128xf32>
    tpu.vector_store %arg8[%c0_7, %c0_8], %11 {strides = array<i32>} : memref<256x128xf32, #tpu.memory_space<vmem>>, vector<16x128xf32>,
    %13 = vector.extract_strided_slice %3 {offsets = [1, 0], sizes = [1, 128], strides = [1, 1]} : vector<16x128xf32> to vector<1x128xf32>
    %14 = vector.broadcast %13 : vector<1x128xf32> to vector<16x128xf32>
    %15 = arith.addf %2, %14 : vector<16x128xf32>
    %cst_9 = arith.constant 0.000000e+00 : f32
    %16 = vector.broadcast %cst_9 : f32 to vector<16x128xf32>
    %17 = arith.cmpf ogt, %15, %16 : vector<16x128xf32>
    %cst_10 = arith.constant 0.00999999977 : f32
    %18 = vector.broadcast %cst_10 : f32 to vector<16x128xf32>
    %19 = arith.mulf %18, %15 : vector<16x128xf32>
    %20 = arith.select %17, %15, %19 : vector<16x128xi1>, vector<16x128xf32>
    %c16 = arith.constant 16 : index
    %c0_11 = arith.constant 0 : index
    %21 = vector.load %arg8[%c16, %c0_11] : memref<256x128xf32, #tpu.memory_space<vmem>>, vector<16x128xf32>
    tpu.vector_store %arg8[%c16, %c0_11], %20 {strides = array<i32>} : memref<256x128xf32, #tpu.memory_space<vmem>>, vector<16x128xf32>,
    %22 = vector.extract_strided_slice %3 {offsets = [2, 0], sizes = [1, 128], strides = [1, 1]} : vector<16x128xf32> to vector<1x128xf32>
    %23 = vector.broadcast %22 : vector<1x128xf32> to vector<16x128xf32>
    %24 = arith.addf %2, %23 : vector<16x128xf32>
    %cst_12 = arith.constant 0.000000e+00 : f32
    %25 = vector.broadcast %cst_12 : f32 to vector<16x128xf32>
    %26 = arith.cmpf ogt, %24, %25 : vector<16x128xf32>
    %cst_13 = arith.constant 0.00999999977 : f32
    %27 = vector.broadcast %cst_13 : f32 to vector<16x128xf32>
    %28 = arith.mulf %27, %24 : vector<16x128xf32>
    %29 = arith.select %26, %24, %28 : vector<16x128xi1>, vector<16x128xf32>
    %c32 = arith.constant 32 : index
    %c0_14 = arith.constant 0 : index
    %30 = vector.load %arg8[%c32, %c0_14] : memref<256x128xf32, #tpu.memory_space<vmem>>, vector<16x128xf32>
    tpu.vector_store %arg8[%c32, %c0_14], %29 {strides = array<i32>} : memref<256x128xf32, #tpu.memory_space<vmem>>, vector<16x128xf32>,
    %31 = vector.extract_strided_slice %3 {offsets = [3, 0], sizes = [1, 128], strides = [1, 1]} : vector<16x128xf32> to vector<1x128xf32>
    %32 = vector.broadcast %31 : vector<1x128xf32> to vector<16x128xf32>
    %33 = arith.addf %2, %32 : vector<16x128xf32>
    %cst_15 = arith.constant 0.000000e+00 : f32
    %34 = vector.broadcast %cst_15 : f32 to vector<16x128xf32>
    %35 = arith.cmpf ogt, %33, %34 : vector<16x128xf32>
    %cst_16 = arith.constant 0.00999999977 : f32
    %36 = vector.broadcast %cst_16 : f32 to vector<16x128xf32>
    %37 = arith.mulf %36, %33 : vector<16x128xf32>
    %38 = arith.select %35, %33, %37 : vector<16x128xi1>, vector<16x128xf32>
    %c48 = arith.constant 48 : index
    %c0_17 = arith.constant 0 : index
    %39 = vector.load %arg8[%c48, %c0_17] : memref<256x128xf32, #tpu.memory_space<vmem>>, vector<16x128xf32>
    tpu.vector_store %arg8[%c48, %c0_17], %38 {strides = array<i32>} : memref<256x128xf32, #tpu.memory_space<vmem>>, vector<16x128xf32>,
    %40 = vector.extract_strided_slice %3 {offsets = [4, 0], sizes = [1, 128], strides = [1, 1]} : vector<16x128xf32> to vector<1x128xf32>
    %41 = vector.broadcast %40 : vector<1x128xf32> to vector<16x128xf32>
    %42 = arith.addf %2, %41 : vector<16x128xf32>
    %cst_18 = arith.constant 0.000000e+00 : f32
    %43 = vector.broadcast %cst_18 : f32 to vector<16x128xf32>
    %44 = arith.cmpf ogt, %42, %43 : vector<16x128xf32>
    %cst_19 = arith.constant 0.00999999977 : f32
    %45 = vector.broadcast %cst_19 : f32 to vector<16x128xf32>
    %46 = arith.mulf %45, %42 : vector<16x128xf32>
    %47 = arith.select %44, %42, %46 : vector<16x128xi1>, vector<16x128xf32>
    %c64 = arith.constant 64 : index
    %c0_20 = arith.constant 0 : index
    %48 = vector.load %arg8[%c64, %c0_20] : memref<256x128xf32, #tpu.memory_space<vmem>>, vector<16x128xf32>
    tpu.vector_store %arg8[%c64, %c0_20], %47 {strides = array<i32>} : memref<256x128xf32, #tpu.memory_space<vmem>>, vector<16x128xf32>,
    %49 = vector.extract_strided_slice %3 {offsets = [5, 0], sizes = [1, 128], strides = [1, 1]} : vector<16x128xf32> to vector<1x128xf32>
    %50 = vector.broadcast %49 : vector<1x128xf32> to vector<16x128xf32>
    %51 = arith.addf %2, %50 : vector<16x128xf32>
    %cst_21 = arith.constant 0.000000e+00 : f32
    %52 = vector.broadcast %cst_21 : f32 to vector<16x128xf32>
    %53 = arith.cmpf ogt, %51, %52 : vector<16x128xf32>
    %cst_22 = arith.constant 0.00999999977 : f32
    %54 = vector.broadcast %cst_22 : f32 to vector<16x128xf32>
    %55 = arith.mulf %54, %51 : vector<16x128xf32>
    %56 = arith.select %53, %51, %55 : vector<16x128xi1>, vector<16x128xf32>
    %c80 = arith.constant 80 : index
    %c0_23 = arith.constant 0 : index
    %57 = vector.load %arg8[%c80, %c0_23] : memref<256x128xf32, #tpu.memory_space<vmem>>, vector<16x128xf32>
    tpu.vector_store %arg8[%c80, %c0_23], %56 {strides = array<i32>} : memref<256x128xf32, #tpu.memory_space<vmem>>, vector<16x128xf32>,
    %58 = vector.extract_strided_slice %3 {offsets = [6, 0], sizes = [1, 128], strides = [1, 1]} : vector<16x128xf32> to vector<1x128xf32>
    %59 = vector.broadcast %58 : vector<1x128xf32> to vector<16x128xf32>
    %60 = arith.addf %2, %59 : vector<16x128xf32>
    %cst_24 = arith.constant 0.000000e+00 : f32
    %61 = vector.broadcast %cst_24 : f32 to vector<16x128xf32>
    %62 = arith.cmpf ogt, %60, %61 : vector<16x128xf32>
    %cst_25 = arith.constant 0.00999999977 : f32
    %63 = vector.broadcast %cst_25 : f32 to vector<16x128xf32>
    %64 = arith.mulf %63, %60 : vector<16x128xf32>
    %65 = arith.select %62, %60, %64 : vector<16x128xi1>, vector<16x128xf32>
    %c96 = arith.constant 96 : index
    %c0_26 = arith.constant 0 : index
    %66 = vector.load %arg8[%c96, %c0_26] : memref<256x128xf32, #tpu.memory_space<vmem>>, vector<16x128xf32>
    tpu.vector_store %arg8[%c96, %c0_26], %65 {strides = array<i32>} : memref<256x128xf32, #tpu.memory_space<vmem>>, vector<16x128xf32>,
    %67 = vector.extract_strided_slice %3 {offsets = [7, 0], sizes = [1, 128], strides = [1, 1]} : vector<16x128xf32> to vector<1x128xf32>
    %68 = vector.broadcast %67 : vector<1x128xf32> to vector<16x128xf32>
    %69 = arith.addf %2, %68 : vector<16x128xf32>
    %cst_27 = arith.constant 0.000000e+00 : f32
    %70 = vector.broadcast %cst_27 : f32 to vector<16x128xf32>
    %71 = arith.cmpf ogt, %69, %70 : vector<16x128xf32>
    %cst_28 = arith.constant 0.00999999977 : f32
    %72 = vector.broadcast %cst_28 : f32 to vector<16x128xf32>
    %73 = arith.mulf %72, %69 : vector<16x128xf32>
    %74 = arith.select %71, %69, %73 : vector<16x128xi1>, vector<16x128xf32>
    %c112 = arith.constant 112 : index
    %c0_29 = arith.constant 0 : index
    %75 = vector.load %arg8[%c112, %c0_29] : memref<256x128xf32, #tpu.memory_space<vmem>>, vector<16x128xf32>
    tpu.vector_store %arg8[%c112, %c0_29], %74 {strides = array<i32>} : memref<256x128xf32, #tpu.memory_space<vmem>>, vector<16x128xf32>,
    %76 = vector.extract_strided_slice %3 {offsets = [8, 0], sizes = [1, 128], strides = [1, 1]} : vector<16x128xf32> to vector<1x128xf32>
    %77 = vector.broadcast %76 : vector<1x128xf32> to vector<16x128xf32>
    %78 = arith.addf %2, %77 : vector<16x128xf32>
    %cst_30 = arith.constant 0.000000e+00 : f32
    %79 = vector.broadcast %cst_30 : f32 to vector<16x128xf32>
    %80 = arith.cmpf ogt, %78, %79 : vector<16x128xf32>
    %cst_31 = arith.constant 0.00999999977 : f32
    %81 = vector.broadcast %cst_31 : f32 to vector<16x128xf32>
    %82 = arith.mulf %81, %78 : vector<16x128xf32>
    %83 = arith.select %80, %78, %82 : vector<16x128xi1>, vector<16x128xf32>
    %c128 = arith.constant 128 : index
    %c0_32 = arith.constant 0 : index
    %84 = vector.load %arg8[%c128, %c0_32] : memref<256x128xf32, #tpu.memory_space<vmem>>, vector<16x128xf32>
    tpu.vector_store %arg8[%c128, %c0_32], %83 {strides = array<i32>} : memref<256x128xf32, #tpu.memory_space<vmem>>, vector<16x128xf32>,
    %85 = vector.extract_strided_slice %3 {offsets = [9, 0], sizes = [1, 128], strides = [1, 1]} : vector<16x128xf32> to vector<1x128xf32>
    %86 = vector.broadcast %85 : vector<1x128xf32> to vector<16x128xf32>
    %87 = arith.addf %2, %86 : vector<16x128xf32>
    %cst_33 = arith.constant 0.000000e+00 : f32
    %88 = vector.broadcast %cst_33 : f32 to vector<16x128xf32>
    %89 = arith.cmpf ogt, %87, %88 : vector<16x128xf32>
    %cst_34 = arith.constant 0.00999999977 : f32
    %90 = vector.broadcast %cst_34 : f32 to vector<16x128xf32>
    %91 = arith.mulf %90, %87 : vector<16x128xf32>
    %92 = arith.select %89, %87, %91 : vector<16x128xi1>, vector<16x128xf32>
    %c144 = arith.constant 144 : index
    %c0_35 = arith.constant 0 : index
    %93 = vector.load %arg8[%c144, %c0_35] : memref<256x128xf32, #tpu.memory_space<vmem>>, vector<16x128xf32>
    tpu.vector_store %arg8[%c144, %c0_35], %92 {strides = array<i32>} : memref<256x128xf32, #tpu.memory_space<vmem>>, vector<16x128xf32>,
    %94 = vector.extract_strided_slice %3 {offsets = [10, 0], sizes = [1, 128], strides = [1, 1]} : vector<16x128xf32> to vector<1x128xf32>
    %95 = vector.broadcast %94 : vector<1x128xf32> to vector<16x128xf32>
    %96 = arith.addf %2, %95 : vector<16x128xf32>
    %cst_36 = arith.constant 0.000000e+00 : f32
    %97 = vector.broadcast %cst_36 : f32 to vector<16x128xf32>
    %98 = arith.cmpf ogt, %96, %97 : vector<16x128xf32>
    %cst_37 = arith.constant 0.00999999977 : f32
    %99 = vector.broadcast %cst_37 : f32 to vector<16x128xf32>
    %100 = arith.mulf %99, %96 : vector<16x128xf32>
    %101 = arith.select %98, %96, %100 : vector<16x128xi1>, vector<16x128xf32>
    %c160 = arith.constant 160 : index
    %c0_38 = arith.constant 0 : index
    %102 = vector.load %arg8[%c160, %c0_38] : memref<256x128xf32, #tpu.memory_space<vmem>>, vector<16x128xf32>
    tpu.vector_store %arg8[%c160, %c0_38], %101 {strides = array<i32>} : memref<256x128xf32, #tpu.memory_space<vmem>>, vector<16x128xf32>,
    %103 = vector.extract_strided_slice %3 {offsets = [11, 0], sizes = [1, 128], strides = [1, 1]} : vector<16x128xf32> to vector<1x128xf32>
    %104 = vector.broadcast %103 : vector<1x128xf32> to vector<16x128xf32>
    %105 = arith.addf %2, %104 : vector<16x128xf32>
    %cst_39 = arith.constant 0.000000e+00 : f32
    %106 = vector.broadcast %cst_39 : f32 to vector<16x128xf32>
    %107 = arith.cmpf ogt, %105, %106 : vector<16x128xf32>
    %cst_40 = arith.constant 0.00999999977 : f32
    %108 = vector.broadcast %cst_40 : f32 to vector<16x128xf32>
    %109 = arith.mulf %108, %105 : vector<16x128xf32>
    %110 = arith.select %107, %105, %109 : vector<16x128xi1>, vector<16x128xf32>
    %c176 = arith.constant 176 : index
    %c0_41 = arith.constant 0 : index
    %111 = vector.load %arg8[%c176, %c0_41] : memref<256x128xf32, #tpu.memory_space<vmem>>, vector<16x128xf32>
    tpu.vector_store %arg8[%c176, %c0_41], %110 {strides = array<i32>} : memref<256x128xf32, #tpu.memory_space<vmem>>, vector<16x128xf32>,
    %112 = vector.extract_strided_slice %3 {offsets = [12, 0], sizes = [1, 128], strides = [1, 1]} : vector<16x128xf32> to vector<1x128xf32>
    %113 = vector.broadcast %112 : vector<1x128xf32> to vector<16x128xf32>
    %114 = arith.addf %2, %113 : vector<16x128xf32>
    %cst_42 = arith.constant 0.000000e+00 : f32
    %115 = vector.broadcast %cst_42 : f32 to vector<16x128xf32>
    %116 = arith.cmpf ogt, %114, %115 : vector<16x128xf32>
    %cst_43 = arith.constant 0.00999999977 : f32
    %117 = vector.broadcast %cst_43 : f32 to vector<16x128xf32>
    %118 = arith.mulf %117, %114 : vector<16x128xf32>
    %119 = arith.select %116, %114, %118 : vector<16x128xi1>, vector<16x128xf32>
    %c192 = arith.constant 192 : index
    %c0_44 = arith.constant 0 : index
    %120 = vector.load %arg8[%c192, %c0_44] : memref<256x128xf32, #tpu.memory_space<vmem>>, vector<16x128xf32>
    tpu.vector_store %arg8[%c192, %c0_44], %119 {strides = array<i32>} : memref<256x128xf32, #tpu.memory_space<vmem>>, vector<16x128xf32>,
    %121 = vector.extract_strided_slice %3 {offsets = [13, 0], sizes = [1, 128], strides = [1, 1]} : vector<16x128xf32> to vector<1x128xf32>
    %122 = vector.broadcast %121 : vector<1x128xf32> to vector<16x128xf32>
    %123 = arith.addf %2, %122 : vector<16x128xf32>
    %cst_45 = arith.constant 0.000000e+00 : f32
    %124 = vector.broadcast %cst_45 : f32 to vector<16x128xf32>
    %125 = arith.cmpf ogt, %123, %124 : vector<16x128xf32>
    %cst_46 = arith.constant 0.00999999977 : f32
    %126 = vector.broadcast %cst_46 : f32 to vector<16x128xf32>
    %127 = arith.mulf %126, %123 : vector<16x128xf32>
    %128 = arith.select %125, %123, %127 : vector<16x128xi1>, vector<16x128xf32>
    %c208 = arith.constant 208 : index
    %c0_47 = arith.constant 0 : index
    %129 = vector.load %arg8[%c208, %c0_47] : memref<256x128xf32, #tpu.memory_space<vmem>>, vector<16x128xf32>
    tpu.vector_store %arg8[%c208, %c0_47], %128 {strides = array<i32>} : memref<256x128xf32, #tpu.memory_space<vmem>>, vector<16x128xf32>,
    %130 = vector.extract_strided_slice %3 {offsets = [14, 0], sizes = [1, 128], strides = [1, 1]} : vector<16x128xf32> to vector<1x128xf32>
    %131 = vector.broadcast %130 : vector<1x128xf32> to vector<16x128xf32>
    %132 = arith.addf %2, %131 : vector<16x128xf32>
    %cst_48 = arith.constant 0.000000e+00 : f32
    %133 = vector.broadcast %cst_48 : f32 to vector<16x128xf32>
    %134 = arith.cmpf ogt, %132, %133 : vector<16x128xf32>
    %cst_49 = arith.constant 0.00999999977 : f32
    %135 = vector.broadcast %cst_49 : f32 to vector<16x128xf32>
    %136 = arith.mulf %135, %132 : vector<16x128xf32>
    %137 = arith.select %134, %132, %136 : vector<16x128xi1>, vector<16x128xf32>
    %c224 = arith.constant 224 : index
    %c0_50 = arith.constant 0 : index
    %138 = vector.load %arg8[%c224, %c0_50] : memref<256x128xf32, #tpu.memory_space<vmem>>, vector<16x128xf32>
    tpu.vector_store %arg8[%c224, %c0_50], %137 {strides = array<i32>} : memref<256x128xf32, #tpu.memory_space<vmem>>, vector<16x128xf32>,
    %139 = vector.extract_strided_slice %3 {offsets = [15, 0], sizes = [1, 128], strides = [1, 1]} : vector<16x128xf32> to vector<1x128xf32>
    %140 = vector.broadcast %139 : vector<1x128xf32> to vector<16x128xf32>
    %141 = arith.addf %2, %140 : vector<16x128xf32>
    %cst_51 = arith.constant 0.000000e+00 : f32
    %142 = vector.broadcast %cst_51 : f32 to vector<16x128xf32>
    %143 = arith.cmpf ogt, %141, %142 : vector<16x128xf32>
    %cst_52 = arith.constant 0.00999999977 : f32
    %144 = vector.broadcast %cst_52 : f32 to vector<16x128xf32>
    %145 = arith.mulf %144, %141 : vector<16x128xf32>
    %146 = arith.select %143, %141, %145 : vector<16x128xi1>, vector<16x128xf32>
    %c240 = arith.constant 240 : index
    %c0_53 = arith.constant 0 : index
    %147 = vector.load %arg8[%c240, %c0_53] : memref<256x128xf32, #tpu.memory_space<vmem>>, vector<16x128xf32>
    tpu.vector_store %arg8[%c240, %c0_53], %146 {strides = array<i32>} : memref<256x128xf32, #tpu.memory_space<vmem>>, vector<16x128xf32>,
    %c0_54 = arith.constant 0 : index
    %c0_55 = arith.constant 0 : index
    %148 = vector.load %arg8[%c0_54, %c0_55] : memref<256x128xf32, #tpu.memory_space<vmem>>, vector<256x128xf32>
    %c0_56 = arith.constant 0 : index
    %c0_57 = arith.constant 0 : index
    %149 = vector.load %arg4[%c0_56, %c0_57] : memref<128x16xf32, #tpu.memory_space<vmem>>, vector<128x16xf32>
    %cst_58 = arith.constant dense<0.000000e+00> : vector<256x16xf32>
    %150 = tpu.matmul %148, %149, %cst_58 {dimension_numbers = #tpu.dot_dimension_numbers<[1], [0], [0], [1], [0, 0, 1, 1], [], []>} : vector<256x128xf32>, vector<128x16xf32>, vector<256x16xf32> -> vector<256x16xf32>
    %c0_59 = arith.constant 0 : index
    %c0_60 = arith.constant 0 : index
    %151 = vector.load %arg5[%c0_59, %c0_60] : memref<1x16xf32, #tpu.memory_space<vmem>>, vector<1x16xf32>
    %152 = vector.broadcast %151 : vector<1x16xf32> to vector<256x16xf32>
    %153 = arith.addf %150, %152 : vector<256x16xf32>
    %cst_61 = arith.constant dense<0xFF800000> : vector<256xf32>
    %154 = vector.multi_reduction <maximumf>, %153, %cst_61 [1] : vector<256x16xf32> to vector<256xf32>
    %155 = vector.shape_cast %154 : vector<256xf32> to vector<256x1xf32>
    %156 = vector.broadcast %155 : vector<256x1xf32> to vector<256x16xf32>
    %157 = arith.subf %153, %156 : vector<256x16xf32>
    %158 = math.exp %157 : vector<256x16xf32>
    %cst_62 = arith.constant dense<0.000000e+00> : vector<256xf32>
    %159 = vector.multi_reduction <add>, %158, %cst_62 [1] : vector<256x16xf32> to vector<256xf32>
    %160 = vector.shape_cast %159 : vector<256xf32> to vector<256x1xf32>
    %161 = math.log %160 : vector<256x1xf32>
    %162 = arith.addf %155, %161 : vector<256x1xf32>
    %163 = vector.broadcast %162 : vector<256x1xf32> to vector<256x16xf32>
    %164 = arith.subf %153, %163 : vector<256x16xf32>
    %165 = tpu.iota {dimensions = array<i32: 1>} : vector<256x16xi32>
    %166 = vector.broadcast %155 : vector<256x1xf32> to vector<256x16xf32>
    %167 = arith.cmpf oeq, %153, %166 : vector<256x16xf32>
    %c15_i32 = arith.constant 15 : i32
    %168 = vector.broadcast %c15_i32 : i32 to vector<256x16xi32>
    %169 = arith.select %167, %165, %168 : vector<256x16xi1>, vector<256x16xi32>
    %cst_63 = arith.constant dense<2147483647> : vector<256xi32>
    %170 = vector.multi_reduction <minsi>, %169, %cst_63 [1] : vector<256x16xi32> to vector<256xi32>
    %171 = vector.shape_cast %170 : vector<256xi32> to vector<256x1xi32>
    %172 = vector.extract_strided_slice %164 {offsets = [0, 0], sizes = [16, 16], strides = [1, 1]} : vector<256x16xf32> to vector<16x16xf32>
    %173 = vector.extract_strided_slice %164 {offsets = [16, 0], sizes = [16, 16], strides = [1, 1]} : vector<256x16xf32> to vector<16x16xf32>
    %174 = vector.extract_strided_slice %164 {offsets = [32, 0], sizes = [16, 16], strides = [1, 1]} : vector<256x16xf32> to vector<16x16xf32>
    %175 = vector.extract_strided_slice %164 {offsets = [48, 0], sizes = [16, 16], strides = [1, 1]} : vector<256x16xf32> to vector<16x16xf32>
    %176 = vector.extract_strided_slice %164 {offsets = [64, 0], sizes = [16, 16], strides = [1, 1]} : vector<256x16xf32> to vector<16x16xf32>
    %177 = vector.extract_strided_slice %164 {offsets = [80, 0], sizes = [16, 16], strides = [1, 1]} : vector<256x16xf32> to vector<16x16xf32>
    %178 = vector.extract_strided_slice %164 {offsets = [96, 0], sizes = [16, 16], strides = [1, 1]} : vector<256x16xf32> to vector<16x16xf32>
    %179 = vector.extract_strided_slice %164 {offsets = [112, 0], sizes = [16, 16], strides = [1, 1]} : vector<256x16xf32> to vector<16x16xf32>
    %180 = vector.extract_strided_slice %164 {offsets = [128, 0], sizes = [16, 16], strides = [1, 1]} : vector<256x16xf32> to vector<16x16xf32>
    %181 = vector.extract_strided_slice %164 {offsets = [144, 0], sizes = [16, 16], strides = [1, 1]} : vector<256x16xf32> to vector<16x16xf32>
    %182 = vector.extract_strided_slice %164 {offsets = [160, 0], sizes = [16, 16], strides = [1, 1]} : vector<256x16xf32> to vector<16x16xf32>
    %183 = vector.extract_strided_slice %164 {offsets = [176, 0], sizes = [16, 16], strides = [1, 1]} : vector<256x16xf32> to vector<16x16xf32>
    %184 = vector.extract_strided_slice %164 {offsets = [192, 0], sizes = [16, 16], strides = [1, 1]} : vector<256x16xf32> to vector<16x16xf32>
    %185 = vector.extract_strided_slice %164 {offsets = [208, 0], sizes = [16, 16], strides = [1, 1]} : vector<256x16xf32> to vector<16x16xf32>
    %186 = vector.extract_strided_slice %164 {offsets = [224, 0], sizes = [16, 16], strides = [1, 1]} : vector<256x16xf32> to vector<16x16xf32>
    %187 = vector.extract_strided_slice %164 {offsets = [240, 0], sizes = [16, 16], strides = [1, 1]} : vector<256x16xf32> to vector<16x16xf32>
    %188 = tpu.concatenate %172, %173, %174, %175, %176, %177, %178, %179, %180, %181, %182, %183, %184, %185, %186, %187 in 1 : vector<16x16xf32>, vector<16x16xf32>, vector<16x16xf32>, vector<16x16xf32>, vector<16x16xf32>, vector<16x16xf32>, vector<16x16xf32>, vector<16x16xf32>, vector<16x16xf32>, vector<16x16xf32>, vector<16x16xf32>, vector<16x16xf32>, vector<16x16xf32>, vector<16x16xf32>, vector<16x16xf32>, vector<16x16xf32> -> vector<16x256xf32>
    %c0_64 = arith.constant 0 : index
    %c0_65 = arith.constant 0 : index
    %189 = vector.load %arg6[%c0_64, %c0_65] : memref<16x256xf32, #tpu.memory_space<vmem>>, vector<16x256xf32>
    tpu.vector_store %arg6[%c0_64, %c0_65], %188 {strides = array<i32>} : memref<16x256xf32, #tpu.memory_space<vmem>>, vector<16x256xf32>,
    %190 = vector.extract_strided_slice %171 {offsets = [0, 0], sizes = [16, 1], strides = [1, 1]} : vector<256x1xi32> to vector<16x1xi32>
    %191 = vector.extract_strided_slice %171 {offsets = [16, 0], sizes = [16, 1], strides = [1, 1]} : vector<256x1xi32> to vector<16x1xi32>
    %192 = vector.extract_strided_slice %171 {offsets = [32, 0], sizes = [16, 1], strides = [1, 1]} : vector<256x1xi32> to vector<16x1xi32>
    %193 = vector.extract_strided_slice %171 {offsets = [48, 0], sizes = [16, 1], strides = [1, 1]} : vector<256x1xi32> to vector<16x1xi32>
    %194 = vector.extract_strided_slice %171 {offsets = [64, 0], sizes = [16, 1], strides = [1, 1]} : vector<256x1xi32> to vector<16x1xi32>
    %195 = vector.extract_strided_slice %171 {offsets = [80, 0], sizes = [16, 1], strides = [1, 1]} : vector<256x1xi32> to vector<16x1xi32>
    %196 = vector.extract_strided_slice %171 {offsets = [96, 0], sizes = [16, 1], strides = [1, 1]} : vector<256x1xi32> to vector<16x1xi32>
    %197 = vector.extract_strided_slice %171 {offsets = [112, 0], sizes = [16, 1], strides = [1, 1]} : vector<256x1xi32> to vector<16x1xi32>
    %198 = vector.extract_strided_slice %171 {offsets = [128, 0], sizes = [16, 1], strides = [1, 1]} : vector<256x1xi32> to vector<16x1xi32>
    %199 = vector.extract_strided_slice %171 {offsets = [144, 0], sizes = [16, 1], strides = [1, 1]} : vector<256x1xi32> to vector<16x1xi32>
    %200 = vector.extract_strided_slice %171 {offsets = [160, 0], sizes = [16, 1], strides = [1, 1]} : vector<256x1xi32> to vector<16x1xi32>
    %201 = vector.extract_strided_slice %171 {offsets = [176, 0], sizes = [16, 1], strides = [1, 1]} : vector<256x1xi32> to vector<16x1xi32>
    %202 = vector.extract_strided_slice %171 {offsets = [192, 0], sizes = [16, 1], strides = [1, 1]} : vector<256x1xi32> to vector<16x1xi32>
    %203 = vector.extract_strided_slice %171 {offsets = [208, 0], sizes = [16, 1], strides = [1, 1]} : vector<256x1xi32> to vector<16x1xi32>
    %204 = vector.extract_strided_slice %171 {offsets = [224, 0], sizes = [16, 1], strides = [1, 1]} : vector<256x1xi32> to vector<16x1xi32>
    %205 = vector.extract_strided_slice %171 {offsets = [240, 0], sizes = [16, 1], strides = [1, 1]} : vector<256x1xi32> to vector<16x1xi32>
    %206 = tpu.concatenate %190, %191, %192, %193, %194, %195, %196, %197, %198, %199, %200, %201, %202, %203, %204, %205 in 1 : vector<16x1xi32>, vector<16x1xi32>, vector<16x1xi32>, vector<16x1xi32>, vector<16x1xi32>, vector<16x1xi32>, vector<16x1xi32>, vector<16x1xi32>, vector<16x1xi32>, vector<16x1xi32>, vector<16x1xi32>, vector<16x1xi32>, vector<16x1xi32>, vector<16x1xi32>, vector<16x1xi32>, vector<16x1xi32> -> vector<16x16xi32>
    %c0_66 = arith.constant 0 : index
    %c0_67 = arith.constant 0 : index
    %207 = vector.load %arg7[%c0_66, %c0_67] : memref<16x16xi32, #tpu.memory_space<vmem>>, vector<16x16xi32>
    tpu.vector_store %arg7[%c0_66, %c0_67], %206 {strides = array<i32>} : memref<16x16xi32, #tpu.memory_space<vmem>>, vector<16x16xi32>,
    return
  }
  func.func @transform_0(%arg0: i32) -> (i32, i32) {
    %c0_i32 = arith.constant 0 : i32
    %c0_i32_0 = arith.constant 0 : i32
    return %arg0, %c0_i32 : i32, i32
  }
  func.func @transform_1(%arg0: i32) -> (i32, i32) {
    %c0_i32 = arith.constant 0 : i32
    %c0_i32_0 = arith.constant 0 : i32
    %c0_i32_1 = arith.constant 0 : i32
    return %c0_i32, %c0_i32_0 : i32, i32
  }
  func.func @transform_2(%arg0: i32) -> (i32, i32) {
    %c0_i32 = arith.constant 0 : i32
    %c0_i32_0 = arith.constant 0 : i32
    %c0_i32_1 = arith.constant 0 : i32
    return %c0_i32, %c0_i32_0 : i32, i32
  }
  func.func @transform_3(%arg0: i32) -> (i32, i32) {
    %c0_i32 = arith.constant 0 : i32
    %c0_i32_0 = arith.constant 0 : i32
    %c0_i32_1 = arith.constant 0 : i32
    return %c0_i32, %c0_i32_0 : i32, i32
  }
  func.func @transform_4(%arg0: i32) -> (i32, i32) {
    %c0_i32 = arith.constant 0 : i32
    %c0_i32_0 = arith.constant 0 : i32
    %c0_i32_1 = arith.constant 0 : i32
    return %c0_i32, %c0_i32_0 : i32, i32
  }
  func.func @transform_5(%arg0: i32) -> (i32, i32) {
    %c0_i32 = arith.constant 0 : i32
    %c0_i32_0 = arith.constant 0 : i32
    return %arg0, %c0_i32 : i32, i32
  }
  func.func @transform_6(%arg0: i32) -> (i32, i32) {
    %c0_i32 = arith.constant 0 : i32
    %c0_i32_0 = arith.constant 0 : i32
    return %arg0, %c0_i32 : i32, i32
  }
}

</mosaic_0001>

<bundles_post_ra>
// kernel: tpu_custom_call.1
= control target key start
LH: loop header
LB: loop body
LE: loop exit
PB: predicated region body
PF: predicated region fallthrough
CT: control target
= control target key end

     0   :  { %12 = vsyncpa [#allocation4], 0  ;;  %s3702_s0 = inlined_call_operand.vmem [shape: f32[16,256], index: 0, kind: input, shape index: {}]   ;;  %s3703_s1 = inlined_call_operand.hbm [shape: f32[256,128], index: 1, kind: input, shape index: {}]   ;;  %s3704_s2 = inlined_call_operand.vmem [shape: f32[16,128], index: 2, kind: input, shape index: {}]   ;;  %s3705_s3 = inlined_call_operand.vmem [shape: f32[128,16], index: 3, kind: input, shape index: {}]   ;;  %s3706_s4 = inlined_call_operand.vmem [shape: f32[1,16], index: 4, kind: input, shape index: {}]   ;;  %s3707_s5 = inlined_call_operand.hbm [shape: f32[16,256], index: 5, kind: output, shape index: {0}]   ;;  %s3708_s6 = inlined_call_operand.hbm [shape: s32[16,16], index: 6, kind: output, shape index: {1}]  }
   0x1   :  { %13 = vsyncpa [#allocation5], 0 }
   0x2   :  { %14 = vsyncpa [#allocation8], 0  ;;  %s2308_s21 = smov [#allocation3]   ;;  %s2236_s25 = scalar_lea.hbm %s3703_s1, 4096 }
   0x3   :  { %s22_s22 = sshll.u32 %s2308_s21, 4  ;;  %p2237_p0 = scmp.ne.s32.totalorder %s3703_s1, %s2236_s25  ;;  %s23_s22 = int_to_ptr.vmem [resolvable:$true] %s22_s22 }
   0x4   :  { %p2240_p1 = scmp.lt.u32.totalorder %s2236_s25, %s3703_s1 }
   0x6   :  { %p2242_p2 = pnand %p2240_p1, %p2237_p0 }
   0x8   :  { %2245 = shalt.err (!%p2242_p2)
}
   0x9   :  { %s2246_s30 = scalar_lea.vmem %s23_s22, 4096  ;;  %p2251_p4 = scmp.lt.s32.totalorder %s23_s22, %s23_s22 }
   0xa   :  { %p2247_p3 = scmp.ne.s32.totalorder %s23_s22, %s2246_s30  ;;  %p2252_p5 = scmp.lt.s32.totalorder %s2246_s30, %s2246_s30 }
   0xc   :  { %p2253_p6 = por %p2252_p5, %p2251_p4 }
   0xe   :  { %p2254_p7 = pnand %p2253_p6, %p2247_p3 }
  0x10   :  { %2257 = shalt.err (!%p2254_p7)
}
  0x11   :  { %s2309_s7 = smov 128   ;;  %s2310_s8 = smov 8  }
  0x12   :  { %28 = dma.hbm_to_vmem [thread:$0]  %s3703_s1, 4096, %s23_s22, [#allocation4], %s2309_s7, %s2309_s7, %s2310_s8  }
  0x13   :  { %2302 = dma.done.wait [#allocation4], 4096  }
  0x14   :  { %2303 = vsyncadd [#allocation4], 4294963200  ;;  %v58_v0 = vld [vmem:[#allocation3 + $0x80] sm:$0xff]  ;;  %v59_v1 = vld [vmem:[#allocation3 + $0x88] sm:$0xff]  ;;  %s2312_s30 = smov 16   ;;  %s2313_s9 = smov 80  }
  0x15   :  { %v42_v2 = vld [vmem:[#allocation3] sm:$0xff]  ;;  %v2015_v3 = vpack.c.bf16 %v59_v1, %v58_v0  ;;  %v43_v4 = vld [vmem:[#allocation3 + $0x8] sm:$0xff]  ;;  %v60_v5 = vld [vmem:[#allocation3 + $0x90] sm:$0xff]  ;;  %s2314_s10 = smov 32   ;;  %s2315_s1 = smov 96  }
  0x16   :  { %v61_v6 = vld [vmem:[#allocation3 + $0x98] sm:$0xff]  ;;  %v2017_v7 = vpack.c.bf16 %v43_v4, %v42_v2  ;;  %v44_v9 = vld [vmem:[#allocation3 + $0x10] sm:$0xff]  ;;  %v62_v11 = vld [vmem:[#allocation3 + $0xa0] sm:$0xff]  ;;  %s2316_s11 = smov 48   ;;  %s2317_s12 = smov 112  }
  0x17   :  { %v2019_v8 = vpack.c.bf16 %v61_v6, %v60_v5  ;;  %v45_v10 = vld [vmem:[#allocation3 + $0x18] sm:$0xff]  ;;  %2016 = vmatprep.subr.bf16.mxu0 %v2015_v3  ;;  %v63_v12 = vld [vmem:[#allocation3 + $0xa8] sm:$0xff]  ;;  %v46_v15 = vld [vmem:[#allocation3 + $0x20] sm:$0xff]  ;;  %s2318_s13 = smov [#allocation7]  }
  0x18   :  { %2018 = vmatpush3.bf16.msra.mxu0 %v2017_v7  ;;  %v2021_v13 = vpack.c.bf16 %v45_v10, %v44_v9  ;;  %v2023_v14 = vpack.c.bf16 %v63_v12, %v62_v11  ;;  %v47_v16 = vld [vmem:[#allocation3 + $0x28] sm:$0xff]  ;;  %v64_v17 = vld [vmem:[#allocation3 + $0xb0] sm:$0xff]  ;;  %v65_v18 = vld [vmem:[#allocation3 + $0xb8] sm:$0xff]  ;;  %v151_v12 = vlaneseq  ;;  %s1832_s14 = sshll.u32 %s2318_s13, 4  ;;  %s1833_s14 = int_to_ptr.vmem [resolvable:$true] %s1832_s14 }
  0x19   :  { %2020 = vmatprep.subr.bf16.mxu0 %v2019_v8  ;;  %v2025_v19 = vpack.c.bf16 %v47_v16, %v46_v15  ;;  %v2027_v20 = vpack.c.bf16 %v65_v18, %v64_v17  ;;  %v48_v21 = vld [vmem:[#allocation3 + $0x30] sm:$0xff]  ;;  %v49_v22 = vld [vmem:[#allocation3 + $0x38] sm:$0xff]  ;;  %v66_v23 = vld [vmem:[#allocation3 + $0xc0] sm:$0xff]  ;;  %s2258_s15 = scalar_lea.vmem %s1833_s14, 256  ;;  %p2263_p9 = scmp.lt.s32.totalorder %s1833_s14, %s1833_s14 }
  0x1a   :  { %v67_v24 = vld [vmem:[#allocation3 + $0xc8] sm:$0xff]  ;;  %v50_v26 = vld [vmem:[#allocation3 + $0x40] sm:$0xff]  ;;  %v2029_v27 = vpack.c.bf16 %v49_v22, %v48_v21  ;;  %v409_v30 = vld [vmem:[%s3705_s3 + $0x10] sm:$0xff]  ;;  %p2259_p8 = scmp.ne.s32.totalorder %s1833_s14, %s2258_s15  ;;  %p2264_p10 = scmp.lt.s32.totalorder %s2258_s15, %s2258_s15 }
  0x1b   :  { %v39_v25 = vld [vmem:[%s3702_s0 + $0x8] sm:$0xff]  ;;  %v407_v28 = vld [vmem:[%s3705_s3] sm:$0xff]  ;;  %v2031_v31 = vpack.c.bf16 %v67_v24, %v66_v23  ;;  %v68_v33 = vld [vmem:[#allocation3 + $0xd0] sm:$0xff] }
  0x1c   :  { %2022 = vmatpush3.bf16.msra.mxu0 %v2021_v13  ;;  %138 = vmatprep.mubr.f32.mxu0 %v39_v25  ;;  %v408_v29 = vld [vmem:[%s3705_s3 + $0x8] sm:$0xff]  ;;  %v410_v35 = vld [vmem:[%s3705_s3 + $0x18] sm:$0xff]  ;;  %v411_v38 = vld [vmem:[%s3705_s3 + $0x20] sm:$0xff]  ;;  %v2432_v13 = vshrl.u32 %v151_v12, 7  ;;  %p2265_p11 = por %p2264_p10, %p2263_p9 }
  0x1d   :  { %2024 = vmatprep.subr.bf16.mxu0 %v2023_v14  ;;  %v51_v32 = vld [vmem:[#allocation3 + $0x48] sm:$0xff]  ;;  %v2047_v34 = vpack.c.bf16 %v408_v29, %v407_v28  ;;  %v69_v36 = vld [vmem:[#allocation3 + $0xd8] sm:$0xff]  ;;  %v2051_v37 = vpack.c.bf16 %v410_v35, %v409_v30  ;;  %v52_v42 = vld [vmem:[#allocation3 + $0x50] sm:$0xff] }
  0x1e   :  { %v412_v39 = vld [vmem:[%s3705_s3 + $0x28] sm:$0xff]  ;;  %v2033_v40 = vpack.c.bf16 %v51_v32, %v50_v26  ;;  %v2035_v41 = vpack.c.bf16 %v69_v36, %v68_v33  ;;  %v53_v43 = vld [vmem:[#allocation3 + $0x58] sm:$0xff]  ;;  %v70_v44 = vld [vmem:[#allocation3 + $0xe0] sm:$0xff]  ;;  %v153_v14 = vsub.s32 0, %v2432_v13  ;;  %v209_v15 = vsub.s32 4, %v2432_v13  ;;  %p2266_p12 = pnand %p2265_p11, %p2259_p8 }
  0x1f   :  { %2079 = vmatprep.subr.bf16.mxu1 %v2047_v34  ;;  %v2055_v45 = vpack.c.bf16 %v412_v39, %v411_v38  ;;  %v71_v46 = vld [vmem:[#allocation3 + $0xe8] sm:$0xff]  ;;  %v413_v47 = vld [vmem:[%s3705_s3 + $0x30] sm:$0xff]  ;;  %v414_v48 = vld [vmem:[%s3705_s3 + $0x38] sm:$0xff]  ;;  %v2037_v49 = vpack.c.bf16 %v53_v43, %v52_v42  ;;  %v167_v16 = vsub.s32 1, %v2432_v13  ;;  %v223_v17 = vsub.s32 5, %v2432_v13 }
  0x20   :  { %2026 = vmatpush3.bf16.msra.mxu0 %v2025_v19  ;;  %2087 = vmatpush3.bf16.msra.mxu1 %v2047_v34  ;;  %v2039_v50 = vpack.c.bf16 %v71_v46, %v70_v44  ;;  %v54_v51 = vld [vmem:[#allocation3 + $0x60] sm:$0xff]  ;;  %v55_v52 = vld [vmem:[#allocation3 + $0x68] sm:$0xff]  ;;  %v72_v53 = vld [vmem:[#allocation3 + $0xf0] sm:$0xff]  ;;  %v2059_v54 = vpack.c.bf16 %v414_v48, %v413_v47  ;;  %v181_v19 = vsub.s32 2, %v2432_v13  ;;  %v195_v21 = vsub.s32 3, %v2432_v13 }
  0x21   :  { %2028 = vmatprep.subr.bf16.mxu0 %v2027_v20  ;;  %2080 = vmatprep.subr.bf16.mxu1 %v2051_v37  ;;  %v73_v55 = vld [vmem:[#allocation3 + $0xf8] sm:$0xff]  ;;  %v415_v56 = vld [vmem:[%s3705_s3 + $0x40] sm:$0xff]  ;;  %v416_v57 = vld [vmem:[%s3705_s3 + $0x48] sm:$0xff]  ;;  %v2041_v58 = vpack.c.bf16 %v55_v52, %v54_v51  ;;  %v237_v20 = vsub.s32 6, %v2432_v13  ;;  %v251_v22 = vsub.s32 7, %v2432_v13 }
  0x22   :  { %v2043_v59 = vpack.c.bf16 %v73_v55, %v72_v53  ;;  %v56_v60 = vld [vmem:[#allocation3 + $0x70] sm:$0xff]  ;;  %v57_v61 = vld [vmem:[#allocation3 + $0x78] sm:$0xff]  ;;  %v2063_v62 = vpack.c.bf16 %v416_v57, %v415_v56  ;;  %v38_v0 = vld [vmem:[%s3702_s0] sm:$0xff] }
  0x23   :  { %v2045_v63 = vpack.c.bf16 %v57_v61, %v56_v60  ;;  %v41_v1 = vld [vmem:[%s3702_s0 + $0x18] sm:$0xff]  ;;  %v40_v2 = vld [vmem:[%s3702_s0 + $0x10] sm:$0xff]  ;;  %v419_v6 = vld [vmem:[%s3705_s3 + $0x60] sm:$0xff] }
  0x24   :  { %2030 = vmatpush3.bf16.msra.mxu0 %v2029_v27  ;;  %2088 = vmatpush3.bf16.msra.mxu1 %v2051_v37  ;;  %v417_v3 = vld [vmem:[%s3705_s3 + $0x50] sm:$0xff]  ;;  %v418_v4 = vld [vmem:[%s3705_s3 + $0x58] sm:$0xff]  ;;  %v420_v7 = vld [vmem:[%s3705_s3 + $0x68] sm:$0xff] }
  0x25   :  { %2032 = vmatprep.subr.bf16.mxu0 %v2031_v31  ;;  %2081 = vmatprep.subr.bf16.mxu1 %v2055_v45  ;;  %v2067_v5 = vpack.c.bf16 %v418_v4, %v417_v3  ;;  %v2071_v8 = vpack.c.bf16 %v420_v7, %v419_v6  ;;  %v421_v9 = vld [vmem:[%s3705_s3 + $0x70] sm:$0xff]  ;;  %v422_v10 = vld [vmem:[%s3705_s3 + $0x78] sm:$0xff]  ;;  %v149_v18 = vld [vmem:[%s3704_s2] sm:$0xff] }
  0x26   :  { %v2075_v11 = vpack.c.bf16 %v422_v10, %v421_v9  ;;  %v154_v24 = vrot.slane %v149_v18, %v153_v14  ;;  %v210_v25 = vrot.slane %v149_v18, %v209_v15  ;;  %v168_v26 = vrot.slane %v149_v18, %v167_v16  ;;  %v2452_v28 = vld [vmem:[%s3704_s2 + $0x8] sm:$0xff] }
  0x27   :  { %v224_v27 = vrot.slane %v149_v18, %v223_v17  ;;  %v182_v30 = vrot.slane %v149_v18, %v181_v19  ;;  %v238_v31 = vrot.slane %v149_v18, %v237_v20  ;;  %v2460_v32 = vrot.slane %v149_v18, %v195_v21 }
  0x28   :  { %2034 = vmatpush3.bf16.msra.mxu0 %v2033_v40  ;;  %2089 = vmatpush3.bf16.msra.mxu1 %v2055_v45  ;;  %v2464_v33 = vrot.slane %v149_v18, %v251_v22  ;;  %v2469_v35 = vrot.slane %v2452_v28, %v153_v14  ;;  %v2472_v36 = vrot.slane %v2452_v28, %v167_v16 }
  0x29   :  { %2036 = vmatprep.subr.bf16.mxu0 %v2035_v41  ;;  %2082 = vmatprep.subr.bf16.mxu1 %v2059_v54 }
  0x2c   :  { %2038 = vmatpush3.bf16.msra.mxu0 %v2037_v49  ;;  %2090 = vmatpush3.bf16.msra.mxu1 %v2059_v54 }
  0x2d   :  { %2040 = vmatprep.subr.bf16.mxu0 %v2039_v50  ;;  %2083 = vmatprep.subr.bf16.mxu1 %v2063_v62 }
  0x30   :  { %2042 = vmatpush3.bf16.msra.mxu0 %v2041_v58  ;;  %2091 = vmatpush3.bf16.msra.mxu1 %v2063_v62 }
  0x31   :  { %2044 = vmatprep.subr.bf16.mxu0 %v2043_v59  ;;  %2084 = vmatprep.subr.bf16.mxu1 %v2067_v5 }
  0x34   :  { %2046 = vmatpush3.bf16.msra.mxu0 %v2045_v63  ;;  %2092 = vmatpush3.bf16.msra.mxu1 %v2067_v5 }
  0x35   :  { %2048 = vmatprep.subr.bf16.mxu0 %v2047_v34  ;;  %2085 = vmatprep.subr.bf16.mxu1 %v2071_v8 }
  0x37   :  { %139 = vmatmul.mubr.f32.vlgmr.msra.gmra.mrb[0].mxu0 %v38_v0 }
  0x38   :  { %143 = vmatprep.mubr.f32.mxu0 %v41_v1  ;;  %2050 = vmatpush3.bf16.msra.mxu0 %v2047_v34 }
  0x39   :  { %2052 = vmatprep.subr.bf16.mxu0 %v2051_v37  ;;  %2093 = vmatpush3.bf16.msra.mxu1 %v2071_v8 }
  0x3a   :  { %2086 = vmatprep.subr.bf16.mxu1 %v2075_v11 }
  0x3b   :  { %144 = vmatmul.mubr.f32.gmra.mrb[2].mxu0 %v40_v2 }
  0x3c   :  { %2054 = vmatpush3.bf16.msra.mxu0 %v2051_v37 }
  0x3d   :  { %2056 = vmatprep.subr.bf16.mxu0 %v2055_v45  ;;  %2094 = vmatpush3.bf16.msra.mxu1 %v2075_v11 }
  0x40   :  { %2058 = vmatpush3.bf16.msra.mxu0 %v2055_v45 }
  0x41   :  { %2060 = vmatprep.subr.bf16.mxu0 %v2059_v54 }
  0x44   :  { %2062 = vmatpush3.bf16.msra.mxu0 %v2059_v54 }
  0x45   :  { %2064 = vmatprep.subr.bf16.mxu0 %v2063_v62 }
  0x48   :  { %2066 = vmatpush3.bf16.msra.mxu0 %v2063_v62 }
  0x49   :  { %2068 = vmatprep.subr.bf16.mxu0 %v2067_v5 }
  0x4c   :  { %2070 = vmatpush3.bf16.msra.mxu0 %v2067_v5 }
  0x4d   :  { %2072 = vmatprep.subr.bf16.mxu0 %v2071_v8 }
  0x50   :  { %2074 = vmatpush3.bf16.msra.mxu0 %v2071_v8 }
  0x51   :  { %2076 = vmatprep.subr.bf16.mxu0 %v2075_v11 }
  0x54   :  { %2078 = vmatpush3.bf16.msra.mxu0 %v2075_v11 }
 0x10a   :  { %v1881_v23 = vpop.f32.mrb[0].mxu0 }
 0x10b   :  { %v1882_v29 = vpop.f32.mrb[1].mxu0 }
 0x10c   :  { %v2466_v34 = vadd.f32 %v1882_v29, %v1881_v23  ;;  %v294_v29 = vrot.slane %v2452_v28, %v181_v19  ;;  %v308_v19 = vrot.slane %v2452_v28, %v195_v21  ;;  %v322_v21 = vrot.slane %v2452_v28, %v209_v15 }
 0x10e   :  { %v1884_v37 = vpop.f32.mrb[2].mxu0  ;;  %v155_v38 = vadd.f32 %v2466_v34, %v154_v24  ;;  %v211_v39 = vadd.f32 %v2466_v34, %v210_v25  ;;  %v169_v40 = vadd.f32 %v2466_v34, %v168_v26  ;;  %v225_v41 = vadd.f32 %v2466_v34, %v224_v27 }
 0x10f   :  { %v1885_v42 = vpop.f32.mrb[3].mxu0  ;;  %v183_v43 = vadd.f32 %v2466_v34, %v182_v30  ;;  %v239_v44 = vadd.f32 %v2466_v34, %v238_v31  ;;  %v2482_v45 = vadd.f32 %v2466_v34, %v2460_v32  ;;  %v2486_v46 = vadd.f32 %v2466_v34, %v2464_v33 }
 0x110   :  { %v2488_v47 = vadd.f32 %v1885_v42, %v1884_v37  ;;  %vm157_vm0 = vcmp.gt.f32.partialorder %v155_v38, 0.0  ;;  %v159_v48 = vmul.f32 0.01, %v155_v38  ;;  %vm213_vm1 = vcmp.gt.f32.partialorder %v211_v39, 0.0 }
 0x111   :  { %v215_v49 = vmul.f32 0.01, %v211_v39  ;;  %vm171_vm2 = vcmp.gt.f32.partialorder %v169_v40, 0.0  ;;  %v173_v50 = vmul.f32 0.01, %v169_v40  ;;  %vm227_vm3 = vcmp.gt.f32.partialorder %v225_v41, 0.0 }
 0x112   :  { %v161_v51 = vsel %vm157_vm0, %v155_v38, %v159_v48  ;;  %v156_v52 = vadd.f32 %v2488_v47, %v154_v24  ;;  %v212_v53 = vadd.f32 %v2488_v47, %v210_v25  ;;  %v229_v54 = vmul.f32 0.01, %v225_v41 }
 0x113   :  { %1967 = vmatprep.mubr.f32.mxu0 %v161_v51  ;;  %v217_v55 = vsel %vm213_vm1, %v211_v39, %v215_v49  ;;  %v175_v56 = vsel %vm171_vm2, %v169_v40, %v173_v50  ;;  %v170_v57 = vadd.f32 %v2488_v47, %v168_v26  ;;  %v226_v58 = vadd.f32 %v2488_v47, %v224_v27 }
 0x114   :  { %1979 = vmatprep.mubr.f32.mxu1 %v217_v55  ;;  %vm158_vm4 = vcmp.gt.f32.partialorder %v156_v52, 0.0  ;;  %v160_v59 = vmul.f32 0.01, %v156_v52  ;;  %vm214_vm5 = vcmp.gt.f32.partialorder %v212_v53, 0.0  ;;  %v216_v60 = vmul.f32 0.01, %v212_v53 }
 0x115   :  { %v231_v61 = vsel %vm227_vm3, %v225_v41, %v229_v54  ;;  %vm172_vm6 = vcmp.gt.f32.partialorder %v170_v57, 0.0  ;;  %v174_v62 = vmul.f32 0.01, %v170_v57  ;;  %vm228_vm7 = vcmp.gt.f32.partialorder %v226_v58, 0.0 }
 0x116   :  { %v162_v63 = vsel %vm158_vm4, %v156_v52, %v160_v59  ;;  %v218_v0 = vsel %vm214_vm5, %v212_v53, %v216_v60  ;;  %v230_v1 = vmul.f32 0.01, %v226_v58  ;;  %vm185_vm8 = vcmp.gt.f32.partialorder %v183_v43, 0.0 }
 0x117   :  { %1968 = vmatmul.mubr.f32.vlgmr.msra.gmra.mrb[4].mxu0 %v162_v63  ;;  %1980 = vmatmul.mubr.f32.vlgmr.msra.gmra.mrb[0].mxu1 %v218_v0  ;;  %v176_v2 = vsel %vm172_vm6, %v170_v57, %v174_v62  ;;  %v187_v3 = vmul.f32 0.01, %v183_v43  ;;  %vm241_vm9 = vcmp.gt.f32.partialorder %v239_v44, 0.0  ;;  %v243_v4 = vmul.f32 0.01, %v239_v44 }
 0x118   :  { %1970 = vmatprep.mubr.f32.mxu0 %v175_v56  ;;  %1982 = vmatprep.mubr.f32.mxu1 %v231_v61  ;;  %v232_v5 = vsel %vm228_vm7, %v226_v58, %v230_v1  ;;  %v184_v6 = vadd.f32 %v2488_v47, %v182_v30  ;;  %v240_v7 = vadd.f32 %v2488_v47, %v238_v31  ;;  %vm199_vm10 = vcmp.gt.f32.partialorder %v2482_v45, 0.0 }
 0x119   :  { %v189_v8 = vsel %vm185_vm8, %v183_v43, %v187_v3  ;;  %v245_v9 = vsel %vm241_vm9, %v239_v44, %v243_v4  ;;  %v201_v10 = vmul.f32 0.01, %v2482_v45  ;;  %vm255_vm13 = vcmp.gt.f32.partialorder %v2486_v46, 0.0 }
 0x11a   :  { %vm186_vm11 = vcmp.gt.f32.partialorder %v184_v6, 0.0  ;;  %v188_v11 = vmul.f32 0.01, %v184_v6  ;;  %vm242_vm12 = vcmp.gt.f32.partialorder %v240_v7, 0.0  ;;  %v244_v14 = vmul.f32 0.01, %v240_v7 }
 0x11b   :  { %1971 = vmatmul.mubr.f32.gmra.mrb[6].mxu0 %v176_v2  ;;  %1983 = vmatmul.mubr.f32.gmra.mrb[2].mxu1 %v232_v5  ;;  %v257_v16 = vmul.f32 0.01, %v2486_v46  ;;  %v198_v18 = vadd.f32 %v2488_v47, %v2460_v32  ;;  %v254_v23 = vadd.f32 %v2488_v47, %v2464_v33  ;;  %v267_v24 = vadd.f32 %v2466_v34, %v2469_v35 }
 0x11c   :  { %1973 = vmatprep.mubr.f32.mxu0 %v189_v8  ;;  %1985 = vmatprep.mubr.f32.mxu1 %v245_v9  ;;  %v190_v25 = vsel %vm186_vm11, %v184_v6, %v188_v11  ;;  %v246_v26 = vsel %vm242_vm12, %v240_v7, %v244_v14  ;;  %v203_v27 = vsel %vm199_vm10, %v2482_v45, %v201_v10 }
 0x11d   :  { %v259_v30 = vsel %vm255_vm13, %v2486_v46, %v257_v16  ;;  %v202_v31 = vmul.f32 0.01, %v198_v18  ;;  %v258_v32 = vmul.f32 0.01, %v254_v23  ;;  %v268_v33 = vadd.f32 %v2488_v47, %v2469_v35 }
 0x11e   :  { %vm200_vm14 = vcmp.gt.f32.partialorder %v198_v18, 0.0  ;;  %vm256_vm15 = vcmp.gt.f32.partialorder %v254_v23, 0.0  ;;  %v271_v37 = vmul.f32 0.01, %v267_v24  ;;  %v281_v38 = vadd.f32 %v2466_v34, %v2472_v36 }
 0x11f   :  { %1974 = vmatmul.mubr.f32.gmra.mrb[8].mxu0 %v190_v25  ;;  %1986 = vmatmul.mubr.f32.gmra.mrb[4].mxu1 %v246_v26  ;;  %vm269_vm0 = vcmp.gt.f32.partialorder %v267_v24, 0.0  ;;  %v204_v39 = vsel %vm200_vm14, %v198_v18, %v202_v31  ;;  %v260_v40 = vsel %vm256_vm15, %v254_v23, %v258_v32  ;;  %v272_v41 = vmul.f32 0.01, %v268_v33 }
 0x120   :  { %1976 = vmatprep.mubr.f32.mxu0 %v203_v27  ;;  %1988 = vmatprep.mubr.f32.mxu1 %v259_v30  ;;  %v282_v35 = vadd.f32 %v2488_v47, %v2472_v36  ;;  %v273_v42 = vsel %vm269_vm0, %v267_v24, %v271_v37  ;;  %vm270_vm1 = vcmp.gt.f32.partialorder %v268_v33, 0.0  ;;  %v285_v43 = vmul.f32 0.01, %v281_v38 }
 0x121   :  { %v295_v44 = vadd.f32 %v2466_v34, %v294_v29  ;;  %vm283_vm2 = vcmp.gt.f32.partialorder %v281_v38, 0.0  ;;  %v274_v45 = vsel %vm270_vm1, %v268_v33, %v272_v41  ;;  %v296_v48 = vadd.f32 %v2488_v47, %v294_v29 }
 0x122   :  { %v286_v46 = vmul.f32 0.01, %v282_v35  ;;  %v287_v49 = vsel %vm283_vm2, %v281_v38, %v285_v43  ;;  %vm284_vm3 = vcmp.gt.f32.partialorder %v282_v35, 0.0  ;;  %v309_v50 = vadd.f32 %v2466_v34, %v308_v19 }
 0x123   :  { %1977 = vmatmul.mubr.f32.gmra.mrb[10].mxu0 %v204_v39  ;;  %1989 = vmatmul.mubr.f32.gmra.mrb[6].mxu1 %v260_v40  ;;  %v299_v36 = vmul.f32 0.01, %v295_v44  ;;  %vm297_vm4 = vcmp.gt.f32.partialorder %v295_v44, 0.0  ;;  %v300_v52 = vmul.f32 0.01, %v296_v48  ;;  %v310_v53 = vadd.f32 %v2488_v47, %v308_v19 }
 0x124   :  { %1991 = vmatprep.mubr.f32.mxu1 %v273_v42  ;;  %v288_v51 = vsel %vm284_vm3, %v282_v35, %v286_v46  ;;  %v336_v54 = vrot.slane %v2452_v28, %v223_v17  ;;  %vm298_vm5 = vcmp.gt.f32.partialorder %v296_v48, 0.0  ;;  %v313_v15 = vmul.f32 0.01, %v309_v50 }
 0x125   :  { %v301_v55 = vsel %vm297_vm4, %v295_v44, %v299_v36  ;;  %v323_v56 = vadd.f32 %v2466_v34, %v322_v21  ;;  %vm311_vm6 = vcmp.gt.f32.partialorder %v309_v50, 0.0  ;;  %v302_v57 = vsel %vm298_vm5, %v296_v48, %v300_v52 }
 0x126   :  { %v314_v58 = vmul.f32 0.01, %v310_v53  ;;  %v324_v59 = vadd.f32 %v2488_v47, %v322_v21  ;;  %v350_v60 = vrot.slane %v2452_v28, %v237_v20  ;;  %v315_v61 = vsel %vm311_vm6, %v309_v50, %v313_v15 }
 0x127   :  { %1992 = vmatmul.mubr.f32.gmra.mrb[8].mxu1 %v274_v45  ;;  %vm312_vm7 = vcmp.gt.f32.partialorder %v310_v53, 0.0  ;;  %v327_v17 = vmul.f32 0.01, %v323_v56  ;;  %v337_v62 = vadd.f32 %v2466_v34, %v336_v54  ;;  %vm325_vm8 = vcmp.gt.f32.partialorder %v323_v56, 0.0 }
 0x128   :  { %1994 = vmatprep.mubr.f32.mxu1 %v287_v49  ;;  %v316_v63 = vsel %vm312_vm7, %v310_v53, %v314_v58  ;;  %v328_v0 = vmul.f32 0.01, %v324_v59  ;;  %v338_v1 = vadd.f32 %v2488_v47, %v336_v54  ;;  %v364_v2 = vrot.slane %v2452_v28, %v251_v22 }
 0x129   :  { %v329_v3 = vsel %vm325_vm8, %v323_v56, %v327_v17  ;;  %vm326_vm9 = vcmp.gt.f32.partialorder %v324_v59, 0.0  ;;  %v341_v20 = vmul.f32 0.01, %v337_v62  ;;  %v351_v4 = vadd.f32 %v2466_v34, %v350_v60 }
 0x12a   :  { %vm339_vm10 = vcmp.gt.f32.partialorder %v337_v62, 0.0  ;;  %v330_v5 = vsel %vm326_vm9, %v324_v59, %v328_v0  ;;  %v342_v6 = vmul.f32 0.01, %v338_v1  ;;  %v352_v7 = vadd.f32 %v2488_v47, %v350_v60 }
 0x12b   :  { %1995 = vmatmul.mubr.f32.gmra.mrb[10].mxu1 %v288_v51  ;;  %v343_v8 = vsel %vm339_vm10, %v337_v62, %v341_v20  ;;  %vm340_vm11 = vcmp.gt.f32.partialorder %v338_v1, 0.0  ;;  %v355_v9 = vmul.f32 0.01, %v351_v4  ;;  %v365_v13 = vadd.f32 %v2466_v34, %v364_v2  ;;  %v2549_v34 = vld [vmem:[%s3706_s4] ss:$0 sm:$0xff]  ;;  %s2311_s4 = smov 64  }
 0x12c   :  { %1997 = vmatprep.mubr.f32.mxu1 %v301_v55  ;;  %vm353_vm12 = vcmp.gt.f32.partialorder %v351_v4, 0.0  ;;  %v344_v22 = vsel %vm340_vm11, %v338_v1, %v342_v6  ;;  %v356_v28 = vmul.f32 0.01, %v352_v7  ;;  %v366_v10 = vadd.f32 %v2488_v47, %v364_v2 }
 0x12d   :  { %v357_v11 = vsel %vm353_vm12, %v351_v4, %v355_v9  ;;  %vm354_vm13 = vcmp.gt.f32.partialorder %v352_v7, 0.0  ;;  %v369_v14 = vmul.f32 0.01, %v365_v13  ;;  %vm367_vm14 = vcmp.gt.f32.partialorder %v365_v13, 0.0 }
 0x12e   :  { %v358_v16 = vsel %vm354_vm13, %v352_v7, %v356_v28  ;;  %v370_v18 = vmul.f32 0.01, %v366_v10  ;;  %vm368_vm15 = vcmp.gt.f32.partialorder %v366_v10, 0.0  ;;  %vm655_vm0 = vcmask 130048  }
 0x12f   :  { %1998 = vmatmul.mubr.f32.gmra.mrb[12].mxu1 %v302_v57  ;;  %v371_v23 = vsel %vm367_vm14, %v365_v13, %v369_v14 }
 0x130   :  { %2000 = vmatprep.mubr.f32.mxu1 %v315_v61  ;;  %v372_v24 = vsel %vm368_vm15, %v366_v10, %v370_v18 }
 0x133   :  { %2001 = vmatmul.mubr.f32.gmra.mrb[14].mxu1 %v316_v63 }
 0x134   :  { %2003 = vmatprep.mubr.f32.mxu1 %v329_v3 }
 0x137   :  { %2004 = vmatmul.mubr.f32.gmra.mrb[16].mxu1 %v330_v5 }
 0x138   :  { %2006 = vmatprep.mubr.f32.mxu1 %v343_v8 }
 0x13b   :  { %2007 = vmatmul.mubr.f32.gmra.mrb[18].mxu1 %v344_v22 }
 0x13c   :  { %2009 = vmatprep.mubr.f32.mxu1 %v357_v11 }
 0x13f   :  { %2010 = vmatmul.mubr.f32.gmra.mrb[20].mxu1 %v358_v16 }
 0x140   :  { %2012 = vmatprep.mubr.f32.mxu1 %v371_v23 }
 0x143   :  { %2013 = vmatmul.mubr.f32.gmra.mrb[22].mxu1 %v372_v24 }
 0x1ea   :  { %v1969_v47 = vpop.f32.mrb[4].mxu0  ;;  %v1981_v25 = vpop.f32.mrb[0].mxu1 }
 0x1eb   :  { %v2552_v26 = vadd.f32 %v1969_v47, %v2549_v34  ;;  %v2555_v27 = vadd.f32 %v1981_v25, %v2549_v34  ;;  %v496_v29 = vpop.f32.mrb[5].mxu0  ;;  %v536_v30 = vpop.f32.mrb[1].mxu1 }
 0x1ec   :  { %v2558_v31 = vadd.f32 %v2549_v34, %v496_v29  ;;  %v2568_v41 = vadd.f32 %v2549_v34, %v536_v30 }
 0x1ed   :  { %3800 = vst [vmem:[#allocation12_spill] sm:$0xff] %v2552_v26  ;;  %3801 = vst [vmem:[#allocation13_spill] sm:$0xff] %v2555_v27  ;;  %v683_v32 = vsel %vm655_vm0, %v2555_v27, -inf  ;;  %v659_v33 = vsel %vm655_vm0, %v2552_v26, -inf }
 0x1ee   :  { %3802 = vst [vmem:[#allocation14_spill] sm:$0xff] %v2558_v31  ;;  %684 = vmax.xlane.f32.xlu1 %v683_v32  ;;  %v1984_v37 = vpop.f32.mrb[2].mxu1  ;;  %660 = vmax.xlane.f32.xlu0 %v659_v33  ;;  %v1972_v38 = vpop.f32.mrb[6].mxu0  ;;  %3804 = vst [vmem:[#allocation16_spill] sm:$0xff] %v2568_v41  ;;  %v656_v43 = vsel %vm655_vm0, %v2558_v31, -inf  ;;  %v680_v50 = vsel %vm655_vm0, %v2568_v41, -inf }
 0x1ef   :  { %v2565_v19 = vadd.f32 %v1972_v38, %v2549_v34  ;;  %v506_v39 = vpop.f32.mrb[7].mxu0  ;;  %v546_v40 = vpop.f32.mrb[3].mxu1  ;;  %v2571_v35 = vadd.f32 %v1984_v37, %v2549_v34 }
 0x1f0   :  { %v2578_v21 = vadd.f32 %v2549_v34, %v506_v39  ;;  %v2581_v49 = vadd.f32 %v2549_v34, %v546_v40 }
 0x1f1   :  { %3803 = vst [vmem:[#allocation15_spill] sm:$0xff] %v2565_v19  ;;  %3805 = vst [vmem:[#allocation17_spill] sm:$0xff] %v2571_v35  ;;  %v665_v42 = vsel %vm655_vm0, %v2565_v19, -inf  ;;  %v689_v36 = vsel %vm655_vm0, %v2571_v35, -inf }
 0x1f2   :  { %v1987_v44 = vpop.f32.mrb[4].mxu1  ;;  %666 = vmax.xlane.f32.xlu1 %v665_v42  ;;  %v1975_v45 = vpop.f32.mrb[8].mxu0  ;;  %657 = vmax.xlane.f32.xlu0 %v656_v43  ;;  %3806 = vst [vmem:[#allocation18_spill] sm:$0xff] %v2578_v21  ;;  %3807 = vst [vmem:[#allocation19_spill] sm:$0xff] %v2581_v49  ;;  %v662_v56 = vsel %vm655_vm0, %v2578_v21, -inf  ;;  %v686_v57 = vsel %vm655_vm0, %v2581_v49, -inf }
 0x1f3   :  { %v516_v46 = vpop.f32.mrb[9].mxu0  ;;  %v556_v48 = vpop.f32.mrb[5].mxu1  ;;  %v2588_v55 = vadd.f32 %v1975_v45, %v2549_v34  ;;  %v2598_v60 = vadd.f32 %v1987_v44, %v2549_v34 }
 0x1f4   :  { %v2591_v15 = vadd.f32 %v2549_v34, %v516_v46  ;;  %v2601_v61 = vadd.f32 %v2549_v34, %v556_v48 }
 0x1f5   :  { %3808 = vst [vmem:[#allocation20_spill] sm:$0xff] %v2588_v55  ;;  %3810 = vst [vmem:[#allocation22_spill] sm:$0xff] %v2598_v60  ;;  %v671_v17 = vsel %vm655_vm0, %v2588_v55, -inf  ;;  %v695_v3 = vsel %vm655_vm0, %v2598_v60, -inf }
 0x1f6   :  { %v1990_v51 = vpop.f32.mrb[6].mxu1  ;;  %690 = vmax.xlane.f32.xlu1 %v689_v36  ;;  %v1978_v52 = vpop.f32.mrb[10].mxu0  ;;  %681 = vmax.xlane.f32.xlu0 %v680_v50  ;;  %3809 = vst [vmem:[#allocation21_spill] sm:$0xff] %v2591_v15  ;;  %3811 = vst [vmem:[#allocation23_spill] sm:$0xff] %v2601_v61  ;;  %v668_v62 = vsel %vm655_vm0, %v2591_v15, -inf  ;;  %v692_v20 = vsel %vm655_vm0, %v2601_v61, -inf }
 0x1f7   :  { %v526_v53 = vpop.f32.mrb[11].mxu0  ;;  %v566_v54 = vpop.f32.mrb[7].mxu1  ;;  %v2608_v1 = vadd.f32 %v1978_v52, %v2549_v34  ;;  %v2618_v6 = vadd.f32 %v1990_v51, %v2549_v34 }
 0x1f8   :  { %v2611_v2 = vadd.f32 %v2549_v34, %v526_v53  ;;  %v2621_v7 = vadd.f32 %v2549_v34, %v566_v54 }
 0x1f9   :  { %3812 = vst [vmem:[#allocation24_spill] sm:$0xff] %v2608_v1  ;;  %3814 = vst [vmem:[#allocation26_spill] sm:$0xff] %v2618_v6  ;;  %v677_v8 = vsel %vm655_vm0, %v2608_v1, -inf  ;;  %v701_v11 = vsel %vm655_vm0, %v2618_v6, -inf }
 0x1fa   :  { %v1993_v58 = vpop.f32.mrb[8].mxu1  ;;  %663 = vmax.xlane.f32.xlu1 %v662_v56  ;;  %687 = vmax.xlane.f32.xlu0 %v686_v57  ;;  %3813 = vst [vmem:[#allocation25_spill] sm:$0xff] %v2611_v2  ;;  %3815 = vst [vmem:[#allocation27_spill] sm:$0xff] %v2621_v7  ;;  %v674_v9 = vsel %vm655_vm0, %v2611_v2, -inf  ;;  %v698_v14 = vsel %vm655_vm0, %v2621_v7, -inf }
 0x1fb   :  { %v576_v59 = vpop.f32.mrb[9].mxu1  ;;  %v2628_v28 = vadd.f32 %v1993_v58, %v2549_v34 }
 0x1fc   :  { %v2631_v10 = vadd.f32 %v2549_v34, %v576_v59 }
 0x1fd   :  { %3816 = vst [vmem:[#allocation28_spill] sm:$0xff] %v2628_v28  ;;  %v707_v47 = vsel %vm655_vm0, %v2628_v28, -inf }
 0x1fe   :  { %v1996_v63 = vpop.f32.mrb[10].mxu1  ;;  %672 = vmax.xlane.f32.xlu1 %v671_v17  ;;  %669 = vmax.xlane.f32.xlu0 %v668_v62  ;;  %3817 = vst [vmem:[#allocation29_spill] sm:$0xff] %v2631_v10  ;;  %v704_v25 = vsel %vm655_vm0, %v2631_v10, -inf }
 0x1ff   :  { %v586_v0 = vpop.f32.mrb[11].mxu1  ;;  %v2638_v23 = vadd.f32 %v1996_v63, %v2549_v34 }
 0x200   :  { %v2641_v24 = vadd.f32 %v2549_v34, %v586_v0 }
 0x201   :  { %3818 = vst [vmem:[#allocation30_spill] sm:$0xff] %v2638_v23  ;;  %v713_v37 = vsel %vm655_vm0, %v2638_v23, -inf }
 0x202   :  { %v1999_v4 = vpop.f32.mrb[12].mxu1  ;;  %696 = vmax.xlane.f32.xlu1 %v695_v3  ;;  %693 = vmax.xlane.f32.xlu0 %v692_v20  ;;  %3819 = vst [vmem:[#allocation31_spill] sm:$0xff] %v2641_v24  ;;  %v710_v38 = vsel %vm655_vm0, %v2641_v24, -inf }
 0x203   :  { %v596_v5 = vpop.f32.mrb[13].mxu1  ;;  %v2648_v32 = vadd.f32 %v1999_v4, %v2549_v34 }
 0x204   :  { %v2651_v33 = vadd.f32 %v2549_v34, %v596_v5 }
 0x205   :  { %3820 = vst [vmem:[#allocation32_spill] sm:$0xff] %v2648_v32  ;;  %v719_v44 = vsel %vm655_vm0, %v2648_v32, -inf }
 0x206   :  { %v2002_v13 = vpop.f32.mrb[14].mxu1  ;;  %678 = vmax.xlane.f32.xlu1 %v677_v8  ;;  %675 = vmax.xlane.f32.xlu0 %v674_v9  ;;  %3821 = vst [vmem:[#allocation33_spill] sm:$0xff] %v2651_v33  ;;  %v716_v45 = vsel %vm655_vm0, %v2651_v33, -inf  ;;  %v2712_v8 = vand.u32 127, %v151_v12 }
 0x207   :  { %v606_v22 = vpop.f32.mrb[15].mxu1  ;;  %v2658_v42 = vadd.f32 %v2002_v13, %v2549_v34 }
 0x208   :  { %v2661_v43 = vadd.f32 %v2549_v34, %v606_v22 }
 0x209   :  { %3822 = vst [vmem:[#allocation34_spill] sm:$0xff] %v2658_v42  ;;  %v725_v51 = vsel %vm655_vm0, %v2658_v42, -inf }
 0x20a   :  { %v2005_v16 = vpop.f32.mrb[16].mxu1  ;;  %702 = vmax.xlane.f32.xlu1 %v701_v11  ;;  %699 = vmax.xlane.f32.xlu0 %v698_v14  ;;  %3823 = vst [vmem:[#allocation35_spill] sm:$0xff] %v2661_v43  ;;  %v722_v52 = vsel %vm655_vm0, %v2661_v43, -inf }
 0x20b   :  { %v616_v18 = vpop.f32.mrb[17].mxu1  ;;  %v2668_v36 = vadd.f32 %v2005_v16, %v2549_v34 }
 0x20c   :  { %v2671_v50 = vadd.f32 %v2549_v34, %v616_v18 }
 0x20d   :  { %3824 = vst [vmem:[#allocation36_spill] sm:$0xff] %v2668_v36  ;;  %v731_v56 = vsel %vm655_vm0, %v2668_v36, -inf }
 0x20e   :  { %v2008_v29 = vpop.f32.mrb[18].mxu1  ;;  %708 = vmax.xlane.f32.xlu1 %v707_v47  ;;  %705 = vmax.xlane.f32.xlu0 %v704_v25  ;;  %3825 = vst [vmem:[#allocation37_spill] sm:$0xff] %v2671_v50  ;;  %v728_v57 = vsel %vm655_vm0, %v2671_v50, -inf }
 0x20f   :  { %v626_v30 = vpop.f32.mrb[19].mxu1  ;;  %v2678_v53 = vadd.f32 %v2008_v29, %v2549_v34 }
 0x210   :  { %v2681_v54 = vadd.f32 %v2549_v34, %v626_v30 }
 0x211   :  { %3826 = vst [vmem:[#allocation38_spill] sm:$0xff] %v2678_v53  ;;  %v737_v17 = vsel %vm655_vm0, %v2678_v53, -inf }
 0x212   :  { %v2011_v39 = vpop.f32.mrb[20].mxu1  ;;  %714 = vmax.xlane.f32.xlu1 %v713_v37  ;;  %711 = vmax.xlane.f32.xlu0 %v710_v38  ;;  %3827 = vst [vmem:[#allocation39_spill] sm:$0xff] %v2681_v54  ;;  %v734_v62 = vsel %vm655_vm0, %v2681_v54, -inf }
 0x213   :  { %v636_v40 = vpop.f32.mrb[21].mxu1  ;;  %v2688_v58 = vadd.f32 %v2011_v39, %v2549_v34 }
 0x214   :  { %v2691_v59 = vadd.f32 %v2549_v34, %v636_v40 }
 0x215   :  { %3828 = vst [vmem:[#allocation40_spill] sm:$0xff] %v2688_v58  ;;  %v743_v3 = vsel %vm655_vm0, %v2688_v58, -inf }
 0x216   :  { %v2014_v46 = vpop.f32.mrb[22].mxu1  ;;  %720 = vmax.xlane.f32.xlu1 %v719_v44  ;;  %717 = vmax.xlane.f32.xlu0 %v716_v45  ;;  %3829 = vst [vmem:[#allocation41_spill] sm:$0xff] %v2691_v59  ;;  %v740_v20 = vsel %vm655_vm0, %v2691_v59, -inf }
 0x217   :  { %v646_v48 = vpop.f32.mrb[23].mxu1  ;;  %v2698_v63 = vadd.f32 %v2014_v46, %v2549_v34 }
 0x218   :  { %v2701_v0 = vadd.f32 %v2549_v34, %v646_v48 }
 0x219   :  { %3830 = vst [vmem:[#allocation42_spill] sm:$0xff] %v2698_v63  ;;  %v749_v4 = vsel %vm655_vm0, %v2698_v63, -inf }
 0x21a   :  { %726 = vmax.xlane.f32.xlu1 %v725_v51  ;;  %723 = vmax.xlane.f32.xlu0 %v722_v52  ;;  %3831 = vst [vmem:[#allocation43_spill] sm:$0xff] %v2701_v0  ;;  %v746_v5 = vsel %vm655_vm0, %v2701_v0, -inf }
 0x21e   :  { %732 = vmax.xlane.f32.xlu1 %v731_v56  ;;  %729 = vmax.xlane.f32.xlu0 %v728_v57 }
 0x222   :  { %738 = vmax.xlane.f32.xlu1 %v737_v17  ;;  %735 = vmax.xlane.f32.xlu0 %v734_v62 }
 0x226   :  { %744 = vmax.xlane.f32.xlu1 %v743_v3  ;;  %741 = vmax.xlane.f32.xlu0 %v740_v20 }
 0x22a   :  { %750 = vmax.xlane.f32.xlu1 %v749_v4  ;;  %747 = vmax.xlane.f32.xlu0 %v746_v5 }
 0x27b   :  { %v2714_v34 = vpop.xlane.xlu1 %684  ;;  %v2716_v9 = vpop.xlane.xlu0 %660 }
 0x27c   :  { %3832 = vst [vmem:[#allocation44_spill] sm:$0xff] %v2714_v34  ;;  %3833 = vst [vmem:[#allocation45_spill] sm:$0xff] %v2716_v9  ;;  %vm1075_vm1 = vcmp.eq.f32.partialorder %v2552_v26, %v2716_v9  ;;  %vm1083_vm2 = vcmp.eq.f32.partialorder %v2555_v27, %v2714_v34  ;;  %v753_v11 = vsub.f32 %v2552_v26, %v2716_v9 }
 0x27d   :  { %v1107_v13 = vsel %vm1075_vm1, %v2712_v8, 15  ;;  %v1115_v22 = vsel %vm1083_vm2, %v2712_v8, 15  ;;  %v761_v30 = vsub.f32 %v2555_v27, %v2714_v34 }
 0x27e   :  { %v2727_v12 = vsel %vm655_vm0, %v1107_v13, 2147483647  ;;  %v2735_v47 = vsel %vm655_vm0, %v1115_v22, 2147483647  ;;  %v786_v37 = vmul.f32 1.442695, %v753_v11 }
 0x27f   :  { %v2729_v14 = vpop.xlane.xlu1 %666  ;;  %v2731_v16 = vpop.xlane.xlu0 %657  ;;  %v1155_v18 = vshra.s32 %v2727_v12, 16  ;;  %v1275_v29 = vshra.s32 %v2735_v47, 16  ;;  %v802_v51 = vmul.f32 1.442695, %v761_v30 }
 0x280   :  { %3834 = vst [vmem:[#allocation46_spill] sm:$0xff] %v2729_v14  ;;  %3835 = vst [vmem:[#allocation47_spill] sm:$0xff] %v2731_v16  ;;  %vm1074_vm3 = vcmp.eq.f32.partialorder %v2558_v31, %v2731_v16  ;;  %vm1077_vm4 = vcmp.eq.f32.partialorder %v2565_v19, %v2729_v14  ;;  %2108 = vpow2.f32 %v786_v37  ;;  %v755_v13 = vsub.f32 %v2565_v19, %v2729_v14 }
 0x281   :  { %v2737_v25 = vcvt.s32.f32 %v1155_v18  ;;  %v1106_v38 = vsel %vm1074_vm3, %v2712_v8, 15  ;;  %v1109_v45 = vsel %vm1077_vm4, %v2712_v8, 15  ;;  %v2756_v46 = vcvt.s32.f32 %v1275_v29 }
 0x282   :  { %v2753_v44 = vsel %vm655_vm0, %v1106_v38, 2147483647  ;;  %v2765_v56 = vsel %vm655_vm0, %v1109_v45, 2147483647  ;;  %2110 = vpow2.f32 %v802_v51 }
 0x283   :  { %v2747_v39 = vpop.xlane.xlu1 %690  ;;  %1158 = vmin.xlane.f32.xlu0 %v2737_v25  ;;  %v2750_v40 = vpop.xlane.xlu0 %681  ;;  %v1140_v48 = vshra.s32 %v2753_v44, 16  ;;  %v1185_v5 = vshra.s32 %v2765_v56, 16 }
 0x284   :  { %3836 = vst [vmem:[#allocation48_spill] sm:$0xff] %v2747_v39  ;;  %3837 = vst [vmem:[#allocation49_spill] sm:$0xff] %v2750_v40  ;;  %vm1082_vm5 = vcmp.eq.f32.partialorder %v2568_v41, %v2750_v40  ;;  %vm1085_vm6 = vcmp.eq.f32.partialorder %v2571_v35, %v2747_v39  ;;  %v763_v38 = vsub.f32 %v2571_v35, %v2747_v39 }
 0x285   :  { %v1114_v52 = vsel %vm1082_vm5, %v2712_v8, 15  ;;  %v1117_v20 = vsel %vm1085_vm6, %v2712_v8, 15  ;;  %v2777_v4 = vcvt.s32.f32 %v1140_v48  ;;  %v2804_v48 = vcvt.s32.f32 %v1185_v5 }
 0x286   :  { %v2773_v62 = vsel %vm655_vm0, %v1114_v52, 2147483647  ;;  %v2796_v37 = vsel %vm655_vm0, %v1117_v20, 2147483647  ;;  %v790_v52 = vmul.f32 1.442695, %v755_v13  ;;  %v752_v5 = vsub.f32 %v2558_v31, %v2731_v16 }
 0x287   :  { %v2767_v57 = vpop.xlane.xlu1 %663  ;;  %1278 = vmin.xlane.f32.xlu0 %v2756_v46  ;;  %v2770_v17 = vpop.xlane.xlu0 %687  ;;  %v1260_v3 = vshra.s32 %v2773_v62, 16  ;;  %v1305_v51 = vshra.s32 %v2796_v37, 16  ;;  %v806_v35 = vmul.f32 1.442695, %v763_v38 }
 0x288   :  { %3838 = vst [vmem:[#allocation50_spill] sm:$0xff] %v2767_v57  ;;  %3839 = vst [vmem:[#allocation51_spill] sm:$0xff] %v2770_v17  ;;  %vm1084_vm7 = vcmp.eq.f32.partialorder %v2581_v49, %v2770_v17  ;;  %vm1076_vm8 = vcmp.eq.f32.partialorder %v2578_v21, %v2767_v57  ;;  %2112 = vpow2.f32 %v790_v52  ;;  %v784_v14 = vmul.f32 1.442695, %v752_v5 }
 0x289   :  { %v2784_v22 = vcvt.s32.f32 %v1260_v3  ;;  %v1116_v11 = vsel %vm1084_vm7, %v2712_v8, 15  ;;  %v1108_v20 = vsel %vm1076_vm8, %v2712_v8, 15  ;;  %2114 = vpow2.f32 %v806_v35 }
 0x28a   :  { %v2793_v30 = vsel %vm655_vm0, %v1116_v11, 2147483647  ;;  %v2814_v26 = vsel %vm655_vm0, %v1108_v20, 2147483647  ;;  %v2109_v9 = vpop.eup %2108  ;;  %2116 = vpow2.f32 %v784_v14 }
 0x28b   :  { %v2787_v18 = vpop.xlane.xlu1 %672  ;;  %1143 = vmin.xlane.f32.xlu0 %v2777_v4  ;;  %v2790_v29 = vpop.xlane.xlu0 %669  ;;  %1263 = vmin.xlane.f32.xlu1 %v2784_v22  ;;  %v1290_v45 = vshra.s32 %v2793_v30, 16  ;;  %3843 = vst [vmem:[#allocation55_spill] sm:$0xff] %v2814_v26  ;;  %v1170_v19 = vshra.s32 %v2814_v26, 16  ;;  %v851_v38 = vsel %vm655_vm0, %v2109_v9, 0.0 }
 0x28c   :  { %3840 = vst [vmem:[#allocation52_spill] sm:$0xff] %v2787_v18  ;;  %3841 = vst [vmem:[#allocation53_spill] sm:$0xff] %v2790_v29  ;;  %vm1079_vm9 = vcmp.eq.f32.partialorder %v2588_v55, %v2787_v18  ;;  %v2111_v16 = vpop.eup %2110  ;;  %v757_v34 = vsub.f32 %v2588_v55, %v2787_v18  ;;  %vm1078_vm12 = vcmp.eq.f32.partialorder %v2591_v15, %v2790_v29 }
 0x28d   :  { %v2807_v3 = vcvt.s32.f32 %v1290_v45  ;;  %v2823_v45 = vcvt.s32.f32 %v1305_v51  ;;  %v1111_v39 = vsel %vm1079_vm9, %v2712_v8, 15  ;;  %v2844_v52 = vcvt.s32.f32 %v1170_v19 }
 0x28e   :  { %v2830_v20 = vsel %vm655_vm0, %v1111_v39, 2147483647  ;;  %v760_v39 = vsub.f32 %v2568_v41, %v2750_v40  ;;  %v875_v35 = vsel %vm655_vm0, %v2111_v16, 0.0  ;;  %v1110_v19 = vsel %vm1078_vm12, %v2712_v8, 15 }
 0x28f   :  { %1188 = vmin.xlane.f32.xlu0 %v2804_v48  ;;  %v2811_v11 = vpop.xlane.xlu0 %693  ;;  %v2820_v13 = vpop.xlane.xlu1 %696  ;;  %1293 = vmin.xlane.f32.xlu1 %v2807_v3  ;;  %3845 = vst [vmem:[#allocation57_spill] sm:$0xff] %v2823_v45  ;;  %3847 = vst [vmem:[#allocation59_spill] sm:$0xff] %v2844_v52  ;;  %v1215_v9 = vshra.s32 %v2830_v20, 16  ;;  %v794_v41 = vmul.f32 1.442695, %v757_v34 }
 0x290   :  { %3842 = vst [vmem:[#allocation54_spill] sm:$0xff] %v2811_v11  ;;  %3844 = vst [vmem:[#allocation56_spill] sm:$0xff] %v2820_v13  ;;  %vm1086_vm10 = vcmp.eq.f32.partialorder %v2601_v61, %v2811_v11  ;;  %vm1087_vm11 = vcmp.eq.f32.partialorder %v2598_v60, %v2820_v13  ;;  %v765_v40 = vsub.f32 %v2598_v60, %v2820_v13 }
 0x291   :  { %v1118_v51 = vsel %vm1086_vm10, %v2712_v8, 15  ;;  %v1119_v26 = vsel %vm1087_vm11, %v2712_v8, 15  ;;  %v2861_v55 = vcvt.s32.f32 %v1215_v9 }
 0x292   :  { %v2840_v27 = vsel %vm655_vm0, %v1118_v51, 2147483647  ;;  %v2856_v5 = vsel %vm655_vm0, %v1119_v26, 2147483647  ;;  %v800_v51 = vmul.f32 1.442695, %v760_v39  ;;  %v2113_v14 = vpop.eup %2112 }
 0x293   :  { %1308 = vmin.xlane.f32.xlu0 %v2823_v45  ;;  %v2834_v31 = vpop.xlane.xlu0 %675  ;;  %852 = vadd.xlane.f32.xlu1 %v851_v38  ;;  %v1320_v45 = vshra.s32 %v2840_v27, 16  ;;  %v1335_v18 = vshra.s32 %v2856_v5, 16  ;;  %v2869_v26 = vsel %vm655_vm0, %v1110_v19, 2147483647  ;;  %v2871_v16 = vpop.xlane.xlu1 %678  ;;  %v810_v9 = vmul.f32 1.442695, %v765_v40 }
 0x294   :  { %3846 = vst [vmem:[#allocation58_spill] sm:$0xff] %v2834_v31  ;;  %3849 = vst [vmem:[#allocation61_spill] sm:$0xff] %v2871_v16  ;;  %2118 = vpow2.f32 %v800_v51  ;;  %v1200_v39 = vshra.s32 %v2869_v26, 16  ;;  %v857_v19 = vsel %vm655_vm0, %v2113_v14, 0.0  ;;  %vm1081_vm14 = vcmp.eq.f32.partialorder %v2608_v1, %v2871_v16 }
 0x295   :  { %v2877_v34 = vcvt.s32.f32 %v1335_v18  ;;  %2120 = vpow2.f32 %v794_v41  ;;  %v759_v18 = vsub.f32 %v2608_v1, %v2871_v16  ;;  %vm1080_vm2 = vcmp.eq.f32.partialorder %v2611_v2, %v2834_v31 }
 0x296   :  { %v2892_v13 = vcvt.s32.f32 %v1200_v39  ;;  %2122 = vpow2.f32 %v810_v9  ;;  %v754_v39 = vsub.f32 %v2578_v21, %v2767_v57 }
 0x297   :  { %1173 = vmin.xlane.f32.xlu0 %v2844_v52  ;;  %876 = vadd.xlane.f32.xlu1 %v875_v35  ;;  %v2859_v38 = vpop.xlane.xlu0 %699  ;;  %v2866_v52 = vcvt.s32.f32 %v1320_v45  ;;  %3850 = vst [vmem:[#allocation62_spill] sm:$0xff] %v2877_v34  ;;  %v2115_v35 = vpop.eup %2114  ;;  %v798_v1 = vmul.f32 1.442695, %v759_v18 }
 0x298   :  { %3848 = vst [vmem:[#allocation60_spill] sm:$0xff] %v2859_v38  ;;  %vm1088_vm13 = vcmp.eq.f32.partialorder %v2621_v7, %v2859_v38  ;;  %v2890_v51 = vpop.xlane.xlu1 %702  ;;  %3853 = vst [vmem:[#allocation65_spill] sm:$0xff] %v2892_v13  ;;  %v2117_v14 = vpop.eup %2116 }
 0x299   :  { %v1120_v45 = vsel %vm1088_vm13, %v2712_v8, 15  ;;  %3852 = vst [vmem:[#allocation64_spill] sm:$0xff] %v2890_v51  ;;  %vm1089_vm15 = vcmp.eq.f32.partialorder %v2618_v6, %v2890_v51  ;;  %v767_v9 = vsub.f32 %v2618_v6, %v2890_v51  ;;  %v848_v16 = vsel %vm655_vm0, %v2117_v14, 0.0 }
 0x29a   :  { %v2884_v60 = vsel %vm655_vm0, %v1120_v45, 2147483647  ;;  %v881_v45 = vsel %vm655_vm0, %v2115_v35, 0.0  ;;  %v788_v6 = vmul.f32 1.442695, %v754_v39  ;;  %2124 = vpow2.f32 %v798_v1 }
 0x29b   :  { %1218 = vmin.xlane.f32.xlu0 %v2861_v55  ;;  %1323 = vmin.xlane.f32.xlu1 %v2866_v52  ;;  %3851 = vst [vmem:[#allocation63_spill] sm:$0xff] %v2884_v60  ;;  %v2894_v41 = vpop.xlane.xlu0 %705  ;;  %v1350_v40 = vshra.s32 %v2884_v60, 16  ;;  %v1121_v60 = vsel %vm1089_vm15, %v2712_v8, 15  ;;  %v1112_v39 = vsel %vm1080_vm2, %v2712_v8, 15 }
 0x29c   :  { %3854 = vst [vmem:[#allocation66_spill] sm:$0xff] %v2894_v41  ;;  %vm1090_vm1 = vcmp.eq.f32.partialorder %v2631_v10, %v2894_v41  ;;  %v2924_v51 = vsel %vm655_vm0, %v1121_v60, 2147483647  ;;  %v2926_v21 = vpop.xlane.xlu1 %708  ;;  %2126 = vpow2.f32 %v788_v6 }
 0x29d   :  { %v1122_v18 = vsel %vm1090_vm1, %v2712_v8, 15  ;;  %3856 = vst [vmem:[#allocation68_spill] sm:$0xff] %v2926_v21  ;;  %v769_v60 = vsub.f32 %v2628_v28, %v2926_v21  ;;  %vm1091_vm4 = vcmp.eq.f32.partialorder %v2628_v28, %v2926_v21 }
 0x29f   :  { %1338 = vmin.xlane.f32.xlu0 %v2877_v34  ;;  %858 = vadd.xlane.f32.xlu1 %v857_v19  ;;  %v1113_v19 = vsel %vm1081_vm14, %v2712_v8, 15 }
 0x2a0   :  { %v2912_v35 = vsel %vm655_vm0, %v1113_v19, 2147483647  ;;  %v814_v19 = vmul.f32 1.442695, %v767_v9 }
 0x2a1   :  { %v1245_v14 = vshra.s32 %v2912_v35, 16 }
 0x2a2   :  { %2128 = vpow2.f32 %v814_v19  ;;  %v818_v19 = vmul.f32 1.442695, %v769_v60 }
 0x2a3   :  { %1203 = vmin.xlane.f32.xlu0 %v2892_v13  ;;  %882 = vadd.xlane.f32.xlu1 %v881_v45  ;;  %v2909_v13 = vcvt.s32.f32 %v1350_v40  ;;  %v2119_v45 = vpop.eup %2118  ;;  %v762_v40 = vsub.f32 %v2581_v49, %v2770_v17  ;;  %v2933_v9 = vcvt.s32.f32 %v1245_v14 }
 0x2a4   :  { %v2121_v34 = vpop.eup %2120 }
 0x2a5   :  { %3855 = vst [vmem:[#allocation67_spill] sm:$0xff] %v2909_v13  ;;  %v863_v57 = vsel %vm655_vm0, %v2121_v34, 0.0  ;;  %v2123_v49 = vpop.eup %2122  ;;  %v804_v1 = vmul.f32 1.442695, %v762_v40 }
 0x2a6   :  { %v887_v6 = vsel %vm655_vm0, %v2123_v49, 0.0  ;;  %v2125_v49 = vpop.eup %2124 }
 0x2a7   :  { %849 = vadd.xlane.f32.xlu0 %v848_v16  ;;  %1353 = vmin.xlane.f32.xlu1 %v2909_v13  ;;  %v872_v16 = vsel %vm655_vm0, %v2119_v45, 0.0  ;;  %v2930_v13 = vsel %vm655_vm0, %v1122_v18, 2147483647  ;;  %v1365_v45 = vshra.s32 %v2924_v51, 16  ;;  %v2942_v18 = vsel %vm655_vm0, %v1112_v39, 2147483647  ;;  %v2955_v39 = vpop.xlane.xlu1 %714 }
 0x2a8   :  { %v1380_v34 = vshra.s32 %v2930_v13, 16  ;;  %2130 = vpow2.f32 %v804_v1  ;;  %v1230_v14 = vshra.s32 %v2942_v18, 16  ;;  %3860 = vst [vmem:[#allocation72_spill] sm:$0xff] %v2955_v39  ;;  %v771_v60 = vsub.f32 %v2638_v23, %v2955_v39 }
 0x2a9   :  { %v2948_v40 = vcvt.s32.f32 %v1365_v45  ;;  %v764_v45 = vsub.f32 %v2601_v61, %v2811_v11  ;;  %2132 = vpow2.f32 %v818_v19  ;;  %vm1093_vm6 = vcmp.eq.f32.partialorder %v2638_v23, %v2955_v39 }
 0x2aa   :  { %v2953_v17 = vcvt.s32.f32 %v1380_v34  ;;  %v822_v19 = vmul.f32 1.442695, %v771_v60 }
 0x2ab   :  { %873 = vadd.xlane.f32.xlu0 %v872_v16  ;;  %864 = vadd.xlane.f32.xlu1 %v863_v57  ;;  %v2938_v16 = vpop.xlane.xlu0 %711  ;;  %v756_v57 = vsub.f32 %v2591_v15, %v2790_v29  ;;  %3858 = vst [vmem:[#allocation70_spill] sm:$0xff] %v2948_v40  ;;  %v2964_v15 = vcvt.s32.f32 %v1230_v14  ;;  %v2127_v29 = vpop.eup %2126  ;;  %v808_v14 = vmul.f32 1.442695, %v764_v45 }
 0x2ac   :  { %3857 = vst [vmem:[#allocation69_spill] sm:$0xff] %v2938_v16  ;;  %vm1092_vm3 = vcmp.eq.f32.partialorder %v2641_v24, %v2938_v16  ;;  %3859 = vst [vmem:[#allocation71_spill] sm:$0xff] %v2953_v17  ;;  %v2129_v28 = vpop.eup %2128  ;;  %v2978_v21 = vpop.xlane.xlu1 %720  ;;  %v854_v61 = vsel %vm655_vm0, %v2127_v29, 0.0 }
 0x2ad   :  { %v792_v1 = vmul.f32 1.442695, %v756_v57  ;;  %3861 = vst [vmem:[#allocation73_spill] sm:$0xff] %v2964_v15  ;;  %v1123_v57 = vsel %vm1091_vm4, %v2712_v8, 15  ;;  %3863 = vst [vmem:[#allocation75_spill] sm:$0xff] %v2978_v21  ;;  %v773_v45 = vsub.f32 %v2648_v32, %v2978_v21  ;;  %vm1095_vm9 = vcmp.eq.f32.partialorder %v2648_v32, %v2978_v21 }
 0x2af   :  { %1248 = vmin.xlane.f32.xlu0 %v2933_v9  ;;  %888 = vadd.xlane.f32.xlu1 %v887_v6  ;;  %v1124_v6 = vsel %vm1092_vm3, %v2712_v8, 15  ;;  %v2968_v34 = vpop.xlane.xlu0 %717  ;;  %2134 = vpow2.f32 %v792_v1 }
 0x2b0   :  { %3862 = vst [vmem:[#allocation74_spill] sm:$0xff] %v2968_v34  ;;  %vm1094_vm5 = vcmp.eq.f32.partialorder %v2651_v33, %v2968_v34  ;;  %2136 = vpow2.f32 %v808_v14  ;;  %v766_v14 = vsub.f32 %v2621_v7, %v2859_v38 }
 0x2b1   :  { %v1126_v1 = vsel %vm1094_vm5, %v2712_v8, 15  ;;  %2138 = vpow2.f32 %v822_v19  ;;  %v826_v19 = vmul.f32 1.442695, %v773_v45 }
 0x2b3   :  { %1368 = vmin.xlane.f32.xlu0 %v2948_v40  ;;  %1383 = vmin.xlane.f32.xlu1 %v2953_v17  ;;  %v869_v17 = vsel %vm655_vm0, %v2125_v49, 0.0  ;;  %v2973_v40 = vsel %vm655_vm0, %v1124_v6, 2147483647  ;;  %v2983_v49 = vsel %vm655_vm0, %v1123_v57, 2147483647  ;;  %v2131_v6 = vpop.eup %2130  ;;  %v2992_v60 = vpop.xlane.xlu0 %723 }
 0x2b4   :  { %v1410_v11 = vshra.s32 %v2973_v40, 16  ;;  %v1395_v29 = vshra.s32 %v2983_v49, 16  ;;  %3864 = vst [vmem:[#allocation76_spill] sm:$0xff] %v2992_v60  ;;  %v878_v57 = vsel %vm655_vm0, %v2131_v6, 0.0  ;;  %vm1096_vm7 = vcmp.eq.f32.partialorder %v2661_v43, %v2992_v60 }
 0x2b5   :  { %v1128_v45 = vsel %vm1096_vm7, %v2712_v8, 15 }
 0x2b7   :  { %1233 = vmin.xlane.f32.xlu0 %v2964_v15  ;;  %870 = vadd.xlane.f32.xlu1 %v869_v17  ;;  %v893_v15 = vsel %vm655_vm0, %v2129_v28, 0.0  ;;  %v758_v17 = vsub.f32 %v2611_v2, %v2834_v31  ;;  %v2998_v28 = vsel %vm655_vm0, %v1126_v1, 2147483647  ;;  %v3005_v31 = vcvt.s32.f32 %v1395_v29  ;;  %v3010_v1 = vpop.xlane.xlu1 %726  ;;  %v3018_v39 = vpop.xlane.xlu0 %729 }
 0x2b8   :  { %3866 = vst [vmem:[#allocation78_spill] sm:$0xff] %v3010_v1  ;;  %v812_v29 = vmul.f32 1.442695, %v766_v14  ;;  %v775_v23 = vsub.f32 %v2658_v42, %v3010_v1  ;;  %3867 = vst [vmem:[#allocation79_spill] sm:$0xff] %v3018_v39  ;;  %v768_v14 = vsub.f32 %v2631_v10, %v2894_v41  ;;  %vm1098_vm8 = vcmp.eq.f32.partialorder %v2671_v50, %v3018_v39 }
 0x2b9   :  { %v796_v2 = vmul.f32 1.442695, %v758_v17  ;;  %3865 = vst [vmem:[#allocation77_spill] sm:$0xff] %v3005_v31  ;;  %vm1097_vm11 = vcmp.eq.f32.partialorder %v2658_v42, %v3010_v1 }
 0x2ba   :  { %v816_v10 = vmul.f32 1.442695, %v768_v14  ;;  %v770_v14 = vsub.f32 %v2641_v24, %v2938_v16 }
 0x2bb   :  { %855 = vadd.xlane.f32.xlu0 %v854_v61  ;;  %894 = vadd.xlane.f32.xlu1 %v893_v15  ;;  %v2995_v61 = vcvt.s32.f32 %v1410_v11  ;;  %v2133_v15 = vpop.eup %2132  ;;  %v1440_v11 = vshra.s32 %v2998_v28, 16  ;;  %2140 = vpow2.f32 %v796_v2  ;;  %v3027_v2 = vsel %vm655_vm0, %v1128_v45, 2147483647 }
 0x2bc   :  { %v2135_v6 = vpop.eup %2134  ;;  %v899_v17 = vsel %vm655_vm0, %v2133_v15, 0.0  ;;  %2142 = vpow2.f32 %v826_v19  ;;  %3869 = vst [vmem:[#allocation81_spill] sm:$0xff] %v3027_v2 }
 0x2bd   :  { %v860_v7 = vsel %vm655_vm0, %v2135_v6, 0.0  ;;  %v3021_v38 = vcvt.s32.f32 %v1440_v11  ;;  %v2137_v15 = vpop.eup %2136  ;;  %2144 = vpow2.f32 %v812_v29  ;;  %v830_v11 = vmul.f32 1.442695, %v775_v23 }
 0x2be   :  { %v884_v6 = vsel %vm655_vm0, %v2137_v15, 0.0  ;;  %v1130_v29 = vsel %vm1098_vm8, %v2712_v8, 15  ;;  %v3047_v15 = vpop.xlane.xlu0 %735 }
 0x2bf   :  { %879 = vadd.xlane.f32.xlu0 %v878_v57  ;;  %1413 = vmin.xlane.f32.xlu1 %v2995_v61  ;;  %v1125_v57 = vsel %vm1093_vm6, %v2712_v8, 15  ;;  %2146 = vpow2.f32 %v830_v11  ;;  %3871 = vst [vmem:[#allocation83_spill] sm:$0xff] %v3047_v15  ;;  %vm1100_vm10 = vcmp.eq.f32.partialorder %v2681_v54, %v3047_v15 }
 0x2c0   :  { %2148 = vpow2.f32 %v816_v10  ;;  %v1132_v24 = vsel %vm1100_vm10, %v2712_v8, 15 }
 0x2c2   :  { %v3075_v16 = vpop.xlane.xlu0 %741 }
 0x2c3   :  { %1398 = vmin.xlane.f32.xlu0 %v3005_v31  ;;  %900 = vadd.xlane.f32.xlu1 %v899_v17  ;;  %v3024_v31 = vsel %vm655_vm0, %v1125_v57, 2147483647  ;;  %v2139_v17 = vpop.eup %2138  ;;  %v3037_v57 = vpop.xlane.xlu1 %732  ;;  %3874 = vst [vmem:[#allocation86_spill] sm:$0xff] %v3075_v16  ;;  %vm1102_vm12 = vcmp.eq.f32.partialorder %v2691_v59, %v3075_v16 }
 0x2c4   :  { %3868 = vst [vmem:[#allocation80_spill] sm:$0xff] %v3024_v31  ;;  %v1425_v19 = vshra.s32 %v3024_v31, 16  ;;  %3870 = vst [vmem:[#allocation82_spill] sm:$0xff] %v3037_v57  ;;  %v905_v45 = vsel %vm655_vm0, %v2139_v17, 0.0  ;;  %v777_v23 = vsub.f32 %v2668_v36, %v3037_v57  ;;  %v3053_v17 = vsel %vm655_vm0, %v1130_v29, 2147483647 }
 0x2c5   :  { %v2141_v31 = vpop.eup %2140  ;;  %3872 = vst [vmem:[#allocation84_spill] sm:$0xff] %v3053_v17  ;;  %vm1099_vm13 = vcmp.eq.f32.partialorder %v2668_v36, %v3037_v57 }
 0x2c6   :  { %v3043_v41 = vcvt.s32.f32 %v1425_v19  ;;  %v834_v19 = vmul.f32 1.442695, %v777_v23  ;;  %v866_v11 = vsel %vm655_vm0, %v2141_v31, 0.0  ;;  %v820_v23 = vmul.f32 1.442695, %v770_v14 }
 0x2c7   :  { %861 = vadd.xlane.f32.xlu0 %v860_v7  ;;  %1443 = vmin.xlane.f32.xlu1 %v3021_v38  ;;  %v1470_v7 = vshra.s32 %v3027_v2, 16  ;;  %v3066_v21 = vpop.xlane.xlu1 %738  ;;  %v772_v14 = vsub.f32 %v2651_v33, %v2968_v34  ;;  %v1134_v33 = vsel %vm1102_vm12, %v2712_v8, 15 }
 0x2c8   :  { %3873 = vst [vmem:[#allocation85_spill] sm:$0xff] %v3066_v21  ;;  %2150 = vpow2.f32 %v834_v19  ;;  %vm1101_vm15 = vcmp.eq.f32.partialorder %v2678_v53, %v3066_v21 }
 0x2c9   :  { %v3049_v2 = vcvt.s32.f32 %v1470_v7  ;;  %v1500_v7 = vshra.s32 %v3053_v17, 16  ;;  %2152 = vpow2.f32 %v820_v23 }
 0x2cb   :  { %885 = vadd.xlane.f32.xlu0 %v884_v6  ;;  %906 = vadd.xlane.f32.xlu1 %v905_v45  ;;  %v2143_v6 = vpop.eup %2142  ;;  %v1127_v45 = vsel %vm1095_vm9, %v2712_v8, 15  ;;  %v3087_v19 = vpop.xlane.xlu1 %744 }
 0x2cc   :  { %v3064_v32 = vsel %vm655_vm0, %v1127_v45, 2147483647  ;;  %v2145_v29 = vpop.eup %2144  ;;  %v911_v10 = vsel %vm655_vm0, %v2143_v6, 0.0  ;;  %v779_v45 = vsub.f32 %v2678_v53, %v3066_v21  ;;  %v3081_v6 = vsel %vm655_vm0, %v1132_v24, 2147483647  ;;  %3877 = vst [vmem:[#allocation89_spill] sm:$0xff] %v3087_v19 }
 0x2cd   :  { %v1455_v31 = vshra.s32 %v3064_v32, 16  ;;  %v890_v17 = vsel %vm655_vm0, %v2145_v29, 0.0  ;;  %3876 = vst [vmem:[#allocation88_spill] sm:$0xff] %v3081_v6  ;;  %v2147_v42 = vpop.eup %2146  ;;  %v1530_v24 = vshra.s32 %v3081_v6, 16  ;;  %vm1103_vm1 = vcmp.eq.f32.partialorder %v2688_v58, %v3087_v19 }
 0x2ce   :  { %v2149_v29 = vpop.eup %2148  ;;  %v917_v23 = vsel %vm655_vm0, %v2147_v42, 0.0 }
 0x2cf   :  { %1428 = vmin.xlane.f32.xlu0 %v3043_v41  ;;  %1473 = vmin.xlane.f32.xlu1 %v3049_v2  ;;  %v3089_v1 = vcvt.s32.f32 %v1455_v31  ;;  %v824_v31 = vmul.f32 1.442695, %v772_v14  ;;  %v896_v6 = vsel %vm655_vm0, %v2149_v29, 0.0  ;;  %v3110_v42 = vpop.xlane.xlu1 %750  ;;  %v1131_v14 = vsel %vm1099_vm13, %v2712_v8, 15 }
 0x2d0   :  { %3881 = vst [vmem:[#allocation93_spill] sm:$0xff] %v3110_v42  ;;  %v3127_v29 = vsel %vm655_vm0, %v1131_v14, 2147483647  ;;  %vm1105_vm2 = vcmp.eq.f32.partialorder %v2698_v63, %v3110_v42 }
 0x2d1   :  { %v1137_v21 = vsel %vm1105_vm2, %v2712_v8, 15 }
 0x2d2   :  { %v2151_v36 = vpop.eup %2150 }
 0x2d3   :  { %867 = vadd.xlane.f32.xlu0 %v866_v11  ;;  %912 = vadd.xlane.f32.xlu1 %v911_v10  ;;  %v3078_v11 = vcvt.s32.f32 %v1500_v7  ;;  %v1129_v10 = vsel %vm1097_vm11, %v2712_v8, 15 }
 0x2d4   :  { %v3095_v7 = vsel %vm655_vm0, %v1129_v10, 2147483647  ;;  %v3105_v10 = vpop.xlane.xlu0 %747 }
 0x2d5   :  { %3875 = vst [vmem:[#allocation87_spill] sm:$0xff] %v3078_v11  ;;  %3878 = vst [vmem:[#allocation90_spill] sm:$0xff] %v3095_v7  ;;  %v1485_v34 = vshra.s32 %v3095_v7, 16  ;;  %vm1104_vm14 = vcmp.eq.f32.partialorder %v2701_v0, %v3105_v10  ;;  %v2153_v7 = vpop.eup %2152 }
 0x2d6   :  { %3879 = vst [vmem:[#allocation91_spill] sm:$0xff] %v3105_v10 }
 0x2d7   :  { %891 = vadd.xlane.f32.xlu0 %v890_v17  ;;  %1503 = vmin.xlane.f32.xlu1 %v3078_v11  ;;  %v838_v17 = vmul.f32 1.442695, %v779_v45  ;;  %v781_v45 = vsub.f32 %v2688_v58, %v3087_v19  ;;  %v3108_v11 = vcvt.s32.f32 %v1530_v24  ;;  %v3119_v57 = vcvt.s32.f32 %v1485_v34 }
 0x2d8   :  { %v1136_v34 = vsel %vm1104_vm14, %v2712_v8, 15 }
 0x2d9   :  { %2154 = vpow2.f32 %v838_v17  ;;  %3880 = vst [vmem:[#allocation92_spill] sm:$0xff] %v3108_v11  ;;  %v774_v17 = vsub.f32 %v2661_v43, %v2992_v60  ;;  %v842_v24 = vmul.f32 1.442695, %v781_v45  ;;  %v1515_v43 = vshra.s32 %v3127_v29, 16 }
 0x2da   :  { %2156 = vpow2.f32 %v824_v31  ;;  %v923_v31 = vsel %vm655_vm0, %v2151_v36, 0.0  ;;  %v1133_v36 = vsel %vm1101_vm15, %v2712_v8, 15 }
 0x2db   :  { %1458 = vmin.xlane.f32.xlu0 %v3089_v1  ;;  %918 = vadd.xlane.f32.xlu1 %v917_v23  ;;  %v3113_v23 = vsel %vm655_vm0, %v1134_v33, 2147483647  ;;  %v828_v45 = vmul.f32 1.442695, %v774_v17  ;;  %2158 = vpow2.f32 %v842_v24  ;;  %v776_v17 = vsub.f32 %v2671_v50, %v3018_v39 }
 0x2dc   :  { %3882 = vst [vmem:[#allocation94_spill] sm:$0xff] %v3113_v23  ;;  %v1560_v33 = vshra.s32 %v3113_v23, 16  ;;  %v902_v23 = vsel %vm655_vm0, %v2153_v7, 0.0  ;;  %v3145_v53 = vcvt.s32.f32 %v1515_v43  ;;  %v3149_v24 = vsel %vm655_vm0, %v1133_v36, 2147483647 }
 0x2dd   :  { %2160 = vpow2.f32 %v828_v45  ;;  %v1135_v45 = vsel %vm1103_vm1, %v2712_v8, 15 }
 0x2de   :  { %v3136_v14 = vcvt.s32.f32 %v1560_v33  ;;  %v832_v33 = vmul.f32 1.442695, %v776_v17  ;;  %v3166_v17 = vsel %vm655_vm0, %v1135_v45, 2147483647 }
 0x2df   :  { %897 = vadd.xlane.f32.xlu0 %v896_v6  ;;  %1533 = vmin.xlane.f32.xlu1 %v3108_v11  ;;  %v783_v6 = vsub.f32 %v2698_v63, %v3110_v42  ;;  %v3139_v11 = vsel %vm655_vm0, %v1136_v34, 2147483647  ;;  %v1545_v34 = vshra.s32 %v3149_v24, 16  ;;  %3885 = vst [vmem:[#allocation97_spill] sm:$0xff] %v3166_v17 }
 0x2e0   :  { %3883 = vst [vmem:[#allocation95_spill] sm:$0xff] %v3139_v11  ;;  %v1590_v7 = vshra.s32 %v3139_v11, 16 }
 0x2e1   :  { %v846_v60 = vmul.f32 1.442695, %v783_v6 }
 0x2e3   :  { %1488 = vmin.xlane.f32.xlu0 %v3119_v57  ;;  %924 = vadd.xlane.f32.xlu1 %v923_v31  ;;  %v2155_v31 = vpop.eup %2154  ;;  %2162 = vpow2.f32 %v846_v60  ;;  %v3157_v60 = vcvt.s32.f32 %v1590_v7 }
 0x2e4   :  { %v929_v6 = vsel %vm655_vm0, %v2155_v31, 0.0  ;;  %2164 = vpow2.f32 %v832_v33  ;;  %v778_v31 = vsub.f32 %v2681_v54, %v3047_v15  ;;  %v780_v33 = vsub.f32 %v2691_v59, %v3075_v16 }
 0x2e5   :  { %3884 = vst [vmem:[#allocation96_spill] sm:$0xff] %v3157_v60 }
 0x2e7   :  { %903 = vadd.xlane.f32.xlu0 %v902_v23  ;;  %1563 = vmin.xlane.f32.xlu1 %v3136_v14  ;;  %v2157_v23 = vpop.eup %2156 }
 0x2e8   :  { %v908_v43 = vsel %vm655_vm0, %v2157_v23, 0.0  ;;  %v2159_v36 = vpop.eup %2158 }
 0x2e9   :  { %v2161_v58 = vpop.eup %2160  ;;  %v935_v7 = vsel %vm655_vm0, %v2159_v36, 0.0  ;;  %v840_v36 = vmul.f32 1.442695, %v780_v33 }
 0x2ea   :  { %v914_v19 = vsel %vm655_vm0, %v2161_v58, 0.0 }
 0x2eb   :  { %1518 = vmin.xlane.f32.xlu0 %v3145_v53  ;;  %930 = vadd.xlane.f32.xlu1 %v929_v6  ;;  %v3163_v6 = vcvt.s32.f32 %v1545_v34  ;;  %v1575_v34 = vshra.s32 %v3166_v17, 16 }
 0x2ed   :  { %v2163_v23 = vpop.eup %2162  ;;  %v3180_v63 = vcvt.s32.f32 %v1575_v34 }
 0x2ee   :  { %v941_v45 = vsel %vm655_vm0, %v2163_v23, 0.0  ;;  %v2165_v42 = vpop.eup %2164 }
 0x2ef   :  { %909 = vadd.xlane.f32.xlu0 %v908_v43  ;;  %1593 = vmin.xlane.f32.xlu1 %v3157_v60  ;;  %v836_v43 = vmul.f32 1.442695, %v778_v31  ;;  %3886 = vst [vmem:[#allocation98_spill] sm:$0xff] %v3180_v63  ;;  %v3183_v31 = vsel %vm655_vm0, %v1137_v21, 2147483647  ;;  %v920_v8 = vsel %vm655_vm0, %v2165_v42, 0.0 }
 0x2f0   :  { %3887 = vst [vmem:[#allocation99_spill] sm:$0xff] %v3183_v31 }
 0x2f1   :  { %2166 = vpow2.f32 %v836_v43 }
 0x2f2   :  { %2168 = vpow2.f32 %v840_v36  ;;  %v1154_v36 = vand.u32 65535, %v2727_v12  ;;  %v1259_v12 = vand.u32 65535, %v2773_v62 }
 0x2f3   :  { %1548 = vmin.xlane.f32.xlu0 %v3163_v6  ;;  %936 = vadd.xlane.f32.xlu1 %v935_v7  ;;  %v782_v7 = vsub.f32 %v2701_v0, %v3105_v10 }
 0x2f5   :  { %v844_v58 = vmul.f32 1.442695, %v782_v7 }
 0x2f7   :  { %915 = vadd.xlane.f32.xlu0 %v914_v19  ;;  %942 = vadd.xlane.f32.xlu1 %v941_v45  ;;  %v1605_v19 = vshra.s32 %v3183_v31, 16  ;;  %2170 = vpow2.f32 %v844_v58  ;;  %v1156_v58 = vcvt.s32.f32 %v1154_v36  ;;  %v1184_v36 = vand.u32 65535, %v2765_v56 }
 0x2f8   :  { %v1304_v56 = vand.u32 65535, %v2796_v37  ;;  %v3891_v37 = vld [vmem:[#allocation57_spill] sm:$0xff] }
 0x2f9   :  { %v3188_v23 = vcvt.s32.f32 %v1605_v19  ;;  %v1274_v19 = vand.u32 65535, %v2735_v47 }
 0x2fb   :  { %1578 = vmin.xlane.f32.xlu0 %v3180_v63  ;;  %3888 = vst [vmem:[#allocation100_spill] sm:$0xff] %v3188_v23  ;;  %v2167_v43 = vpop.eup %2166  ;;  %v3924_v63 = vld [vmem:[#allocation51_spill] sm:$0xff] }
 0x2fc   :  { %v926_v33 = vsel %vm655_vm0, %v2167_v43, 0.0  ;;  %v2169_v21 = vpop.eup %2168 }
 0x2fd   :  { %v932_v34 = vsel %vm655_vm0, %v2169_v21, 0.0  ;;  %v1139_v21 = vand.u32 65535, %v2753_v44 }
 0x2ff   :  { %921 = vadd.xlane.f32.xlu0 %v920_v8  ;;  %v1141_v47 = vcvt.s32.f32 %v1139_v21 }
 0x301   :  { %v2171_v45 = vpop.eup %2170 }
 0x302   :  { %v938_v7 = vsel %vm655_vm0, %v2171_v45, 0.0 }
 0x303   :  { %1608 = vmin.xlane.f32.xlu0 %v3188_v23 }
 0x307   :  { %927 = vadd.xlane.f32.xlu0 %v926_v33  ;;  %v1276_v33 = vcvt.s32.f32 %v1274_v19  ;;  %v1186_v19 = vcvt.s32.f32 %v1184_v36 }
 0x30b   :  { %933 = vadd.xlane.f32.xlu0 %v932_v34 }
 0x30f   :  { %939 = vadd.xlane.f32.xlu0 %v938_v7 }
 0x310   :  { %v3195_v42 = vpop.xlane.xlu0 %1158 }
 0x311   :  { %vm1160_vm3 = vcmp.eq.f32.partialorder %v2737_v25, %v3195_v42  ;;  %v1289_v25 = vand.u32 65535, %v2793_v30 }
 0x312   :  { %v1161_v8 = vsel %vm1160_vm3, %v1156_v58, inf  ;;  %v1261_v58 = vcvt.s32.f32 %v1259_v12 }
 0x313   :  { %1162 = vmin.xlane.f32.xlu1 %v1161_v8  ;;  %v1291_v30 = vcvt.s32.f32 %v1289_v25 }
 0x314   :  { %v3200_v43 = vpop.xlane.xlu0 %1278 }
 0x315   :  { %vm1280_vm4 = vcmp.eq.f32.partialorder %v2756_v46, %v3200_v43 }
 0x316   :  { %v1281_v34 = vsel %vm1280_vm4, %v1276_v33, inf  ;;  %v3889_v33 = vld [vmem:[#allocation55_spill] sm:$0xff] }
 0x317   :  { %1282 = vmin.xlane.f32.xlu1 %v1281_v34  ;;  %v1169_v21 = vand.u32 65535, %v3889_v33  ;;  %v1306_v34 = vcvt.s32.f32 %v1304_v56  ;;  %v1334_v56 = vand.u32 65535, %v2856_v5 }
 0x318   :  { %v3206_v45 = vpop.xlane.xlu0 %1143  ;;  %v3210_v7 = vpop.xlane.xlu1 %1263 }
 0x319   :  { %vm1145_vm5 = vcmp.eq.f32.partialorder %v2777_v4, %v3206_v45  ;;  %vm1265_vm6 = vcmp.eq.f32.partialorder %v2784_v22, %v3210_v7  ;;  %v1336_v5 = vcvt.s32.f32 %v1334_v56 }
 0x31a   :  { %v1146_v44 = vsel %vm1145_vm5, %v1141_v47, inf  ;;  %v1266_v46 = vsel %vm1265_vm6, %v1261_v58, inf  ;;  %v1319_v58 = vand.u32 65535, %v2840_v27 }
 0x31b   :  { %1147 = vmin.xlane.f32.xlu1 %v1146_v44  ;;  %1267 = vmin.xlane.f32.xlu0 %v1266_v46  ;;  %v3892_v46 = vld [vmem:[#allocation59_spill] sm:$0xff] }
 0x31c   :  { %v3216_v62 = vpop.xlane.xlu0 %1188  ;;  %v3219_v8 = vpop.xlane.xlu1 %1293 }
 0x31d   :  { %vm1190_vm7 = vcmp.eq.f32.partialorder %v2804_v48, %v3216_v62  ;;  %vm1295_vm8 = vcmp.eq.f32.partialorder %v2807_v3, %v3219_v8  ;;  %v1214_v48 = vand.u32 65535, %v2830_v20  ;;  %v1171_v3 = vcvt.s32.f32 %v1169_v21 }
 0x31e   :  { %v1191_v4 = vsel %vm1190_vm7, %v1186_v19, inf  ;;  %v1296_v22 = vsel %vm1295_vm8, %v1291_v30, inf  ;;  %v1321_v20 = vcvt.s32.f32 %v1319_v58  ;;  %v1199_v21 = vand.u32 65535, %v2869_v26  ;;  %v3895_v26 = vld [vmem:[#allocation65_spill] sm:$0xff] }
 0x31f   :  { %1192 = vmin.xlane.f32.xlu1 %v1191_v4  ;;  %1297 = vmin.xlane.f32.xlu0 %v1296_v22  ;;  %v1216_v4 = vcvt.s32.f32 %v1214_v48 }
 0x320   :  { %v3226_v12 = vpop.xlane.xlu0 %1308  ;;  %v3228_v47 = vpop.xlane.xlu1 %852 }
 0x321   :  { %3890 = vst [vmem:[#allocation55_spill] sm:$0xff] %v3228_v47  ;;  %vm1310_vm9 = vcmp.eq.f32.partialorder %v3891_v37, %v3226_v12 }
 0x322   :  { %v1311_v36 = vsel %vm1310_vm9, %v1306_v34, inf }
 0x323   :  { %1312 = vmin.xlane.f32.xlu1 %v1311_v36  ;;  %v3893_v36 = vld [vmem:[#allocation62_spill] sm:$0xff] }
 0x324   :  { %v3233_v25 = vpop.xlane.xlu0 %1173  ;;  %v3236_v44 = vpop.xlane.xlu1 %876 }
 0x325   :  { %vm1175_vm10 = vcmp.eq.f32.partialorder %v3892_v46, %v3233_v25 }
 0x326   :  { %v1176_v19 = vsel %vm1175_vm10, %v1171_v3, inf  ;;  %v1201_v3 = vcvt.s32.f32 %v1199_v21  ;;  %v1244_v21 = vand.u32 65535, %v2912_v35  ;;  %v1229_v35 = vand.u32 65535, %v2942_v18 }
 0x327   :  { %1177 = vmin.xlane.f32.xlu1 %v1176_v19 }
 0x328   :  { %v3241_v30 = vpop.xlane.xlu0 %1218  ;;  %v3243_v22 = vpop.xlane.xlu1 %1323 }
 0x329   :  { %vm1220_vm11 = vcmp.eq.f32.partialorder %v2861_v55, %v3241_v30  ;;  %vm1325_vm12 = vcmp.eq.f32.partialorder %v2866_v52, %v3243_v22  ;;  %v3894_v52 = vld [vmem:[#allocation63_spill] sm:$0xff] }
 0x32a   :  { %v1221_v27 = vsel %vm1220_vm11, %v1216_v4, inf  ;;  %v1326_v33 = vsel %vm1325_vm12, %v1321_v20, inf  ;;  %v1349_v58 = vand.u32 65535, %v3894_v52  ;;  %vm1768_vm12 = vcmask 7168  }
 0x32b   :  { %1222 = vmin.xlane.f32.xlu1 %v1221_v27  ;;  %1327 = vmin.xlane.f32.xlu0 %v1326_v33  ;;  %v3897_v27 = vld [vmem:[#allocation67_spill] sm:$0xff] }
 0x32c   :  { %v3250_v34 = vpop.xlane.xlu0 %1338  ;;  %v3252_v37 = vpop.xlane.xlu1 %858  ;;  %v1351_v20 = vcvt.s32.f32 %v1349_v58 }
 0x32d   :  { %vm1340_vm13 = vcmp.eq.f32.partialorder %v3893_v36, %v3250_v34 }
 0x32e   :  { %v1341_v48 = vsel %vm1340_vm13, %v1336_v5, inf  ;;  %vm1771_vm13 = vcmask 15360  }
 0x32f   :  { %1342 = vmin.xlane.f32.xlu1 %v1341_v48  ;;  %v1364_v48 = vand.u32 65535, %v2924_v51  ;;  %v3898_v51 = vld [vmem:[#allocation70_spill] sm:$0xff] }
 0x330   :  { %v3256_v55 = vpop.xlane.xlu0 %1203  ;;  %v3259_v46 = vpop.xlane.xlu1 %882 }
 0x331   :  { %vm1205_vm14 = vcmp.eq.f32.partialorder %v3895_v26, %v3256_v55  ;;  %v1379_v26 = vand.u32 65535, %v2930_v13  ;;  %v3899_v13 = vld [vmem:[#allocation71_spill] sm:$0xff] }
 0x332   :  { %v1206_v19 = vsel %vm1205_vm14, %v1201_v3, inf  ;;  %v1246_v3 = vcvt.s32.f32 %v1244_v21 }
 0x333   :  { %1207 = vmin.xlane.f32.xlu1 %v1206_v19  ;;  %v1381_v21 = vcvt.s32.f32 %v1379_v26  ;;  %v1409_v26 = vand.u32 65535, %v2973_v40 }
 0x334   :  { %v3263_v56 = vpop.xlane.xlu0 %849  ;;  %v3265_v4 = vpop.xlane.xlu1 %1353 }
 0x335   :  { %3896 = vst [vmem:[#allocation57_spill] sm:$0xff] %v3263_v56  ;;  %vm1355_vm15 = vcmp.eq.f32.partialorder %v3897_v27, %v3265_v4  ;;  %v1366_v27 = vcvt.s32.f32 %v1364_v48  ;;  %v3900_v48 = vld [vmem:[#allocation73_spill] sm:$0xff] }
 0x336   :  { %v1356_v33 = vsel %vm1355_vm15, %v1351_v20, inf  ;;  %vm1774_vm15 = vcmask 23552  }
 0x337   :  { %1357 = vmin.xlane.f32.xlu0 %v1356_v33 }
 0x338   :  { %v874_v5 = vpop.xlane.xlu0 %873  ;;  %v3270_v36 = vpop.xlane.xlu1 %864 }
 0x339   :  { %2172 = vlog2.f32 %v874_v5  ;;  %v1454_v5 = vand.u32 65535, %v3064_v32  ;;  %v3907_v32 = vld [vmem:[#allocation16_spill] sm:$0xff] }
 0x33a   :  { %2174 = vlog2.f32 %v3236_v44 }
 0x33c   :  { %v3273_v52 = vpop.xlane.xlu0 %1248  ;;  %v3276_v19 = vpop.xlane.xlu1 %888 }
 0x33d   :  { %vm1250_vm1 = vcmp.eq.f32.partialorder %v2933_v9, %v3273_v52 }
 0x33e   :  { %v1251_v58 = vsel %vm1250_vm1, %v1246_v3, inf  ;;  %v1231_v3 = vcvt.s32.f32 %v1229_v35  ;;  %v1411_v35 = vcvt.s32.f32 %v1409_v26  ;;  %vm1777_vm1 = vcmask 31744  }
 0x33f   :  { %1252 = vmin.xlane.f32.xlu1 %v1251_v58 }
 0x340   :  { %v3281_v20 = vpop.xlane.xlu0 %1368  ;;  %v3283_v33 = vpop.xlane.xlu1 %1383 }
 0x341   :  { %vm1370_vm2 = vcmp.eq.f32.partialorder %v3898_v51, %v3281_v20  ;;  %vm1385_vm3 = vcmp.eq.f32.partialorder %v3899_v13, %v3283_v33 }
 0x342   :  { %v1371_v47 = vsel %vm1370_vm2, %v1366_v27, inf  ;;  %v1386_v56 = vsel %vm1385_vm3, %v1381_v21, inf  ;;  %v1394_v27 = vand.u32 65535, %v2983_v49  ;;  %vm1780_vm2 = vcmask 39936  }
 0x343   :  { %1372 = vmin.xlane.f32.xlu1 %v1371_v47  ;;  %1387 = vmin.xlane.f32.xlu0 %v1386_v56  ;;  %vm1783_vm3 = vcmask 48128  }
 0x344   :  { %v3289_v9 = vpop.xlane.xlu0 %1233  ;;  %v3291_v18 = vpop.xlane.xlu1 %870 }
 0x345   :  { %vm1235_vm4 = vcmp.eq.f32.partialorder %v3900_v48, %v3289_v9  ;;  %v1439_v48 = vand.u32 65535, %v2998_v28 }
 0x346   :  { %v1236_v58 = vsel %vm1235_vm4, %v1231_v3, inf  ;;  %v1396_v3 = vcvt.s32.f32 %v1394_v27  ;;  %v3903_v27 = vld [vmem:[#allocation80_spill] sm:$0xff]  ;;  %vm1786_vm4 = vcmask 56320  }
 0x347   :  { %1237 = vmin.xlane.f32.xlu1 %v1236_v58  ;;  %v3902_v58 = vld [vmem:[#allocation77_spill] sm:$0xff]  ;;  %v1441_v59 = vcvt.s32.f32 %v1439_v48 }
 0x348   :  { %v3295_v0 = vpop.xlane.xlu0 %855  ;;  %v3298_v51 = vpop.xlane.xlu1 %894 }
 0x349   :  { %2176 = vlog2.f32 %v3295_v0 }
 0x34c   :  { %v3301_v47 = vpop.xlane.xlu0 %879  ;;  %v3303_v56 = vpop.xlane.xlu1 %1413 }
 0x34d   :  { %vm1415_vm5 = vcmp.eq.f32.partialorder %v2995_v61, %v3303_v56  ;;  %2178 = vlog2.f32 %v3301_v47  ;;  %v3922_v47 = vld [vmem:[#allocation50_spill] sm:$0xff] }
 0x34e   :  { %v1416_v21 = vsel %vm1415_vm5, %v1411_v35, inf  ;;  %v1424_v35 = vand.u32 65535, %v3903_v27  ;;  %2180 = vlog2.f32 %v3252_v37 }
 0x34f   :  { %1417 = vmin.xlane.f32.xlu0 %v1416_v21  ;;  %2182 = vlog2.f32 %v3259_v46 }
 0x350   :  { %v3307_v13 = vpop.xlane.xlu0 %1398  ;;  %v3310_v40 = vpop.xlane.xlu1 %900 }
 0x351   :  { %3901 = vst [vmem:[#allocation59_spill] sm:$0xff] %v3310_v40  ;;  %vm1400_vm6 = vcmp.eq.f32.partialorder %v3902_v58, %v3307_v13 }
 0x352   :  { %v1401_v49 = vsel %vm1400_vm6, %v1396_v3, inf  ;;  %v1426_v3 = vcvt.s32.f32 %v1424_v35  ;;  %v3906_v35 = vld [vmem:[#allocation49_spill] sm:$0xff]  ;;  %vm1789_vm6 = vcmask 64512  }
 0x353   :  { %1402 = vmin.xlane.f32.xlu1 %v1401_v49 }
 0x354   :  { %v3314_v10 = vpop.xlane.xlu0 %861  ;;  %v3316_v26 = vpop.xlane.xlu1 %1443 }
 0x355   :  { %vm1445_vm7 = vcmp.eq.f32.partialorder %v3021_v38, %v3316_v26  ;;  %2184 = vlog2.f32 %v3314_v10  ;;  %v1345_v10 = vcvt.f32.s32 %v3250_v34  ;;  %v1330_v34 = vcvt.f32.s32 %v3243_v22 }
 0x356   :  { %v1446_v61 = vsel %vm1445_vm7, %v1441_v59, inf  ;;  %v2173_v59 = vpop.eup %2172  ;;  %vm1792_vm7 = vcmask 72704  }
 0x357   :  { %1447 = vmin.xlane.f32.xlu0 %v1446_v61  ;;  %v961_v61 = vmul.f32 0.6931472, %v2173_v59  ;;  %v2175_v44 = vpop.eup %2174 }
 0x358   :  { %v3321_v28 = vpop.xlane.xlu0 %885  ;;  %v3323_v21 = vpop.xlane.xlu1 %906  ;;  %v963_v15 = vmul.f32 0.6931472, %v2175_v44  ;;  %v3914_v44 = vld [vmem:[#allocation81_spill] sm:$0xff] }
 0x359   :  { %3904 = vst [vmem:[#allocation62_spill] sm:$0xff] %v3323_v21  ;;  %v1016_v16 = vadd.f32 %v961_v61, %v3906_v35  ;;  %v3909_v61 = vld [vmem:[#allocation44_spill] sm:$0xff]  ;;  %2186 = vlog2.f32 %v3321_v28  ;;  %v1300_v28 = vcvt.f32.s32 %v3219_v8 }
 0x35a   :  { %v1017_v35 = vadd.f32 %v963_v15, %v3909_v61  ;;  %2188 = vlog2.f32 %v3270_v36 }
 0x35b   :  { %v1048_v59 = vsub.f32 %v3907_v32, %v1016_v16  ;;  %2190 = vlog2.f32 %v3276_v19  ;;  %v3936_v19 = vld [vmem:[#allocation54_spill] sm:$0xff] }
 0x35c   :  { %v3325_v58 = vpop.xlane.xlu0 %1428  ;;  %v3329_v48 = vpop.xlane.xlu1 %1473 }
 0x35d   :  { %vm1430_vm8 = vcmp.eq.f32.partialorder %v3043_v41, %v3325_v58  ;;  %v1456_v41 = vcvt.s32.f32 %v1454_v5  ;;  %vm1475_vm10 = vcmp.eq.f32.partialorder %v3049_v2, %v3329_v48  ;;  %v3919_v2 = vld [vmem:[#allocation90_spill] sm:$0xff] }
 0x35e   :  { %v1431_v49 = vsel %vm1430_vm8, %v1426_v3, inf  ;;  %vm1795_vm8 = vcmask 80896  }
 0x35f   :  { %1432 = vmin.xlane.f32.xlu1 %v1431_v49 }
 0x360   :  { %v3331_v38 = vpop.xlane.xlu0 %867  ;;  %v3337_v40 = vpop.xlane.xlu1 %912 }
 0x361   :  { %3905 = vst [vmem:[#allocation63_spill] sm:$0xff] %v3337_v40  ;;  %2192 = vlog2.f32 %v3331_v38 }
 0x364   :  { %v3334_v27 = vpop.xlane.xlu0 %891  ;;  %v3344_v49 = vpop.xlane.xlu1 %1503 }
 0x365   :  { %2194 = vlog2.f32 %v3334_v27 }
 0x366   :  { %2196 = vlog2.f32 %v3291_v18 }
 0x367   :  { %2198 = vlog2.f32 %v3298_v51 }
 0x368   :  { %v3340_v54 = vpop.xlane.xlu0 %1458  ;;  %v3348_v50 = vpop.xlane.xlu1 %918 }
 0x369   :  { %vm1460_vm9 = vcmp.eq.f32.partialorder %v3089_v1, %v3340_v54  ;;  %3908 = vst [vmem:[#allocation65_spill] sm:$0xff] %v3348_v50  ;;  %v3911_v1 = vld [vmem:[#allocation13_spill] sm:$0xff]  ;;  %v1469_v50 = vand.u32 65535, %v3914_v44  ;;  %v2177_v44 = vpop.eup %2176 }
 0x36a   :  { %v1461_v3 = vsel %vm1460_vm9, %v1456_v41, inf  ;;  %v1049_v41 = vsub.f32 %v3911_v1, %v1017_v35  ;;  %v949_v23 = vmul.f32 0.6931472, %v2177_v44  ;;  %v3923_v44 = vld [vmem:[#allocation18_spill] sm:$0xff] }
 0x36b   :  { %1462 = vmin.xlane.f32.xlu1 %v1461_v3  ;;  %v1471_v35 = vcvt.s32.f32 %v1469_v50 }
 0x36c   :  { %v3351_v39 = vpop.xlane.xlu0 %897  ;;  %v3353_v5 = vpop.xlane.xlu1 %1533 }
 0x36d   :  { %1644 = vrot.lane.b32.xlu0 %v1048_v59, %s2311_s4  ;;  %3910 = vst [vmem:[#allocation67_spill] sm:$0xff] %v3351_v39  ;;  %v1476_v1 = vsel %vm1475_vm10, %v1471_v35, inf  ;;  %v1010_v35 = vadd.f32 %v949_v23, %v3922_v47  ;;  %v3926_v23 = vld [vmem:[#allocation19_spill] sm:$0xff] }
 0x370   :  { %v3357_v3 = vpop.xlane.xlu0 %1488  ;;  %v3359_v16 = vpop.xlane.xlu1 %924 }
 0x371   :  { %3912 = vst [vmem:[#allocation70_spill] sm:$0xff] %v3359_v16  ;;  %vm1490_vm11 = vcmp.eq.f32.partialorder %v3119_v57, %v3357_v3 }
 0x374   :  { %v3361_v32 = vpop.xlane.xlu0 %903  ;;  %v3363_v59 = vpop.xlane.xlu1 %1563 }
 0x375   :  { %3913 = vst [vmem:[#allocation71_spill] sm:$0xff] %v3361_v32  ;;  %v1484_v32 = vand.u32 65535, %v3919_v2  ;;  %v1042_v2 = vsub.f32 %v3923_v44, %v1010_v35  ;;  %v3928_v35 = vld [vmem:[#allocation46_spill] sm:$0xff] }
 0x377   :  { %v1486_v21 = vcvt.s32.f32 %v1484_v32 }
 0x378   :  { %v3368_v15 = vpop.xlane.xlu0 %1518  ;;  %v3370_v61 = vpop.xlane.xlu1 %930 }
 0x379   :  { %3915 = vst [vmem:[#allocation73_spill] sm:$0xff] %v3370_v61  ;;  %v2179_v61 = vpop.eup %2178  ;;  %vm1520_vm5 = vcmp.eq.f32.partialorder %v3145_v53, %v3368_v15 }
 0x37a   :  { %v2181_v57 = vpop.eup %2180 }
 0x37b   :  { %v951_v32 = vmul.f32 0.6931472, %v2181_v57  ;;  %v2183_v46 = vpop.eup %2182 }
 0x37c   :  { %1646 = vrot.lane.b32.xlu1 %v1049_v41, %s2311_s4  ;;  %v3373_v41 = vpop.xlane.xlu0 %909  ;;  %v3376_v39 = vpop.xlane.xlu1 %1593  ;;  %v967_v44 = vmul.f32 0.6931472, %v2183_v46 }
 0x37d   :  { %3916 = vst [vmem:[#allocation77_spill] sm:$0xff] %v3373_v41  ;;  %3917 = vst [vmem:[#allocation80_spill] sm:$0xff] %v3376_v39  ;;  %v3930_v39 = vld [vmem:[#allocation15_spill] sm:$0xff] }
 0x380   :  { %v3378_v16 = vpop.xlane.xlu0 %1548  ;;  %v3380_v40 = vpop.xlane.xlu1 %936 }
 0x381   :  { %3918 = vst [vmem:[#allocation49_spill] sm:$0xff] %v3380_v40  ;;  %v1491_v40 = vsel %vm1490_vm11, %v1486_v21, inf  ;;  %v1195_v21 = vcvt.f32.s32 %v3216_v62  ;;  %v1150_v62 = vcvt.f32.s32 %v3206_v45  ;;  %vm1550_vm10 = vcmp.eq.f32.partialorder %v3163_v6, %v3378_v16 }
 0x382   :  { %v1480_v6 = vcvt.f32.s32 %v3329_v48  ;;  %vm1798_vm11 = vcmask 89088  }
 0x383   :  { %v1196_v41 = vshll.u32 %v1195_v21, 16 }
 0x384   :  { %v3384_v50 = vpop.xlane.xlu0 %915  ;;  %v3388_v0 = vpop.xlane.xlu1 %942 }
 0x385   :  { %3920 = vst [vmem:[#allocation16_spill] sm:$0xff] %v3384_v50  ;;  %3921 = vst [vmem:[#allocation44_spill] sm:$0xff] %v3388_v0 }
 0x388   :  { %v3394_v17 = vpop.xlane.xlu0 %1578 }
 0x389   :  { %3925 = vst [vmem:[#allocation13_spill] sm:$0xff] %v3394_v17 }
 0x38c   :  { %1477 = vmin.xlane.f32.xlu0 %v1476_v1  ;;  %v965_v1 = vmul.f32 0.6931472, %v2179_v61  ;;  %v3400_v47 = vpop.xlane.xlu0 %921 }
 0x38d   :  { %3927 = vst [vmem:[#allocation81_spill] sm:$0xff] %v3400_v47 }
 0x38e   :  { %v1018_v37 = vadd.f32 %v965_v1, %v3924_v63  ;;  %v1165_v63 = vcvt.f32.s32 %v3195_v42  ;;  %v1011_v1 = vadd.f32 %v951_v32, %v3928_v35  ;;  %v1180_v32 = vcvt.f32.s32 %v3233_v25 }
 0x390   :  { %v1050_v61 = vsub.f32 %v3926_v23, %v1018_v37  ;;  %v1166_v50 = vshll.u32 %v1165_v63, 16  ;;  %v3406_v37 = vpop.xlane.xlu0 %1608  ;;  %v3929_v23 = vld [vmem:[#allocation48_spill] sm:$0xff]  ;;  %v1043_v11 = vsub.f32 %v3930_v39, %v1011_v1  ;;  %v3931_v63 = vld [vmem:[#allocation17_spill] sm:$0xff]  ;;  %v1225_v39 = vcvt.f32.s32 %v3241_v30 }
 0x391   :  { %v1019_v47 = vadd.f32 %v967_v44, %v3929_v23  ;;  %v1210_v23 = vcvt.f32.s32 %v3256_v55 }
 0x393   :  { %v1051_v21 = vsub.f32 %v3931_v63, %v1019_v47 }
 0x394   :  { %v3416_v46 = vpop.xlane.xlu0 %927 }
 0x3a0   :  { %v1163_v31 = vpop.xlane.xlu1 %1162  ;;  %1492 = vmin.xlane.f32.xlu1 %v1491_v40 }
 0x3a2   :  { %1620 = vrot.lane.b32.xlu0 %v1042_v2, %s2312_s30  ;;  %v1164_v2 = vcvt.f32.s32 %v1163_v31 }
 0x3a4   :  { %v3397_v0 = vpop.xlane.xlu1 %1282 }
 0x3a6   :  { %1652 = vrot.lane.b32.xlu0 %v1050_v61, %s2313_s9  ;;  %v1167_v61 = vadd.s32 %v1166_v50, %v1164_v2  ;;  %v1151_v50 = vshll.u32 %v1150_v62, 16  ;;  %v1226_v2 = vshll.u32 %v1225_v39, 16  ;;  %v3932_v62 = vld [vmem:[#allocation84_spill] sm:$0xff] }
 0x3a7   :  { %v1499_v30 = vand.u32 65535, %v3932_v62 }
 0x3a8   :  { %v1148_v40 = vpop.xlane.xlu1 %1147 }
 0x3a9   :  { %v1501_v39 = vcvt.s32.f32 %v1499_v30 }
 0x3ac   :  { %v1193_v17 = vpop.xlane.xlu1 %1192 }
 0x3ad   :  { %v1194_v57 = vcvt.f32.s32 %v1193_v17  ;;  %v1149_v17 = vcvt.f32.s32 %v1148_v40 }
 0x3af   :  { %v1197_v60 = vadd.s32 %v1196_v41, %v1194_v57  ;;  %v1181_v41 = vshll.u32 %v1180_v32, 16  ;;  %v1152_v45 = vadd.s32 %v1151_v50, %v1149_v17  ;;  %v1211_v17 = vshll.u32 %v1210_v23, 16 }
 0x3b0   :  { %v3410_v42 = vpop.xlane.xlu1 %1312  ;;  %v1284_v23 = vcvt.f32.s32 %v3397_v0 }
 0x3b1   :  { %v1770_v31 = vsel %vm1768_vm12, %v1167_v61, %v1197_v60  ;;  %1622 = vrot.lane.b32.xlu1 %v1043_v11, %s2312_s30  ;;  %v3421_v60 = vpop.xlane.xlu0 %933 }
 0x3b4   :  { %v1178_v35 = vpop.xlane.xlu1 %1177 }
 0x3b5   :  { %v1179_v1 = vcvt.f32.s32 %v1178_v35  ;;  %1654 = vrot.lane.b32.xlu1 %v1051_v21, %s2313_s9  ;;  %v3426_v32 = vpop.xlane.xlu0 %939  ;;  %v3933_v35 = vld [vmem:[#allocation87_spill] sm:$0xff] }
 0x3b6   :  { %vm1505_vm14 = vcmp.eq.f32.partialorder %v3933_v35, %v3344_v49  ;;  %v1346_v35 = vshll.u32 %v1345_v10, 16 }
 0x3b7   :  { %v1182_v44 = vadd.s32 %v1181_v41, %v1179_v1  ;;  %v1506_v55 = vsel %vm1505_vm14, %v1501_v39, inf }
 0x3b8   :  { %v1223_v25 = vpop.xlane.xlu1 %1222 }
 0x3b9   :  { %v1769_v11 = vsel %vm1768_vm12, %v1152_v45, %v1182_v44  ;;  %v1224_v57 = vcvt.f32.s32 %v1223_v25  ;;  %v3430_v50 = vpop.xlane.xlu0 %1267  ;;  %v1285_v45 = vcvt.f32.s32 %v3200_v43  ;;  %v1270_v44 = vcvt.f32.s32 %v3210_v7 }
 0x3ba   :  { %v1255_v25 = vcvt.f32.s32 %v3273_v52  ;;  %v1314_v7 = vcvt.f32.s32 %v3410_v42  ;;  %vm1565_vm12 = vcmp.eq.f32.partialorder %v3136_v14, %v3363_v59 }
 0x3bb   :  { %v1227_v40 = vadd.s32 %v1226_v2, %v1224_v57  ;;  %v1315_v57 = vcvt.f32.s32 %v3226_v12  ;;  %v1271_v43 = vshll.u32 %v1270_v44, 16  ;;  %v2185_v12 = vpop.eup %2184 }
 0x3bc   :  { %v1343_v47 = vpop.xlane.xlu1 %1342  ;;  %v1256_v30 = vshll.u32 %v1255_v25, 16  ;;  %v2187_v22 = vpop.eup %2186 }
 0x3bd   :  { %v1773_v61 = vsel %vm1771_vm13, %v1770_v31, %v1227_v40  ;;  %v1514_v31 = vand.u32 65535, %v3127_v29  ;;  %v3440_v2 = vpop.xlane.xlu0 %1297  ;;  %v1375_v40 = vcvt.f32.s32 %v3281_v20 }
 0x3bf   :  { %v1516_v62 = vcvt.s32.f32 %v1514_v31  ;;  %v1376_v0 = vshll.u32 %v1375_v40, 16 }
 0x3c0   :  { %v1208_v63 = vpop.xlane.xlu1 %1207 }
 0x3c1   :  { %v1209_v21 = vcvt.f32.s32 %v1208_v63  ;;  %v1328_v52 = vpop.xlane.xlu0 %1327 }
 0x3c3   :  { %v1212_v41 = vadd.s32 %v1211_v17, %v1209_v21  ;;  %v1316_v17 = vshll.u32 %v1315_v57, 16  ;;  %v1344_v21 = vcvt.f32.s32 %v1343_v47  ;;  %v953_v47 = vmul.f32 0.6931472, %v2185_v12 }
 0x3c4   :  { %v1360_v57 = vcvt.f32.s32 %v3265_v4  ;;  %v969_v12 = vmul.f32 0.6931472, %v2187_v22 }
 0x3c5   :  { %v3433_v1 = vsel %vm1771_vm13, %v1769_v11, %v1212_v41  ;;  %1507 = vmin.xlane.f32.xlu0 %v1506_v55  ;;  %v1286_v11 = vshll.u32 %v1285_v45, 16  ;;  %v1240_v41 = vcvt.f32.s32 %v3289_v9  ;;  %v1317_v42 = vadd.s32 %v1316_v17, %v1314_v7  ;;  %v1358_v31 = vpop.xlane.xlu0 %1357  ;;  %v3934_v17 = vld [vmem:[#allocation53_spill] sm:$0xff] }
 0x3c6   :  { %v1347_v44 = vadd.s32 %v1346_v35, %v1344_v21  ;;  %v1012_v21 = vadd.f32 %v953_v47, %v3934_v17  ;;  %v1331_v35 = vshll.u32 %v1330_v34, 16 }
 0x3c7   :  { %v1287_v39 = vadd.s32 %v1286_v11, %v1284_v23  ;;  %v1390_v11 = vcvt.f32.s32 %v3283_v33  ;;  %v1241_v40 = vshll.u32 %v1240_v41, 16  ;;  %v1329_v33 = vcvt.f32.s32 %v1328_v52  ;;  %v3935_v52 = vld [vmem:[#allocation21_spill] sm:$0xff] }
 0x3c8   :  { %v1044_v34 = vsub.f32 %v3935_v52, %v1012_v21  ;;  %v3938_v21 = vld [vmem:[#allocation52_spill] sm:$0xff]  ;;  %v3941_v52 = vld [vmem:[#allocation22_spill] sm:$0xff] }
 0x3cc   :  { %v1253_v29 = vpop.xlane.xlu1 %1252 }
 0x3cd   :  { %v1254_v63 = vcvt.f32.s32 %v1253_v29 }
 0x3cf   :  { %v1257_v20 = vadd.s32 %v1256_v30, %v1254_v63  ;;  %v1299_v30 = vcvt.f32.s32 %v3440_v2  ;;  %v1301_v63 = vshll.u32 %v1300_v28, 16  ;;  %v1521_v2 = vsel %vm1520_vm5, %v1516_v62, inf  ;;  %v2189_v62 = vpop.eup %2188 }
 0x3d0   :  { %v1373_v55 = vpop.xlane.xlu1 %1372  ;;  %v1388_v7 = vpop.xlane.xlu0 %1387  ;;  %vm1738_vm5 = vcmask 523264  }
 0x3d1   :  { %v1776_v45 = vsel %vm1774_vm15, %v1773_v61, %v1257_v20  ;;  %v1374_v8 = vcvt.f32.s32 %v1373_v55  ;;  %v1269_v61 = vcvt.f32.s32 %v3430_v50  ;;  %v1359_v50 = vcvt.f32.s32 %v1358_v31 }
 0x3d2   :  { %v1779_v25 = vsel %vm1777_vm1, %v1776_v45, %v1287_v39  ;;  %v1389_v39 = vcvt.f32.s32 %v1388_v7  ;;  %v1391_v55 = vshll.u32 %v1390_v11, 16  ;;  %v1302_v28 = vadd.s32 %v1301_v63, %v1299_v30  ;;  %v2191_v30 = vpop.eup %2190 }
 0x3d3   :  { %v1782_v9 = vsel %vm1780_vm2, %v1779_v25, %v1317_v42  ;;  %v1377_v10 = vadd.s32 %v1376_v0, %v1374_v8  ;;  %v1361_v0 = vshll.u32 %v1360_v57, 16  ;;  %v1272_v41 = vadd.s32 %v1271_v43, %v1269_v61 }
 0x3d4   :  { %v1785_v23 = vsel %vm1783_vm3, %v1782_v9, %v1347_v44  ;;  %v1238_v29 = vpop.xlane.xlu1 %1237  ;;  %v1420_v42 = vcvt.f32.s32 %v3303_v56  ;;  %v1020_v31 = vadd.f32 %v969_v12, %v3936_v19  ;;  %v1332_v8 = vadd.s32 %v1331_v35, %v1329_v33  ;;  %v3937_v9 = vld [vmem:[#allocation23_spill] sm:$0xff] }
 0x3d5   :  { %v1788_v4 = vsel %vm1786_vm4, %v1785_v23, %v1377_v10  ;;  %v1239_v36 = vcvt.f32.s32 %v1238_v29  ;;  %v1362_v47 = vadd.s32 %v1361_v0, %v1359_v50  ;;  %v1392_v53 = vadd.s32 %v1391_v55, %v1389_v39  ;;  %v3940_v55 = vld [vmem:[#allocation20_spill] sm:$0xff] }
 0x3d6   :  { %v1421_v57 = vshll.u32 %v1420_v42, 16  ;;  %v1052_v10 = vsub.f32 %v3937_v9, %v1020_v31  ;;  %v955_v61 = vmul.f32 0.6931472, %v2189_v62  ;;  %v971_v33 = vmul.f32 0.6931472, %v2191_v30  ;;  %v3943_v62 = vld [vmem:[#allocation92_spill] sm:$0xff]  ;;  %v2193_v9 = vpop.eup %2192 }
 0x3d7   :  { %v1242_v20 = vadd.s32 %v1241_v40, %v1239_v36  ;;  %vm1535_vm9 = vcmp.eq.f32.partialorder %v3943_v62, %v3353_v5  ;;  %v3945_v30 = vld [vmem:[#allocation25_spill] sm:$0xff]  ;;  %v3955_v62 = vld [vmem:[#allocation96_spill] sm:$0xff] }
 0x3d8   :  { %v1013_v12 = vadd.f32 %v955_v61, %v3938_v21 }
 0x3d9   :  { %v1775_v45 = vsel %vm1774_vm15, %v3433_v1, %v1242_v20  ;;  %1522 = vmin.xlane.f32.xlu1 %v1521_v2  ;;  %v1405_v1 = vcvt.f32.s32 %v3307_v13  ;;  %v1450_v13 = vcvt.f32.s32 %v3316_v26 }
 0x3da   :  { %v1778_v43 = vsel %vm1777_vm1, %v1775_v45, %v1272_v41  ;;  %v3939_v41 = vld [vmem:[#allocation56_spill] sm:$0xff]  ;;  %v1045_v42 = vsub.f32 %v3940_v55, %v1013_v12  ;;  %v1481_v12 = vshll.u32 %v1480_v6, 16  ;;  %vm1801_vm1 = vcmask 97280  }
 0x3db   :  { %v1781_v44 = vsel %vm1780_vm2, %v1778_v43, %v1302_v28  ;;  %1628 = vrot.lane.b32.xlu0 %v1044_v34, %s2314_s10  ;;  %v1406_v7 = vshll.u32 %v1405_v1, 16  ;;  %v1451_v20 = vshll.u32 %v1450_v13, 16  ;;  %v1021_v39 = vadd.f32 %v971_v33, %v3939_v41  ;;  %v3947_v13 = vld [vmem:[#allocation27_spill] sm:$0xff] }
 0x3dc   :  { %v1784_v56 = vsel %vm1783_vm3, %v1781_v44, %v1332_v8  ;;  %v1418_v22 = vpop.xlane.xlu0 %1417  ;;  %v1435_v28 = vcvt.f32.s32 %v3325_v58  ;;  %v1465_v43 = vcvt.f32.s32 %v3340_v54  ;;  %v1544_v54 = vand.u32 65535, %v3149_v24 }
 0x3dd   :  { %v1787_v25 = vsel %vm1786_vm4, %v1784_v56, %v1362_v47  ;;  %v1419_v40 = vcvt.f32.s32 %v1418_v22  ;;  %v1053_v34 = vsub.f32 %v3941_v52, %v1021_v39  ;;  %v3942_v47 = vld [vmem:[#allocation88_spill] sm:$0xff]  ;;  %v1495_v52 = vcvt.f32.s32 %v3357_v3 }
 0x3de   :  { %v1790_v11 = vsel %vm1789_vm6, %v1787_v25, %v1392_v53  ;;  %v1436_v19 = vshll.u32 %v1435_v28, 16  ;;  %v1529_v44 = vand.u32 65535, %v3942_v47  ;;  %v1466_v58 = vshll.u32 %v1465_v43, 16  ;;  %v3949_v39 = vld [vmem:[#allocation64_spill] sm:$0xff]  ;;  %v3953_v47 = vld [vmem:[#allocation95_spill] sm:$0xff] }
 0x3df   :  { %v1422_v23 = vadd.s32 %v1421_v57, %v1419_v40  ;;  %1660 = vrot.lane.b32.xlu0 %v1052_v10, %s2315_s1  ;;  %v957_v10 = vmul.f32 0.6931472, %v2193_v9  ;;  %v3944_v40 = vld [vmem:[#allocation58_spill] sm:$0xff]  ;;  %v3959_v9 = vld [vmem:[#allocation97_spill] sm:$0xff]  ;;  %vm1732_vm2 = vcmask 261120   ;;  %vm1804_vm3 = vcmask 105472  }
 0x3e0   :  { %v1403_v29 = vpop.xlane.xlu1 %1402  ;;  %v1531_v25 = vcvt.s32.f32 %v1529_v44  ;;  %v1589_v44 = vand.u32 65535, %v3953_v47  ;;  %v3973_v47 = vld [vmem:[#allocation37_spill] sm:$0xff]  ;;  %vm1735_vm4 = vcmask 392192  }
 0x3e1   :  { %v1404_v36 = vcvt.f32.s32 %v1403_v29  ;;  %v1793_v63 = vsel %vm1792_vm7, %v1790_v11, %v1422_v23  ;;  %v2195_v11 = vpop.eup %2194  ;;  %v1014_v61 = vadd.f32 %v957_v10, %v3944_v40  ;;  %v1546_v29 = vcvt.s32.f32 %v1544_v54  ;;  %v3960_v10 = vld [vmem:[#allocation13_spill] sm:$0xff]  ;;  %v3962_v40 = vld [vmem:[#allocation99_spill] sm:$0xff] }
 0x3e2   :  { %v1536_v57 = vsel %vm1535_vm9, %v1531_v25, inf  ;;  %v973_v23 = vmul.f32 0.6931472, %v2195_v11  ;;  %v2197_v24 = vpop.eup %2196  ;;  %v1591_v3 = vcvt.s32.f32 %v1589_v44  ;;  %v1574_v54 = vand.u32 65535, %v3959_v9  ;;  %v3961_v11 = vld [vmem:[#allocation98_spill] sm:$0xff] }
 0x3e3   :  { %v1407_v17 = vadd.s32 %v1406_v7, %v1404_v36  ;;  %v1551_v38 = vsel %vm1550_vm10, %v1546_v29, inf  ;;  %v1046_v27 = vsub.f32 %v3945_v30, %v1014_v61  ;;  %v3946_v7 = vld [vmem:[#allocation60_spill] sm:$0xff]  ;;  %v2199_v51 = vpop.eup %2198  ;;  %vm1580_vm14 = vcmp.eq.f32.partialorder %v3961_v11, %v3960_v10  ;;  %v3963_v30 = vld [vmem:[#allocation62_spill] sm:$0xff] }
 0x3e4   :  { %v1448_v50 = vpop.xlane.xlu0 %1447  ;;  %v1022_v36 = vadd.f32 %v973_v23, %v3946_v7  ;;  %v1604_v61 = vand.u32 65535, %v3962_v40  ;;  %v1576_v29 = vcvt.s32.f32 %v1574_v54  ;;  %v3978_v40 = vld [vmem:[#allocation86_spill] sm:$0xff]  ;;  %vm1807_vm9 = vcmask 113664  }
 0x3e5   :  { %v1791_v35 = vsel %vm1789_vm6, %v1788_v4, %v1407_v17  ;;  %v1449_v0 = vcvt.f32.s32 %v1448_v50  ;;  %v959_v17 = vmul.f32 0.6931472, %v2197_v24  ;;  %v3965_v24 = vld [vmem:[#allocation74_spill] sm:$0xff]  ;;  %vm1741_vm6 = vcmask 654336  }
 0x3e6   :  { %v1581_v7 = vsel %vm1580_vm14, %v1576_v29, inf  ;;  %vm1810_vm10 = vcmask 121856  }
 0x3e7   :  { %v1452_v2 = vadd.s32 %v1451_v20, %v1449_v0  ;;  %v975_v20 = vmul.f32 0.6931472, %v2199_v51 }
 0x3e8   :  { %v3509_v18 = vpop.permute.xlu0 %1644 }
 0x3e9   :  { %v1796_v26 = vsel %vm1795_vm8, %v1793_v63, %v1452_v2  ;;  %v1054_v63 = vsub.f32 %v3947_v13, %v1022_v36  ;;  %v1023_v48 = vadd.f32 %v975_v20, %v3949_v39  ;;  %v3950_v2 = vld [vmem:[#allocation24_spill] sm:$0xff]  ;;  %v3969_v39 = vld [vmem:[#allocation63_spill] sm:$0xff] }
 0x3ea   :  { %1630 = vrot.lane.b32.xlu1 %v1045_v42, %s2314_s10  ;;  %v3951_v42 = vld [vmem:[#allocation26_spill] sm:$0xff]  ;;  %v3964_v36 = vld [vmem:[#allocation100_spill] sm:$0xff] }
 0x3eb   :  { %v1055_v28 = vsub.f32 %v3951_v42, %v1023_v48  ;;  %vm1610_vm15 = vcmp.eq.f32.partialorder %v3964_v36, %v3406_v37  ;;  %v3970_v42 = vld [vmem:[#allocation35_spill] sm:$0xff]  ;;  %v3981_v36 = vld [vmem:[#allocation69_spill] sm:$0xff] }
 0x3ec   :  { %v1433_v45 = vpop.xlane.xlu1 %1432 }
 0x3ed   :  { %v1434_v4 = vcvt.f32.s32 %v1433_v45 }
 0x3ee   :  { %1662 = vrot.lane.b32.xlu1 %v1053_v34, %s2315_s1 }
 0x3ef   :  { %v1437_v31 = vadd.s32 %v1436_v19, %v1434_v4  ;;  %v1496_v19 = vshll.u32 %v1495_v52, 16 }
 0x3f1   :  { %v1794_v8 = vsel %vm1792_vm7, %v1791_v35, %v1437_v31  ;;  %v3948_v35 = vld [vmem:[#allocation61_spill] sm:$0xff]  ;;  %vm1744_vm7 = vcmask 785408  }
 0x3f2   :  { %v1015_v50 = vadd.f32 %v959_v17, %v3948_v35  ;;  %v3966_v17 = vld [vmem:[#allocation71_spill] sm:$0xff] }
 0x3f4   :  { %v1047_v55 = vsub.f32 %v3950_v2, %v1015_v50  ;;  %v3968_v50 = vld [vmem:[#allocation76_spill] sm:$0xff] }
 0x3f8   :  { %v1463_v53 = vpop.xlane.xlu1 %1462 }
 0x3f9   :  { %v1464_v56 = vcvt.f32.s32 %v1463_v53 }
 0x3fb   :  { %v1467_v1 = vadd.s32 %v1466_v58, %v1464_v56  ;;  %v3954_v56 = vld [vmem:[#allocation80_spill] sm:$0xff] }
 0x3fc   :  { %v3523_v45 = vpop.permute.xlu1 %1646  ;;  %vm1595_vm13 = vcmp.eq.f32.partialorder %v3955_v62, %v3954_v56 }
 0x3fd   :  { %v1797_v22 = vsel %vm1795_vm8, %v1794_v8, %v1467_v1  ;;  %v3956_v1 = vld [vmem:[#allocation77_spill] sm:$0xff]  ;;  %v1596_v25 = vsel %vm1595_vm13, %v1591_v3, inf  ;;  %vm1747_vm8 = vcmask 916480  }
 0x3fe   :  { %1537 = vmin.xlane.f32.xlu0 %v1536_v57  ;;  %2200 = vlog2.f32 %v3956_v1  ;;  %v3957_v57 = vld [vmem:[#allocation16_spill] sm:$0xff] }
 0x3ff   :  { %2202 = vlog2.f32 %v3957_v57  ;;  %v3976_v57 = vld [vmem:[#allocation72_spill] sm:$0xff] }
 0x408   :  { %v2201_v14 = vpop.eup %2200 }
 0x409   :  { %v985_v23 = vmul.f32 0.6931472, %v2201_v14  ;;  %v3977_v14 = vld [vmem:[#allocation39_spill] sm:$0xff] }
 0x40b   :  { %v1028_v6 = vadd.f32 %v985_v23, %v3965_v24 }
 0x412   :  { %1552 = vmin.xlane.f32.xlu1 %v1551_v38  ;;  %v2203_v38 = vpop.eup %2202 }
 0x413   :  { %v989_v13 = vmul.f32 0.6931472, %v2203_v38  ;;  %v3979_v38 = vld [vmem:[#allocation73_spill] sm:$0xff] }
 0x414   :  { %1636 = vrot.lane.b32.xlu0 %v1046_v27, %s2316_s11 }
 0x418   :  { %1668 = vrot.lane.b32.xlu0 %v1054_v63, %s2317_s12 }
 0x419   :  { %v1478_v21 = vpop.xlane.xlu0 %1477 }
 0x41a   :  { %v1479_v33 = vcvt.f32.s32 %v1478_v21  ;;  %v1510_v21 = vcvt.f32.s32 %v3344_v49 }
 0x41c   :  { %v1482_v0 = vadd.s32 %v1481_v12, %v1479_v33  ;;  %v3967_v33 = vld [vmem:[#allocation33_spill] sm:$0xff]  ;;  %v1511_v2 = vshll.u32 %v1510_v21, 16  ;;  %v3985_v21 = vld [vmem:[#allocation75_spill] sm:$0xff] }
 0x41d   :  { %v3544_v27 = vpop.permute.xlu0 %1620  ;;  %v1060_v35 = vsub.f32 %v3967_v33, %v1028_v6 }
 0x41e   :  { %v3516_v41 = vsel %vm1798_vm11, %v1796_v26, %v1482_v0  ;;  %v3952_v26 = vld [vmem:[#allocation94_spill] sm:$0xff] }
 0x41f   :  { %v1559_v8 = vand.u32 65535, %v3952_v26 }
 0x421   :  { %v1561_v53 = vcvt.s32.f32 %v1559_v8  ;;  %v3553_v12 = vpop.permute.xlu0 %1652 }
 0x423   :  { %1638 = vrot.lane.b32.xlu1 %v1047_v55, %s2316_s11  ;;  %v1566_v58 = vsel %vm1565_vm12, %v1561_v53, inf  ;;  %v3974_v53 = vld [vmem:[#allocation83_spill] sm:$0xff] }
 0x427   :  { %1670 = vrot.lane.b32.xlu1 %v1055_v28, %s2317_s12  ;;  %v3971_v28 = vld [vmem:[#allocation79_spill] sm:$0xff] }
 0x42d   :  { %v1493_v34 = vpop.xlane.xlu1 %1492 }
 0x42e   :  { %v1494_v4 = vcvt.f32.s32 %v1493_v34 }
 0x430   :  { %v1497_v31 = vadd.s32 %v1496_v19, %v1494_v4  ;;  %v3972_v4 = vld [vmem:[#allocation65_spill] sm:$0xff] }
 0x431   :  { %v3574_v29 = vpop.permute.xlu1 %1622 }
 0x432   :  { %v3528_v43 = vsel %vm1798_vm11, %v1797_v22, %v1497_v31  ;;  %v3958_v22 = vld [vmem:[#allocation81_spill] sm:$0xff] }
 0x433   :  { %2204 = vlog2.f32 %v3958_v22 }
 0x434   :  { %2206 = vlog2.f32 %v3416_v46  ;;  %v1606_v46 = vcvt.s32.f32 %v1604_v61 }
 0x435   :  { %2208 = vlog2.f32 %v3963_v30 }
 0x436   :  { %2210 = vlog2.f32 %v3421_v60  ;;  %v1611_v51 = vsel %vm1610_vm15, %v1606_v46, inf  ;;  %v1030_v60 = vadd.f32 %v989_v13, %v3968_v50  ;;  %v3982_v13 = vld [vmem:[#allocation41_spill] sm:$0xff]  ;;  %v3986_v50 = vld [vmem:[#allocation31_spill] sm:$0xff] }
 0x437   :  { %1567 = vmin.xlane.f32.xlu0 %v1566_v58  ;;  %2212 = vlog2.f32 %v3966_v17 }
 0x438   :  { %2214 = vlog2.f32 %v3426_v32  ;;  %v1062_v49 = vsub.f32 %v3970_v42, %v1030_v60  ;;  %v3989_v42 = vld [vmem:[#allocation32_spill] sm:$0xff] }
 0x439   :  { %2216 = vlog2.f32 %v3969_v39  ;;  %v1525_v39 = vcvt.f32.s32 %v3368_v15 }
 0x43a   :  { %2218 = vlog2.f32 %v3972_v4 }
 0x43b   :  { %1597 = vmin.xlane.f32.xlu0 %v1596_v25  ;;  %v3975_v25 = vld [vmem:[#allocation70_spill] sm:$0xff]  ;;  %v1526_v4 = vshll.u32 %v1525_v39, 16 }
 0x43c   :  { %2220 = vlog2.f32 %v3975_v25 }
 0x43d   :  { %v2205_v63 = vpop.eup %2204  ;;  %2222 = vlog2.f32 %v3979_v38  ;;  %v3997_v38 = vld [vmem:[#allocation40_spill] sm:$0xff] }
 0x43e   :  { %v993_v20 = vmul.f32 0.6931472, %v2205_v63  ;;  %v2207_v0 = vpop.eup %2206  ;;  %v3983_v63 = vld [vmem:[#allocation91_spill] sm:$0xff] }
 0x43f   :  { %v2209_v48 = vpop.eup %2208  ;;  %v997_v52 = vmul.f32 0.6931472, %v2207_v0 }
 0x440   :  { %v1032_v32 = vadd.f32 %v993_v20, %v3971_v28  ;;  %v2211_v19 = vpop.eup %2210  ;;  %v983_v31 = vmul.f32 0.6931472, %v2209_v48  ;;  %v3586_v20 = vpop.permute.xlu1 %1654  ;;  %v3987_v48 = vld [vmem:[#allocation43_spill] sm:$0xff]  ;;  %v3990_v28 = vld [vmem:[#allocation78_spill] sm:$0xff] }
 0x441   :  { %v2213_v8 = vpop.eup %2212  ;;  %v1034_v58 = vadd.f32 %v997_v52, %v3974_v53  ;;  %v1001_v62 = vmul.f32 0.6931472, %v2211_v19 }
 0x442   :  { %v1064_v44 = vsub.f32 %v3973_v47, %v1032_v32  ;;  %v2215_v1 = vpop.eup %2214  ;;  %v1027_v22 = vadd.f32 %v983_v31, %v3976_v57  ;;  %v981_v9 = vmul.f32 0.6931472, %v2213_v8  ;;  %v3992_v47 = vld [vmem:[#allocation82_spill] sm:$0xff]  ;;  %v3994_v57 = vld [vmem:[#allocation85_spill] sm:$0xff] }
 0x443   :  { %v2217_v54 = vpop.eup %2216  ;;  %v1066_v11 = vsub.f32 %v3977_v14, %v1034_v58  ;;  %v1036_v61 = vadd.f32 %v1001_v62, %v3978_v40  ;;  %v1005_v23 = vmul.f32 0.6931472, %v2215_v1  ;;  %v3993_v1 = vld [vmem:[#allocation36_spill] sm:$0xff]  ;;  %v3995_v14 = vld [vmem:[#allocation38_spill] sm:$0xff]  ;;  %v3996_v40 = vld [vmem:[#allocation89_spill] sm:$0xff] }
 0x444   :  { %v1026_v24 = vadd.f32 %v981_v9, %v3981_v36  ;;  %v2219_v6 = vpop.eup %2218  ;;  %v4000_v36 = vld [vmem:[#allocation42_spill] sm:$0xff] }
 0x445   :  { %v1068_v46 = vsub.f32 %v3982_v13, %v1036_v61  ;;  %v1038_v17 = vadd.f32 %v1005_v23, %v3983_v63 }
 0x446   :  { %v1058_v60 = vsub.f32 %v3986_v50, %v1026_v24  ;;  %v2221_v0 = vpop.eup %2220 }
 0x447   :  { %v995_v52 = vmul.f32 0.6931472, %v2221_v0  ;;  %v2223_v19 = vpop.eup %2222 }
 0x448   :  { %v999_v53 = vmul.f32 0.6931472, %v2223_v19 }
 0x44b   :  { %1582 = vmin.xlane.f32.xlu1 %v1581_v7  ;;  %v987_v7 = vmul.f32 0.6931472, %v2217_v54 }
 0x44d   :  { %v1029_v33 = vadd.f32 %v987_v7, %v3985_v21  ;;  %v3999_v7 = vld [vmem:[#allocation57_spill] sm:$0xff]  ;;  %v1540_v21 = vcvt.f32.s32 %v3353_v5 }
 0x44f   :  { %1612 = vmin.xlane.f32.xlu1 %v1611_v51  ;;  %v3984_v51 = vld [vmem:[#allocation49_spill] sm:$0xff]  ;;  %v1541_v50 = vshll.u32 %v1540_v21, 16 }
 0x450   :  { %2224 = vlog2.f32 %v3984_v51 }
 0x451   :  { %1684 = vrot.lane.b32.xlu0 %v1060_v35, %s2314_s10  ;;  %v991_v35 = vmul.f32 0.6931472, %v2219_v6 }
 0x452   :  { %v1508_v55 = vpop.xlane.xlu0 %1507 }
 0x453   :  { %v1509_v34 = vcvt.f32.s32 %v1508_v55  ;;  %v3988_v55 = vld [vmem:[#allocation44_spill] sm:$0xff]  ;;  %v1031_v32 = vadd.f32 %v991_v35, %v3990_v28 }
 0x454   :  { %2226 = vlog2.f32 %v3988_v55 }
 0x455   :  { %v1512_v26 = vadd.s32 %v1511_v2, %v1509_v34  ;;  %1692 = vrot.lane.b32.xlu0 %v1062_v49, %s2316_s11  ;;  %v1070_v2 = vsub.f32 %v3987_v48, %v1038_v17  ;;  %v1061_v49 = vsub.f32 %v3989_v42, %v1029_v33  ;;  %2228 = vlog2.f32 %v3999_v7  ;;  %v4001_v17 = vld [vmem:[#allocation47_spill] sm:$0xff] }
 0x456   :  { %v1629_v13 = vpop.permute.xlu0 %1628  ;;  %v4002_v33 = vld [vmem:[#allocation55_spill] sm:$0xff] }
 0x457   :  { %v3567_v3 = vsel %vm1801_vm1, %v3516_v41, %v1512_v26  ;;  %v3980_v41 = vld [vmem:[#allocation30_spill] sm:$0xff]  ;;  %2230 = vlog2.f32 %v4002_v33 }
 0x458   :  { %v1059_v30 = vsub.f32 %v3980_v41, %v1027_v22  ;;  %v3991_v26 = vld [vmem:[#allocation34_spill] sm:$0xff]  ;;  %v1035_v22 = vadd.f32 %v999_v53, %v3994_v57 }
 0x459   :  { %1700 = vrot.lane.b32.xlu0 %v1064_v44, %s2311_s4  ;;  %v1063_v8 = vsub.f32 %v3991_v26, %v1031_v32  ;;  %v1033_v44 = vadd.f32 %v995_v52, %v3992_v47 }
 0x45a   :  { %v2225_v58 = vpop.eup %2224  ;;  %v1661_v63 = vpop.permute.xlu0 %1660 }
 0x45b   :  { %v1065_v25 = vsub.f32 %v3993_v1, %v1033_v44  ;;  %v1003_v9 = vmul.f32 0.6931472, %v2225_v58  ;;  %v4005_v44 = vld [vmem:[#allocation12_spill] sm:$0xff] }
 0x45d   :  { %1708 = vrot.lane.b32.xlu0 %v1066_v11, %s2313_s9  ;;  %v1067_v11 = vsub.f32 %v3995_v14, %v1035_v22  ;;  %v1037_v61 = vadd.f32 %v1003_v9, %v3996_v40 }
 0x45e   :  { %v2227_v54 = vpop.eup %2226 }
 0x45f   :  { %v1007_v23 = vmul.f32 0.6931472, %v2227_v54  ;;  %v1069_v41 = vsub.f32 %v3997_v38, %v1037_v61  ;;  %v2229_v6 = vpop.eup %2228 }
 0x460   :  { %1678 = vrot.lane.b32.xlu1 %v1059_v30, %s2312_s30 }
 0x461   :  { %1716 = vrot.lane.b32.xlu0 %v1068_v46, %s2315_s1  ;;  %v945_v46 = vmul.f32 0.6931472, %v2229_v6 }
 0x463   :  { %v1008_v51 = vadd.f32 %v945_v46, %v4001_v17 }
 0x464   :  { %1676 = vrot.lane.b32.xlu1 %v1058_v60, %s2312_s30  ;;  %v4003_v60 = vld [vmem:[#allocation14_spill] sm:$0xff] }
 0x465   :  { %1724 = vrot.lane.b32.xlu0 %v1070_v2, %s2317_s12  ;;  %v1040_v0 = vsub.f32 %v4003_v60, %v1008_v51  ;;  %v1615_v51 = vcvt.f32.s32 %v3406_v37 }
 0x466   :  { %v1523_v34 = vpop.xlane.xlu1 %1522 }
 0x467   :  { %v1524_v31 = vcvt.f32.s32 %v1523_v34  ;;  %v1730_v48 = vsel %vm655_vm0, %v1040_v0, %v3544_v27  ;;  %v2231_v34 = vpop.eup %2230  ;;  %v1616_v60 = vshll.u32 %v1615_v51, 16 }
 0x468   :  { %1686 = vrot.lane.b32.xlu1 %v1061_v49, %s2314_s10  ;;  %v1733_v55 = vsel %vm1732_vm2, %v1730_v48, %v1629_v13 }
 0x469   :  { %v1527_v15 = vadd.s32 %v1526_v4, %v1524_v31  ;;  %v947_v31 = vmul.f32 0.6931472, %v2231_v34 }
 0x46a   :  { %v1631_v19 = vpop.permute.xlu1 %1630 }
 0x46b   :  { %v1803_v62 = vsel %vm1801_vm1, %v3528_v43, %v1527_v15  ;;  %v3998_v43 = vld [vmem:[#allocation93_spill] sm:$0xff] }
 0x46c   :  { %1694 = vrot.lane.b32.xlu1 %v1063_v8, %s2316_s11  ;;  %v1039_v30 = vadd.f32 %v1007_v23, %v3998_v43  ;;  %v4004_v15 = vld [vmem:[#allocation45_spill] sm:$0xff]  ;;  %v1555_v8 = vcvt.f32.s32 %v3378_v16 }
 0x46d   :  { %v1009_v26 = vadd.f32 %v947_v31, %v4004_v15 }
 0x46e   :  { %v1071_v24 = vsub.f32 %v4000_v36, %v1039_v30 }
 0x46f   :  { %v1041_v53 = vsub.f32 %v4005_v44, %v1009_v26 }
 0x470   :  { %1702 = vrot.lane.b32.xlu1 %v1065_v25, %s2311_s4 }
 0x474   :  { %1710 = vrot.lane.b32.xlu1 %v1067_v11, %s2313_s9 }
 0x478   :  { %1718 = vrot.lane.b32.xlu1 %v1069_v41, %s2315_s1 }
 0x47c   :  { %1726 = vrot.lane.b32.xlu1 %v1071_v24, %s2317_s12  ;;  %v4006_v24 = vld [vmem:[#allocation67_spill] sm:$0xff] }
 0x47d   :  { %2232 = vlog2.f32 %v4006_v24 }
 0x487   :  { %v2233_v13 = vpop.eup %2232 }
 0x488   :  { %v977_v33 = vmul.f32 0.6931472, %v2233_v13 }
 0x48b   :  { %v1538_v35 = vpop.xlane.xlu0 %1537 }
 0x48c   :  { %v1539_v39 = vcvt.f32.s32 %v1538_v35 }
 0x48e   :  { %v1542_v2 = vadd.s32 %v1541_v50, %v1539_v39 }
 0x48f   :  { %v1637_v42 = vpop.permute.xlu0 %1636 }
 0x490   :  { %v1805_v5 = vsel %vm1804_vm3, %v3567_v3, %v1542_v2  ;;  %v1736_v49 = vsel %vm1735_vm4, %v1733_v55, %v1637_v42  ;;  %v1663_v3 = vpop.permute.xlu1 %1662  ;;  %v4007_v2 = vld [vmem:[#allocation66_spill] sm:$0xff]  ;;  %v4008_v42 = vld [vmem:[#allocation59_spill] sm:$0xff] }
 0x491   :  { %v1739_v28 = vsel %vm1738_vm5, %v1736_v49, %v3509_v18  ;;  %v1556_v18 = vshll.u32 %v1555_v8, 16  ;;  %v1024_v55 = vadd.f32 %v977_v33, %v4007_v2  ;;  %2234 = vlog2.f32 %v4008_v42  ;;  %v4009_v49 = vld [vmem:[#allocation29_spill] sm:$0xff] }
 0x492   :  { %v1742_v32 = vsel %vm1741_vm6, %v1739_v28, %v3553_v12  ;;  %v1731_v12 = vsel %vm655_vm0, %v1041_v53, %v3574_v29  ;;  %v1570_v29 = vcvt.f32.s32 %v3363_v59 }
 0x493   :  { %v1745_v27 = vsel %vm1744_vm7, %v1742_v32, %v1661_v63  ;;  %v1669_v52 = vpop.permute.xlu0 %1668  ;;  %v1734_v25 = vsel %vm1732_vm2, %v1731_v12, %v1631_v19  ;;  %v1056_v28 = vsub.f32 %v4009_v49, %v1024_v55 }
 0x494   :  { %v1748_v4 = vsel %vm1747_vm8, %v1745_v27, %v1669_v52  ;;  %v1571_v23 = vshll.u32 %v1570_v29, 16 }
 0x495   :  { %1764 = vst [vmem:[#allocation6] sm:$0xff] %v1748_v4 }
 0x49f   :  { %v1553_v47 = vpop.xlane.xlu1 %1552 }
 0x4a0   :  { %v1554_v58 = vcvt.f32.s32 %v1553_v47 }
 0x4a2   :  { %v1557_v1 = vadd.s32 %v1556_v18, %v1554_v58 }
 0x4a3   :  { %v1639_v57 = vpop.permute.xlu1 %1638 }
 0x4a4   :  { %v1806_v22 = vsel %vm1804_vm3, %v1803_v62, %v1557_v1  ;;  %v1737_v9 = vsel %vm1735_vm4, %v1734_v25, %v1639_v57  ;;  %v1600_v62 = vcvt.f32.s32 %v3954_v56  ;;  %v1585_v56 = vcvt.f32.s32 %v3960_v10 }
 0x4a5   :  { %v1740_v54 = vsel %vm1738_vm5, %v1737_v9, %v3523_v45 }
 0x4a6   :  { %v1743_v16 = vsel %vm1741_vm6, %v1740_v54, %v3586_v20  ;;  %v1601_v45 = vshll.u32 %v1600_v62, 16  ;;  %v1586_v17 = vshll.u32 %v1585_v56, 16 }
 0x4a7   :  { %v1746_v14 = vsel %vm1744_vm7, %v1743_v16, %v1663_v3  ;;  %v1671_v11 = vpop.permute.xlu1 %1670 }
 0x4a8   :  { %v1749_v40 = vsel %vm1747_vm8, %v1746_v14, %v1671_v11 }
 0x4a9   :  { %1766 = vst [vmem:[#allocation6 + $0x10] sm:$0xff] %v1749_v40 }
 0x4c4   :  { %v1568_v61 = vpop.xlane.xlu0 %1567 }
 0x4c5   :  { %v1569_v38 = vcvt.f32.s32 %v1568_v61 }
 0x4c7   :  { %v1572_v41 = vadd.s32 %v1571_v23, %v1569_v38 }
 0x4c8   :  { %v1598_v43 = vpop.xlane.xlu0 %1597 }
 0x4c9   :  { %v1808_v30 = vsel %vm1807_vm9, %v1805_v5, %v1572_v41  ;;  %v1599_v20 = vcvt.f32.s32 %v1598_v43 }
 0x4cb   :  { %v1602_v7 = vadd.s32 %v1601_v45, %v1599_v20 }
 0x4cc   :  { %v1685_v36 = vpop.permute.xlu0 %1684 }
 0x4cd   :  { %v1811_v6 = vsel %vm1810_vm10, %v1808_v30, %v1602_v7 }
 0x4ce   :  { %1813 = vst.msk [vmem:[#allocation7] sm:$0xff] %vm655_vm0, %v1811_v6 }
 0x4d0   :  { %v1693_v59 = vpop.permute.xlu0 %1692 }
 0x4d4   :  { %v1701_v46 = vpop.permute.xlu0 %1700 }
 0x4d8   :  { %v1583_v63 = vpop.xlane.xlu1 %1582  ;;  %v1709_v48 = vpop.permute.xlu0 %1708 }
 0x4d9   :  { %v1584_v21 = vcvt.f32.s32 %v1583_v63 }
 0x4db   :  { %v1587_v35 = vadd.s32 %v1586_v17, %v1584_v21 }
 0x4dc   :  { %v1613_v50 = vpop.xlane.xlu1 %1612 }
 0x4dd   :  { %v1809_v0 = vsel %vm1807_vm9, %v1806_v22, %v1587_v35  ;;  %v1614_v39 = vcvt.f32.s32 %v1613_v50 }
 0x4df   :  { %v1617_v10 = vadd.s32 %v1616_v60, %v1614_v39 }
 0x4e0   :  { %v1679_v5 = vpop.permute.xlu1 %1678 }
 0x4e1   :  { %v1812_v37 = vsel %vm1810_vm10, %v1809_v0, %v1617_v10 }
 0x4e2   :  { %1814 = vst.msk [vmem:[#allocation7 + $0x8] sm:$0xff] %vm655_vm0, %v1812_v37 }
 0x4e3   :  { %2269 = shalt.err (!%p2266_p12)
}
 0x4e4   :  { %s2270_s18 = scalar_lea.hbm %s3708_s6, 256 }
 0x4e5   :  { %p2271_p13 = scmp.ne.s32.totalorder %s3708_s6, %s2270_s18  ;;  %p2274_p0 = scmp.lt.u32.totalorder %s2270_s18, %s3708_s6 }
 0x4e7   :  { %p2276_p1 = pnand %p2274_p0, %p2271_p13 }
 0x4e9   :  { %2279 = shalt.err (!%p2276_p1)
}
 0x4ea   :  { %1838 = dma.vmem_to_hbm [thread:$0]  %s1833_s14, 256, %s3708_s6, [#allocation8], %s2309_s7, %s2309_s7, %s2310_s8   ;;  %v1717_v32 = vpop.permute.xlu0 %1716  ;;  %v1677_v27 = vpop.permute.xlu1 %1676  ;;  %v4010_v58 = vld [vmem:[#allocation68_spill] sm:$0xff] }
 0x4eb   :  { %v1750_v52 = vsel %vm655_vm0, %v1056_v28, %v1677_v27  ;;  %v2235_v15 = vpop.eup %2234  ;;  %v4011_v25 = vld [vmem:[#allocation28_spill] sm:$0xff]  ;;  %s2319_s6 = smov [#allocation6]  }
 0x4ec   :  { %v1752_v34 = vsel %vm1732_vm2, %v1750_v52, %v1685_v36  ;;  %v979_v44 = vmul.f32 0.6931472, %v2235_v15  ;;  %s1820_s7 = sshll.u32 %s2319_s6, 4  ;;  %s1821_s7 = int_to_ptr.vmem [resolvable:$true] %s1820_s7 }
 0x4ed   :  { %v1754_v19 = vsel %vm1735_vm4, %v1752_v34, %v1693_v59  ;;  %s2280_s8 = scalar_lea.vmem %s1821_s7, 512  ;;  %p2285_p3 = scmp.lt.s32.totalorder %s1821_s7, %s1821_s7 }
 0x4ee   :  { %v1756_v4 = vsel %vm1738_vm5, %v1754_v19, %v1701_v46  ;;  %v1687_v31 = vpop.permute.xlu1 %1686  ;;  %v1725_v26 = vpop.permute.xlu0 %1724  ;;  %v1025_v12 = vadd.f32 %v979_v44, %v4010_v58  ;;  %p2281_p2 = scmp.ne.s32.totalorder %s1821_s7, %s2280_s8  ;;  %p2286_p4 = scmp.lt.s32.totalorder %s2280_s8, %s2280_s8 }
 0x4ef   :  { %v1758_v3 = vsel %vm1741_vm6, %v1756_v4, %v1709_v48 }
 0x4f0   :  { %v1760_v8 = vsel %vm1744_vm7, %v1758_v3, %v1717_v32  ;;  %v1057_v57 = vsub.f32 %v4011_v25, %v1025_v12  ;;  %p2287_p5 = por %p2286_p4, %p2285_p3 }
 0x4f1   :  { %v1762_v47 = vsel %vm1747_vm8, %v1760_v8, %v1725_v26 }
 0x4f2   :  { %1765 = vst [vmem:[#allocation6 + $0x8] sm:$0xff] %v1762_v47  ;;  %v1695_v18 = vpop.permute.xlu1 %1694  ;;  %v1751_v22 = vsel %vm655_vm0, %v1057_v57, %v1679_v5  ;;  %p2288_p6 = pnand %p2287_p5, %p2281_p2 }
 0x4f3   :  { %v1753_v9 = vsel %vm1732_vm2, %v1751_v22, %v1687_v31 }
 0x4f4   :  { %v1755_v16 = vsel %vm1735_vm4, %v1753_v9, %v1695_v18 }
 0x4f6   :  { %v1703_v53 = vpop.permute.xlu1 %1702 }
 0x4f7   :  { %v1757_v14 = vsel %vm1738_vm5, %v1755_v16, %v1703_v53 }
 0x4fa   :  { %v1711_v1 = vpop.permute.xlu1 %1710 }
 0x4fb   :  { %v1759_v11 = vsel %vm1741_vm6, %v1757_v14, %v1711_v1 }
 0x4fe   :  { %v1719_v54 = vpop.permute.xlu1 %1718 }
 0x4ff   :  { %v1761_v40 = vsel %vm1744_vm7, %v1759_v11, %v1719_v54 }
 0x502   :  { %v1727_v29 = vpop.permute.xlu1 %1726 }
 0x503   :  { %v1763_v61 = vsel %vm1747_vm8, %v1761_v40, %v1727_v29 }
 0x504   :  { %1767 = vst [vmem:[#allocation6 + $0x18] sm:$0xff] %v1763_v61 }
 0x505   :  { %2291 = shalt.err (!%p2288_p6)
}
 0x506   :  { %s2292_s26 = scalar_lea.hbm %s3707_s5, 512 }
 0x507   :  { %p2293_p7 = scmp.ne.s32.totalorder %s3707_s5, %s2292_s26  ;;  %p2296_p8 = scmp.lt.u32.totalorder %s2292_s26, %s3707_s5 }
 0x509   :  { %p2298_p9 = pnand %p2296_p8, %p2293_p7 }
 0x50b   :  { %2301 = shalt.err (!%p2298_p9)
}
 0x50c   :  { %s2320_s29 = smov 256  }
 0x50d   :  { %1826 = dma.vmem_to_hbm [thread:$0]  %s1821_s7, 512, %s3707_s5, [#allocation5], %s2320_s29, %s2320_s29, %s2312_s30  }
 0x50e   :  { %2304 = dma.done.wait [#allocation5], 512  }
 0x50f   :  { %2305 = vsyncadd [#allocation5], 4294966784 }
 0x510   :  { %2306 = dma.done.wait [#allocation8], 256  }
 0x511   :  { %2307 = vsyncadd [#allocation8], 4294967040 }
 0x512   :  { %1845 = vsyncpa [#allocation4], 1 }
 0x513   :  { %1846 = vsyncpa [#allocation5], 1 }
 0x514   :  { %1847 = vsyncpa [#allocation8], 1 }

</bundles_post_ra>
